<compile_context>
chip_gen: v5e
topology: v5e:2x2
jax: 0.10.0
libtpu: 0.0.40
codegen_flags: <defaults>
</compile_context>

<pallas_src>
import jax
import jax.numpy as jnp
from jax import lax
from jax.experimental import pallas as pl
from jax.experimental.pallas import tpu as pltpu

EPS = 1e-5                     # nn.BatchNorm2d default eps
LANE = 128                     # channel dims zero-padded to TPU lane width
VMEM_LIMIT = 64 * 1024 * 1024  # raised scoped-VMEM limit (safe on v5e/v6e/v7x)


def _round_up(n, m=LANE):
    return ((n + m - 1) // m) * m


def _pick_tile_m(m):
    """Row-tile for the 1x1 / elementwise passes: prefer 512/1024 (85%+ of HBM
    roofline) but keep >=2 grid steps so the pipeline double-buffers."""
    for tm in (512, 1024, 256, 128, 64, 32, 16, 8):
        if m % tm == 0 and m // tm >= 2:
            return tm
    return m


def _pick_tile_rows(h, w):
    """Output rows per conv2 grid step (whole image for small feature maps)."""
    for tr in (32, 16, 8, 4, 2, 1):
        if h % tr == 0 and (tr * w) % 8 == 0:
            return tr
    return 1


def _partial8(v):
    """Reduce (R, C) -> (8, C) per-tile partial sums; the wrapper sums the rest."""
    r, c = v.shape
    if r % 8 != 0:                       # not exercised at the demo shapes
        v = jnp.pad(v, ((0, (-r) % 8), (0, 0)))
    return v.reshape(-1, 8, c).sum(axis=0)


# ---------------- Pallas kernels ----------------

def conv1_stats_kernel(x_ref, w1_ref, h1_ref, s_ref, ss_ref):
    """conv1 (1x1) as MXU matmul + per-tile BN1 partial sums."""
    h = jnp.dot(x_ref[...], w1_ref[...], preferred_element_type=jnp.float32)
    h1_ref[...] = h.astype(h1_ref.dtype)
    s_ref[...] = _partial8(h)[None]
    ss_ref[...] = _partial8(h * h)[None]


def conv2_stats_kernel(hin_ref, w2_ref, h2_ref, s_ref, ss_ref, acc_ref):
    """conv2 (3x3, stride=1, pad=1) over TR output rows of one image:
    9 shifted (TR*W, C)@(C, C) matmuls accumulated in VMEM + BN2 partial sums."""
    tr = hin_ref.shape[1] - 2
    w = hin_ref.shape[2] - 2
    c = hin_ref.shape[3]
    acc_ref[...] = jnp.zeros_like(acc_ref)
    for dy in range(3):
        for dx in range(3):
            lhs = hin_ref[0, dy:dy + tr, dx:dx + w, :].reshape(tr * w, c)
            acc_ref[...] += jnp.dot(lhs, w2_ref[3 * dy + dx],
                                    preferred_element_type=jnp.float32)
    acc = acc_ref[...]
    h2_ref[...] = acc.astype(h2_ref.dtype)
    s_ref[...] = _partial8(acc)[None]
    ss_ref[...] = _partial8(acc * acc)[None]


def conv3_stats_kernel(h2_ref, sc2_ref, sh2_ref, w3_ref, h3_ref, s_ref, ss_ref):
    """BN2 apply (folded scale/shift FMA) + relu + conv3 (1x1) + BN3 partial sums."""
    a = jnp.maximum(h2_ref[...].astype(jnp.float32) * sc2_ref[...] + sh2_ref[...], 0.0)
    h = jnp.dot(a.astype(jnp.bfloat16), w3_ref[...],
                preferred_element_type=jnp.float32)
    h3_ref[...] = h.astype(h3_ref.dtype)          # stored bf16 (halves HBM traffic)
    s_ref[...] = _partial8(h)[None]
    ss_ref[...] = _partial8(h * h)[None]


def bn3_residual_kernel(h3_ref, x_ref, sc3_ref, sh3_ref, o_ref):
    """BN3 apply (folded) + identity residual + relu."""
    o_ref[...] = jnp.maximum(
        h3_ref[...].astype(jnp.float32) * sc3_ref[...] + sh3_ref[...]
        + x_ref[...].astype(jnp.float32), 0.0)


# ---------------- wrapper ----------------

def _fold_bn(s, ss, gamma, beta, count):
    """Fold batch statistics into per-channel scale/shift: y = h*scale + shift."""
    mean = s / count
    var = jnp.maximum(ss / count - mean * mean, 0.0)      # biased variance
    scale = gamma * lax.rsqrt(var + EPS)
    shift = beta - mean * scale
    return scale, shift


def _reduce_stats(partials):
    """(G, 8, C) per-tile partial sums -> (1, C)."""
    return jnp.sum(partials, axis=(0, 1)).reshape(1, -1)


def bottleneck_forward(x_nchw, params):
    w1, g1, b1, w2, g2, b2, w3, g3, b3 = params
    N, Cin, H, W = x_nchw.shape
    width = w1.shape[1]
    Cout = w3.shape[1]
    assert Cin == Cout, "identity residual requires in_planes == 4*planes"
    M = N * H * W
    TM = _pick_tile_m(M)
    G = M // TM
    TR = _pick_tile_rows(H, W)
    nT = H // TR
    NT = N * nT

    Cin_p = _round_up(Cin)
    Wd_p = _round_up(width)
    Co_p = _round_up(Cout)             # == Cin_p (identity residual)
    f32, bf16 = jnp.float32, jnp.bfloat16

    def cp(sem):
        return pltpu.CompilerParams(dimension_semantics=sem,
                                    vmem_limit_bytes=VMEM_LIMIT)

    # ---- layout plumbing: channels-last, flattened, lane-padded, bf16 ----
    x_flat = jnp.transpose(x_nchw, (0, 2, 3, 1)).reshape(M, Cin)
    x_bf = jnp.pad(x_flat, ((0, 0), (0, Cin_p - Cin))).astype(bf16)

    w1_p = jnp.pad(w1, ((0, Cin_p - Cin), (0, Wd_p - width))).astype(bf16)
    w2_p = jnp.pad(w2, ((0, 0), (0, 0), (0, Wd_p - width), (0, Wd_p - width)))
    w2_p = w2_p.reshape(9, Wd_p, Wd_p).astype(bf16)       # (3*kh+kw, cin, cout)
    w3_p = jnp.pad(w3, ((0, Wd_p - width), (0, Co_p - Cout))).astype(bf16)

    def pvec(v, c):
        return jnp.pad(v, (0, c - v.shape[0])).reshape(1, c).astype(f32)

    g1_p, b1_p = pvec(g1, Wd_p), pvec(b1, Wd_p)
    g2_p, b2_p = pvec(g2, Wd_p), pvec(b2, Wd_p)
    g3_p, b3_p = pvec(g3, Co_p), pvec(b3, Co_p)

    # ---- pass 1: conv1 (1x1) + BN1 partial statistics ----
    h1_pre, s1o, ss1o = pl.pallas_call(
        conv1_stats_kernel,
        grid=(G,),
        in_specs=[pl.BlockSpec((TM, Cin_p), lambda i: (i, 0)),
                  pl.BlockSpec((Cin_p, Wd_p), lambda i: (0, 0))],
        out_specs=(pl.BlockSpec((TM, Wd_p), lambda i: (i, 0)),
                   pl.BlockSpec((1, 8, Wd_p), lambda i: (i, 0, 0)),
                   pl.BlockSpec((1, 8, Wd_p), lambda i: (i, 0, 0))),
        out_shape=(jax.ShapeDtypeStruct((M, Wd_p), bf16),
                   jax.ShapeDtypeStruct((G, 8, Wd_p), f32),
                   jax.ShapeDtypeStruct((G, 8, Wd_p), f32)),
        compiler_params=cp(("parallel",)),
    )(x_bf, w1_p)

    scale1, shift1 = _fold_bn(_reduce_stats(s1o), _reduce_stats(ss1o),
                              g1_p, b1_p, float(M))

    # BN1 apply + relu + 1-pixel zero pad + overlapping (TR+2)-row halo slabs.
    # XLA fuses all of this into one pass over h1; conv2 then reads each slab once
    # (no more 3x per-row refetch).
    h1_post = jnp.maximum(h1_pre.astype(f32) * scale1 + shift1, 0.0).astype(bf16)
    h1_pad = jnp.pad(h1_post.reshape(N, H, W, Wd_p),
                     ((0, 0), (1, 1), (1, 1), (0, 0)))
    h1_halo = jnp.stack([h1_pad[:, t * TR:t * TR + TR + 2] for t in range(nT)],
                        axis=1).reshape(NT, TR + 2, W + 2, Wd_p)

    # ---- pass 2: conv2 (3x3) over TR-row tiles + BN2 partial statistics ----
    h2_pre, s2o, ss2o = pl.pallas_call(
        conv2_stats_kernel,
        grid=(NT,),
        in_specs=[pl.BlockSpec((1, TR + 2, W + 2, Wd_p), lambda i: (i, 0, 0, 0)),
                  pl.BlockSpec((9, Wd_p, Wd_p), lambda i: (0, 0, 0))],
        out_specs=(pl.BlockSpec((TR * W, Wd_p), lambda i: (i, 0)),
                   pl.BlockSpec((1, 8, Wd_p), lambda i: (i, 0, 0)),
                   pl.BlockSpec((1, 8, Wd_p), lambda i: (i, 0, 0))),
        out_shape=(jax.ShapeDtypeStruct((M, Wd_p), bf16),
                   jax.ShapeDtypeStruct((NT, 8, Wd_p), f32),
                   jax.ShapeDtypeStruct((NT, 8, Wd_p), f32)),
        scratch_shapes=[pltpu.VMEM((TR * W, Wd_p), f32)],
        compiler_params=cp(("parallel",)),
    )(h1_halo, w2_p)

    scale2, shift2 = _fold_bn(_reduce_stats(s2o), _reduce_stats(ss2o),
                              g2_p, b2_p, float(M))

    # ---- pass 3: BN2 apply + relu + conv3 (1x1) + BN3 partial statistics ----
    h3_pre, s3o, ss3o = pl.pallas_call(
        conv3_stats_kernel,
        grid=(G,),
        in_specs=[pl.BlockSpec((TM, Wd_p), lambda i: (i, 0)),
                  pl.BlockSpec((1, Wd_p), lambda i: (0, 0)),
                  pl.BlockSpec((1, Wd_p), lambda i: (0, 0)),
                  pl.BlockSpec((Wd_p, Co_p), lambda i: (0, 0))],
        out_specs=(pl.BlockSpec((TM, Co_p), lambda i: (i, 0)),
                   pl.BlockSpec((1, 8, Co_p), lambda i: (i, 0, 0)),
                   pl.BlockSpec((1, 8, Co_p), lambda i: (i, 0, 0))),
        out_shape=(jax.ShapeDtypeStruct((M, Co_p), bf16),
                   jax.ShapeDtypeStruct((G, 8, Co_p), f32),
                   jax.ShapeDtypeStruct((G, 8, Co_p), f32)),
        compiler_params=cp(("parallel",)),
    )(h2_pre, scale2, shift2, w3_p)

    scale3, shift3 = _fold_bn(_reduce_stats(s3o), _reduce_stats(ss3o),
                              g3_p, b3_p, float(M))

    # ---- pass 4: BN3 apply + identity residual + relu ----
    out_p = pl.pallas_call(
        bn3_residual_kernel,
        grid=(G,),
        in_specs=[pl.BlockSpec((TM, Co_p), lambda i: (i, 0)),
                  pl.BlockSpec((TM, Co_p), lambda i: (i, 0)),
                  pl.BlockSpec((1, Co_p), lambda i: (0, 0)),
                  pl.BlockSpec((1, Co_p), lambda i: (0, 0))],
        out_specs=pl.BlockSpec((TM, Co_p), lambda i: (i, 0)),
        out_shape=jax.ShapeDtypeStruct((M, Co_p), f32),
        compiler_params=cp(("parallel",)),
    )(h3_pre, x_bf, scale3, shift3)

    out = out_p[:, :Cout].reshape(N, H, W, Cout)
    return jnp.transpose(out, (0, 3, 1, 2))


# ---------------- pure-JAX reference (for verification) ----------------

def _bn_ref(x, gamma, beta):
    mean = jnp.mean(x, axis=(0, 1, 2), keepdims=True)
    var = jnp.mean((x - mean) ** 2, axis=(0, 1, 2), keepdims=True)
    return ((x - mean) * lax.rsqrt(var + EPS) * gamma.reshape(1, 1, 1, -1)
            + beta.reshape(1, 1, 1, -1))


def bottleneck_ref(x_nchw, params):
    w1, g1, b1, w2, g2, b2, w3, g3, b3 = params
    x = jnp.transpose(x_nchw, (0, 2, 3, 1))
    dn = ("NHWC", "HWIO", "NHWC")
    h = lax.conv_general_dilated(x, w1.reshape(1, 1, *w1.shape), (1, 1), "VALID",
                                 dimension_numbers=dn)
    h = jnp.maximum(_bn_ref(h, g1, b1), 0.0)
    h = lax.conv_general_dilated(h, w2, (1, 1), ((1, 1), (1, 1)),
                                 dimension_numbers=dn)
    h = jnp.maximum(_bn_ref(h, g2, b2), 0.0)
    h = lax.conv_general_dilated(h, w3.reshape(1, 1, *w3.shape), (1, 1), "VALID",
                                 dimension_numbers=dn)
    h = _bn_ref(h, g3, b3)
    return jnp.transpose(jnp.maximum(h + x, 0.0), (0, 3, 1, 2))


if __name__ == "__main__":
    key = jax.random.PRNGKey(0)
    N, planes, H, W = 2, 8, 16, 16
    width = planes                      # conv1/conv2 width
    in_planes = planes * 4              # identity residual requires in_planes == 4*planes
    Cout = planes * 4                   # expansion = 4

    ks = jax.random.split(key, 10)
    x = jax.random.normal(ks[0], (N, in_planes, H, W), jnp.float32)

    # deterministic synthetic parameters in kernel (matmul / HWIO) layout:
    #   w1: (Cin, width)          <-> torch conv1.weight (width, Cin, 1, 1)
    #   w2: (3, 3, width, width)  <-> torch conv2.weight (width, width, 3, 3), (kh,kw,ci,co)
    #   w3: (width, Cout)         <-> torch conv3.weight (Cout, width, 1, 1)
    w1 = 0.1 * jax.random.normal(ks[1], (in_planes, width), jnp.float32)
    w2 = 0.1 * jax.random.normal(ks[2], (3, 3, width, width), jnp.float32)
    w3 = 0.1 * jax.random.normal(ks[3], (width, Cout), jnp.float32)
    g1 = 1.0 + 0.1 * jax.random.normal(ks[4], (width,), jnp.float32)
    b1 = 0.1 * jax.random.normal(ks[5], (width,), jnp.float32)
    g2 = 1.0 + 0.1 * jax.random.normal(ks[6], (width,), jnp.float32)
    b2 = 0.1 * jax.random.normal(ks[7], (width,), jnp.float32)
    g3 = 1.0 + 0.1 * jax.random.normal(ks[8], (Cout,), jnp.float32)
    b3 = 0.1 * jax.random.normal(ks[9], (Cout,), jnp.float32)
    params = (w1, g1, b1, w2, g2, b2, w3, g3, b3)

    out = jax.block_until_ready(jax.jit(bottleneck_forward)(x, params))
    ref = bottleneck_ref(x, params)

    assert out.shape == (N, Cout, H, W), out.shape
    # bf16 MXU operands / bf16 intermediates (vs an all-f32 reference) plus three
    # batch-norm normalizations amplify rounding; bound mean and tail.
    err = jnp.abs(out - ref)
    mean_err = float(jnp.mean(err))
    max_err = float(jnp.max(err))
    if not (mean_err < 2e-2 and max_err < 2.5e-1):
        raise AssertionError(
            f"Pallas output mismatch vs reference: mean_err={mean_err}, max_err={max_err}")
    print("KERNEL_OK")
</pallas_src>

<mosaic_0001>
module attributes {stable_mosaic.version = 11 : i64} {
  func.func @conv1_stats_kernel(%arg0: i32, %arg1: memref<256x128xbf16, #tpu.memory_space<vmem>>, %arg2: memref<128x128xbf16, #tpu.memory_space<vmem>>, %arg3: memref<256x128xbf16, #tpu.memory_space<vmem>>, %arg4: memref<1x8x128xf32, #tpu.memory_space<vmem>>, %arg5: memref<1x8x128xf32, #tpu.memory_space<vmem>>) attributes {dimension_semantics = [#tpu.dimension_semantics<parallel>], iteration_bounds = array<i64: 2>, scalar_prefetch = 0 : i64, scratch_operands = 0 : i64, tpu.core_type = #tpu.core_type<tc>, window_params = [{transform_indices = @transform_0, window_bounds = array<i64: 256, 128>}, {pipeline_mode = #tpu.pipeline_mode<synchronous>, transform_indices = @transform_1, window_bounds = array<i64: 128, 128>}, {transform_indices = @transform_2, window_bounds = array<i64: 256, 128>}, {transform_indices = @transform_3, window_bounds = array<i64: 1, 8, 128>}, {transform_indices = @transform_4, window_bounds = array<i64: 1, 8, 128>}]} {
    %c0 = arith.constant 0 : index
    %c0_0 = arith.constant 0 : index
    %0 = vector.load %arg1[%c0, %c0_0] : memref<256x128xbf16, #tpu.memory_space<vmem>>, vector<256x128xbf16>
    %c0_1 = arith.constant 0 : index
    %c0_2 = arith.constant 0 : index
    %1 = vector.load %arg2[%c0_1, %c0_2] : memref<128x128xbf16, #tpu.memory_space<vmem>>, vector<128x128xbf16>
    %cst = arith.constant dense<0.000000e+00> : vector<256x128xf32>
    %2 = tpu.matmul %0, %1, %cst {dimension_numbers = #tpu.dot_dimension_numbers<[1], [0], [0], [1], [0, 0, 1, 1], [], []>} : vector<256x128xbf16>, vector<128x128xbf16>, vector<256x128xf32> -> vector<256x128xf32>
    %3 = arith.truncf %2 : vector<256x128xf32> to vector<256x128xbf16>
    %c0_3 = arith.constant 0 : index
    %c0_4 = arith.constant 0 : index
    %4 = vector.load %arg3[%c0_3, %c0_4] : memref<256x128xbf16, #tpu.memory_space<vmem>>, vector<256x128xbf16>
    tpu.vector_store %arg3[%c0_3, %c0_4], %3 {strides = array<i32>} : memref<256x128xbf16, #tpu.memory_space<vmem>>, vector<256x128xbf16>,
    %5 = vector.shape_cast %2 : vector<256x128xf32> to vector<32x8x128xf32>
    %cst_5 = arith.constant dense<0.000000e+00> : vector<8x128xf32>
    %6 = vector.multi_reduction <add>, %5, %cst_5 [0] : vector<32x8x128xf32> to vector<8x128xf32>
    %7 = vector.shape_cast %6 : vector<8x128xf32> to vector<1x8x128xf32>
    %c0_6 = arith.constant 0 : index
    %c0_7 = arith.constant 0 : index
    %c0_8 = arith.constant 0 : index
    %8 = vector.load %arg4[%c0_6, %c0_7, %c0_8] : memref<1x8x128xf32, #tpu.memory_space<vmem>>, vector<1x8x128xf32>
    tpu.vector_store %arg4[%c0_6, %c0_7, %c0_8], %7 {strides = array<i32>} : memref<1x8x128xf32, #tpu.memory_space<vmem>>, vector<1x8x128xf32>,
    %9 = arith.mulf %2, %2 : vector<256x128xf32>
    %10 = vector.shape_cast %9 : vector<256x128xf32> to vector<32x8x128xf32>
    %cst_9 = arith.constant dense<0.000000e+00> : vector<8x128xf32>
    %11 = vector.multi_reduction <add>, %10, %cst_9 [0] : vector<32x8x128xf32> to vector<8x128xf32>
    %12 = vector.shape_cast %11 : vector<8x128xf32> to vector<1x8x128xf32>
    %c0_10 = arith.constant 0 : index
    %c0_11 = arith.constant 0 : index
    %c0_12 = arith.constant 0 : index
    %13 = vector.load %arg5[%c0_10, %c0_11, %c0_12] : memref<1x8x128xf32, #tpu.memory_space<vmem>>, vector<1x8x128xf32>
    tpu.vector_store %arg5[%c0_10, %c0_11, %c0_12], %12 {strides = array<i32>} : memref<1x8x128xf32, #tpu.memory_space<vmem>>, vector<1x8x128xf32>,
    return
  }
  func.func @transform_0(%arg0: i32) -> (i32, i32) {
    %c0_i32 = arith.constant 0 : i32
    %c0_i32_0 = arith.constant 0 : i32
    return %arg0, %c0_i32 : i32, i32
  }
  func.func @transform_1(%arg0: i32) -> (i32, i32) {
    %c0_i32 = arith.constant 0 : i32
    %c0_i32_0 = arith.constant 0 : i32
    %c0_i32_1 = arith.constant 0 : i32
    return %c0_i32, %c0_i32_0 : i32, i32
  }
  func.func @transform_2(%arg0: i32) -> (i32, i32) {
    %c0_i32 = arith.constant 0 : i32
    %c0_i32_0 = arith.constant 0 : i32
    return %arg0, %c0_i32 : i32, i32
  }
  func.func @transform_3(%arg0: i32) -> (i32, i32, i32) {
    %c0_i32 = arith.constant 0 : i32
    %c0_i32_0 = arith.constant 0 : i32
    %c0_i32_1 = arith.constant 0 : i32
    return %arg0, %c0_i32, %c0_i32_0 : i32, i32, i32
  }
  func.func @transform_4(%arg0: i32) -> (i32, i32, i32) {
    %c0_i32 = arith.constant 0 : i32
    %c0_i32_0 = arith.constant 0 : i32
    %c0_i32_1 = arith.constant 0 : i32
    return %arg0, %c0_i32, %c0_i32_0 : i32, i32, i32
  }
}

module attributes {stable_mosaic.version = 11 : i64} {
  func.func @conv2_stats_kernel(%arg0: i32, %arg1: memref<1x18x18x128xbf16, #tpu.memory_space<vmem>>, %arg2: memref<9x128x128xbf16, #tpu.memory_space<vmem>>, %arg3: memref<256x128xbf16, #tpu.memory_space<vmem>>, %arg4: memref<1x8x128xf32, #tpu.memory_space<vmem>>, %arg5: memref<1x8x128xf32, #tpu.memory_space<vmem>>, %arg6: memref<256x128xf32, #tpu.memory_space<vmem>>) attributes {dimension_semantics = [#tpu.dimension_semantics<parallel>], iteration_bounds = array<i64: 2>, scalar_prefetch = 0 : i64, scratch_operands = 1 : i64, tpu.core_type = #tpu.core_type<tc>, window_params = [{transform_indices = @transform_0, window_bounds = array<i64: 1, 18, 18, 128>}, {pipeline_mode = #tpu.pipeline_mode<synchronous>, transform_indices = @transform_1, window_bounds = array<i64: 9, 128, 128>}, {transform_indices = @transform_2, window_bounds = array<i64: 256, 128>}, {transform_indices = @transform_3, window_bounds = array<i64: 1, 8, 128>}, {transform_indices = @transform_4, window_bounds = array<i64: 1, 8, 128>}]} {
    %cst = arith.constant 0.000000e+00 : f32
    %0 = vector.broadcast %cst : f32 to vector<256x128xf32>
    %c0 = arith.constant 0 : index
    %c0_0 = arith.constant 0 : index
    %1 = vector.load %arg6[%c0, %c0_0] : memref<256x128xf32, #tpu.memory_space<vmem>>, vector<256x128xf32>
    tpu.vector_store %arg6[%c0, %c0_0], %0 {strides = array<i32>} : memref<256x128xf32, #tpu.memory_space<vmem>>, vector<256x128xf32>,
    %c0_1 = arith.constant 0 : index
    %c0_2 = arith.constant 0 : index
    %c0_3 = arith.constant 0 : index
    %c0_4 = arith.constant 0 : index
    %2 = vector.load %arg1[%c0_1, %c0_2, %c0_3, %c0_4] : memref<1x18x18x128xbf16, #tpu.memory_space<vmem>>, vector<1x16x16x128xbf16>
    %3 = vector.shape_cast %2 : vector<1x16x16x128xbf16> to vector<16x16x128xbf16>
    %4 = vector.shape_cast %3 : vector<16x16x128xbf16> to vector<256x128xbf16>
    %c0_5 = arith.constant 0 : index
    %c0_6 = arith.constant 0 : index
    %5 = vector.load %arg6[%c0_5, %c0_6] : memref<256x128xf32, #tpu.memory_space<vmem>>, vector<256x128xf32>
    %c0_7 = arith.constant 0 : index
    %c0_8 = arith.constant 0 : index
    %c0_9 = arith.constant 0 : index
    %6 = vector.load %arg2[%c0_7, %c0_8, %c0_9] : memref<9x128x128xbf16, #tpu.memory_space<vmem>>, vector<1x128x128xbf16>
    %7 = vector.shape_cast %6 : vector<1x128x128xbf16> to vector<128x128xbf16>
    %cst_10 = arith.constant dense<0.000000e+00> : vector<256x128xf32>
    %8 = tpu.matmul %4, %7, %cst_10 {dimension_numbers = #tpu.dot_dimension_numbers<[1], [0], [0], [1], [0, 0, 1, 1], [], []>} : vector<256x128xbf16>, vector<128x128xbf16>, vector<256x128xf32> -> vector<256x128xf32>
    %9 = arith.addf %5, %8 : vector<256x128xf32>
    %c0_11 = arith.constant 0 : index
    %c0_12 = arith.constant 0 : index
    %10 = vector.load %arg6[%c0_11, %c0_12] : memref<256x128xf32, #tpu.memory_space<vmem>>, vector<256x128xf32>
    tpu.vector_store %arg6[%c0_11, %c0_12], %9 {strides = array<i32>} : memref<256x128xf32, #tpu.memory_space<vmem>>, vector<256x128xf32>,
    %c0_13 = arith.constant 0 : index
    %c0_14 = arith.constant 0 : index
    %c1 = arith.constant 1 : index
    %c0_15 = arith.constant 0 : index
    %11 = vector.load %arg1[%c0_13, %c0_14, %c1, %c0_15] : memref<1x18x18x128xbf16, #tpu.memory_space<vmem>>, vector<1x16x16x128xbf16>
    %12 = vector.shape_cast %11 : vector<1x16x16x128xbf16> to vector<16x16x128xbf16>
    %13 = vector.shape_cast %12 : vector<16x16x128xbf16> to vector<256x128xbf16>
    %c0_16 = arith.constant 0 : index
    %c0_17 = arith.constant 0 : index
    %14 = vector.load %arg6[%c0_16, %c0_17] : memref<256x128xf32, #tpu.memory_space<vmem>>, vector<256x128xf32>
    %c1_18 = arith.constant 1 : index
    %c0_19 = arith.constant 0 : index
    %c0_20 = arith.constant 0 : index
    %15 = vector.load %arg2[%c1_18, %c0_19, %c0_20] : memref<9x128x128xbf16, #tpu.memory_space<vmem>>, vector<1x128x128xbf16>
    %16 = vector.shape_cast %15 : vector<1x128x128xbf16> to vector<128x128xbf16>
    %cst_21 = arith.constant dense<0.000000e+00> : vector<256x128xf32>
    %17 = tpu.matmul %13, %16, %cst_21 {dimension_numbers = #tpu.dot_dimension_numbers<[1], [0], [0], [1], [0, 0, 1, 1], [], []>} : vector<256x128xbf16>, vector<128x128xbf16>, vector<256x128xf32> -> vector<256x128xf32>
    %18 = arith.addf %14, %17 : vector<256x128xf32>
    %c0_22 = arith.constant 0 : index
    %c0_23 = arith.constant 0 : index
    %19 = vector.load %arg6[%c0_22, %c0_23] : memref<256x128xf32, #tpu.memory_space<vmem>>, vector<256x128xf32>
    tpu.vector_store %arg6[%c0_22, %c0_23], %18 {strides = array<i32>} : memref<256x128xf32, #tpu.memory_space<vmem>>, vector<256x128xf32>,
    %c0_24 = arith.constant 0 : index
    %c0_25 = arith.constant 0 : index
    %c2 = arith.constant 2 : index
    %c0_26 = arith.constant 0 : index
    %20 = vector.load %arg1[%c0_24, %c0_25, %c2, %c0_26] : memref<1x18x18x128xbf16, #tpu.memory_space<vmem>>, vector<1x16x16x128xbf16>
    %21 = vector.shape_cast %20 : vector<1x16x16x128xbf16> to vector<16x16x128xbf16>
    %22 = vector.shape_cast %21 : vector<16x16x128xbf16> to vector<256x128xbf16>
    %c0_27 = arith.constant 0 : index
    %c0_28 = arith.constant 0 : index
    %23 = vector.load %arg6[%c0_27, %c0_28] : memref<256x128xf32, #tpu.memory_space<vmem>>, vector<256x128xf32>
    %c2_29 = arith.constant 2 : index
    %c0_30 = arith.constant 0 : index
    %c0_31 = arith.constant 0 : index
    %24 = vector.load %arg2[%c2_29, %c0_30, %c0_31] : memref<9x128x128xbf16, #tpu.memory_space<vmem>>, vector<1x128x128xbf16>
    %25 = vector.shape_cast %24 : vector<1x128x128xbf16> to vector<128x128xbf16>
    %cst_32 = arith.constant dense<0.000000e+00> : vector<256x128xf32>
    %26 = tpu.matmul %22, %25, %cst_32 {dimension_numbers = #tpu.dot_dimension_numbers<[1], [0], [0], [1], [0, 0, 1, 1], [], []>} : vector<256x128xbf16>, vector<128x128xbf16>, vector<256x128xf32> -> vector<256x128xf32>
    %27 = arith.addf %23, %26 : vector<256x128xf32>
    %c0_33 = arith.constant 0 : index
    %c0_34 = arith.constant 0 : index
    %28 = vector.load %arg6[%c0_33, %c0_34] : memref<256x128xf32, #tpu.memory_space<vmem>>, vector<256x128xf32>
    tpu.vector_store %arg6[%c0_33, %c0_34], %27 {strides = array<i32>} : memref<256x128xf32, #tpu.memory_space<vmem>>, vector<256x128xf32>,
    %c0_35 = arith.constant 0 : index
    %c1_36 = arith.constant 1 : index
    %c0_37 = arith.constant 0 : index
    %c0_38 = arith.constant 0 : index
    %29 = vector.load %arg1[%c0_35, %c1_36, %c0_37, %c0_38] : memref<1x18x18x128xbf16, #tpu.memory_space<vmem>>, vector<1x16x16x128xbf16>
    %30 = vector.shape_cast %29 : vector<1x16x16x128xbf16> to vector<16x16x128xbf16>
    %31 = vector.shape_cast %30 : vector<16x16x128xbf16> to vector<256x128xbf16>
    %c0_39 = arith.constant 0 : index
    %c0_40 = arith.constant 0 : index
    %32 = vector.load %arg6[%c0_39, %c0_40] : memref<256x128xf32, #tpu.memory_space<vmem>>, vector<256x128xf32>
    %c3 = arith.constant 3 : index
    %c0_41 = arith.constant 0 : index
    %c0_42 = arith.constant 0 : index
    %33 = vector.load %arg2[%c3, %c0_41, %c0_42] : memref<9x128x128xbf16, #tpu.memory_space<vmem>>, vector<1x128x128xbf16>
    %34 = vector.shape_cast %33 : vector<1x128x128xbf16> to vector<128x128xbf16>
    %cst_43 = arith.constant dense<0.000000e+00> : vector<256x128xf32>
    %35 = tpu.matmul %31, %34, %cst_43 {dimension_numbers = #tpu.dot_dimension_numbers<[1], [0], [0], [1], [0, 0, 1, 1], [], []>} : vector<256x128xbf16>, vector<128x128xbf16>, vector<256x128xf32> -> vector<256x128xf32>
    %36 = arith.addf %32, %35 : vector<256x128xf32>
    %c0_44 = arith.constant 0 : index
    %c0_45 = arith.constant 0 : index
    %37 = vector.load %arg6[%c0_44, %c0_45] : memref<256x128xf32, #tpu.memory_space<vmem>>, vector<256x128xf32>
    tpu.vector_store %arg6[%c0_44, %c0_45], %36 {strides = array<i32>} : memref<256x128xf32, #tpu.memory_space<vmem>>, vector<256x128xf32>,
    %c0_46 = arith.constant 0 : index
    %c1_47 = arith.constant 1 : index
    %c1_48 = arith.constant 1 : index
    %c0_49 = arith.constant 0 : index
    %38 = vector.load %arg1[%c0_46, %c1_47, %c1_48, %c0_49] : memref<1x18x18x128xbf16, #tpu.memory_space<vmem>>, vector<1x16x16x128xbf16>
    %39 = vector.shape_cast %38 : vector<1x16x16x128xbf16> to vector<16x16x128xbf16>
    %40 = vector.shape_cast %39 : vector<16x16x128xbf16> to vector<256x128xbf16>
    %c0_50 = arith.constant 0 : index
    %c0_51 = arith.constant 0 : index
    %41 = vector.load %arg6[%c0_50, %c0_51] : memref<256x128xf32, #tpu.memory_space<vmem>>, vector<256x128xf32>
    %c4 = arith.constant 4 : index
    %c0_52 = arith.constant 0 : index
    %c0_53 = arith.constant 0 : index
    %42 = vector.load %arg2[%c4, %c0_52, %c0_53] : memref<9x128x128xbf16, #tpu.memory_space<vmem>>, vector<1x128x128xbf16>
    %43 = vector.shape_cast %42 : vector<1x128x128xbf16> to vector<128x128xbf16>
    %cst_54 = arith.constant dense<0.000000e+00> : vector<256x128xf32>
    %44 = tpu.matmul %40, %43, %cst_54 {dimension_numbers = #tpu.dot_dimension_numbers<[1], [0], [0], [1], [0, 0, 1, 1], [], []>} : vector<256x128xbf16>, vector<128x128xbf16>, vector<256x128xf32> -> vector<256x128xf32>
    %45 = arith.addf %41, %44 : vector<256x128xf32>
    %c0_55 = arith.constant 0 : index
    %c0_56 = arith.constant 0 : index
    %46 = vector.load %arg6[%c0_55, %c0_56] : memref<256x128xf32, #tpu.memory_space<vmem>>, vector<256x128xf32>
    tpu.vector_store %arg6[%c0_55, %c0_56], %45 {strides = array<i32>} : memref<256x128xf32, #tpu.memory_space<vmem>>, vector<256x128xf32>,
    %c0_57 = arith.constant 0 : index
    %c1_58 = arith.constant 1 : index
    %c2_59 = arith.constant 2 : index
    %c0_60 = arith.constant 0 : index
    %47 = vector.load %arg1[%c0_57, %c1_58, %c2_59, %c0_60] : memref<1x18x18x128xbf16, #tpu.memory_space<vmem>>, vector<1x16x16x128xbf16>
    %48 = vector.shape_cast %47 : vector<1x16x16x128xbf16> to vector<16x16x128xbf16>
    %49 = vector.shape_cast %48 : vector<16x16x128xbf16> to vector<256x128xbf16>
    %c0_61 = arith.constant 0 : index
    %c0_62 = arith.constant 0 : index
    %50 = vector.load %arg6[%c0_61, %c0_62] : memref<256x128xf32, #tpu.memory_space<vmem>>, vector<256x128xf32>
    %c5 = arith.constant 5 : index
    %c0_63 = arith.constant 0 : index
    %c0_64 = arith.constant 0 : index
    %51 = vector.load %arg2[%c5, %c0_63, %c0_64] : memref<9x128x128xbf16, #tpu.memory_space<vmem>>, vector<1x128x128xbf16>
    %52 = vector.shape_cast %51 : vector<1x128x128xbf16> to vector<128x128xbf16>
    %cst_65 = arith.constant dense<0.000000e+00> : vector<256x128xf32>
    %53 = tpu.matmul %49, %52, %cst_65 {dimension_numbers = #tpu.dot_dimension_numbers<[1], [0], [0], [1], [0, 0, 1, 1], [], []>} : vector<256x128xbf16>, vector<128x128xbf16>, vector<256x128xf32> -> vector<256x128xf32>
    %54 = arith.addf %50, %53 : vector<256x128xf32>
    %c0_66 = arith.constant 0 : index
    %c0_67 = arith.constant 0 : index
    %55 = vector.load %arg6[%c0_66, %c0_67] : memref<256x128xf32, #tpu.memory_space<vmem>>, vector<256x128xf32>
    tpu.vector_store %arg6[%c0_66, %c0_67], %54 {strides = array<i32>} : memref<256x128xf32, #tpu.memory_space<vmem>>, vector<256x128xf32>,
    %c0_68 = arith.constant 0 : index
    %c2_69 = arith.constant 2 : index
    %c0_70 = arith.constant 0 : index
    %c0_71 = arith.constant 0 : index
    %56 = vector.load %arg1[%c0_68, %c2_69, %c0_70, %c0_71] : memref<1x18x18x128xbf16, #tpu.memory_space<vmem>>, vector<1x16x16x128xbf16>
    %57 = vector.shape_cast %56 : vector<1x16x16x128xbf16> to vector<16x16x128xbf16>
    %58 = vector.shape_cast %57 : vector<16x16x128xbf16> to vector<256x128xbf16>
    %c0_72 = arith.constant 0 : index
    %c0_73 = arith.constant 0 : index
    %59 = vector.load %arg6[%c0_72, %c0_73] : memref<256x128xf32, #tpu.memory_space<vmem>>, vector<256x128xf32>
    %c6 = arith.constant 6 : index
    %c0_74 = arith.constant 0 : index
    %c0_75 = arith.constant 0 : index
    %60 = vector.load %arg2[%c6, %c0_74, %c0_75] : memref<9x128x128xbf16, #tpu.memory_space<vmem>>, vector<1x128x128xbf16>
    %61 = vector.shape_cast %60 : vector<1x128x128xbf16> to vector<128x128xbf16>
    %cst_76 = arith.constant dense<0.000000e+00> : vector<256x128xf32>
    %62 = tpu.matmul %58, %61, %cst_76 {dimension_numbers = #tpu.dot_dimension_numbers<[1], [0], [0], [1], [0, 0, 1, 1], [], []>} : vector<256x128xbf16>, vector<128x128xbf16>, vector<256x128xf32> -> vector<256x128xf32>
    %63 = arith.addf %59, %62 : vector<256x128xf32>
    %c0_77 = arith.constant 0 : index
    %c0_78 = arith.constant 0 : index
    %64 = vector.load %arg6[%c0_77, %c0_78] : memref<256x128xf32, #tpu.memory_space<vmem>>, vector<256x128xf32>
    tpu.vector_store %arg6[%c0_77, %c0_78], %63 {strides = array<i32>} : memref<256x128xf32, #tpu.memory_space<vmem>>, vector<256x128xf32>,
    %c0_79 = arith.constant 0 : index
    %c2_80 = arith.constant 2 : index
    %c1_81 = arith.constant 1 : index
    %c0_82 = arith.constant 0 : index
    %65 = vector.load %arg1[%c0_79, %c2_80, %c1_81, %c0_82] : memref<1x18x18x128xbf16, #tpu.memory_space<vmem>>, vector<1x16x16x128xbf16>
    %66 = vector.shape_cast %65 : vector<1x16x16x128xbf16> to vector<16x16x128xbf16>
    %67 = vector.shape_cast %66 : vector<16x16x128xbf16> to vector<256x128xbf16>
    %c0_83 = arith.constant 0 : index
    %c0_84 = arith.constant 0 : index
    %68 = vector.load %arg6[%c0_83, %c0_84] : memref<256x128xf32, #tpu.memory_space<vmem>>, vector<256x128xf32>
    %c7 = arith.constant 7 : index
    %c0_85 = arith.constant 0 : index
    %c0_86 = arith.constant 0 : index
    %69 = vector.load %arg2[%c7, %c0_85, %c0_86] : memref<9x128x128xbf16, #tpu.memory_space<vmem>>, vector<1x128x128xbf16>
    %70 = vector.shape_cast %69 : vector<1x128x128xbf16> to vector<128x128xbf16>
    %cst_87 = arith.constant dense<0.000000e+00> : vector<256x128xf32>
    %71 = tpu.matmul %67, %70, %cst_87 {dimension_numbers = #tpu.dot_dimension_numbers<[1], [0], [0], [1], [0, 0, 1, 1], [], []>} : vector<256x128xbf16>, vector<128x128xbf16>, vector<256x128xf32> -> vector<256x128xf32>
    %72 = arith.addf %68, %71 : vector<256x128xf32>
    %c0_88 = arith.constant 0 : index
    %c0_89 = arith.constant 0 : index
    %73 = vector.load %arg6[%c0_88, %c0_89] : memref<256x128xf32, #tpu.memory_space<vmem>>, vector<256x128xf32>
    tpu.vector_store %arg6[%c0_88, %c0_89], %72 {strides = array<i32>} : memref<256x128xf32, #tpu.memory_space<vmem>>, vector<256x128xf32>,
    %c0_90 = arith.constant 0 : index
    %c2_91 = arith.constant 2 : index
    %c2_92 = arith.constant 2 : index
    %c0_93 = arith.constant 0 : index
    %74 = vector.load %arg1[%c0_90, %c2_91, %c2_92, %c0_93] : memref<1x18x18x128xbf16, #tpu.memory_space<vmem>>, vector<1x16x16x128xbf16>
    %75 = vector.shape_cast %74 : vector<1x16x16x128xbf16> to vector<16x16x128xbf16>
    %76 = vector.shape_cast %75 : vector<16x16x128xbf16> to vector<256x128xbf16>
    %c0_94 = arith.constant 0 : index
    %c0_95 = arith.constant 0 : index
    %77 = vector.load %arg6[%c0_94, %c0_95] : memref<256x128xf32, #tpu.memory_space<vmem>>, vector<256x128xf32>
    %c8 = arith.constant 8 : index
    %c0_96 = arith.constant 0 : index
    %c0_97 = arith.constant 0 : index
    %78 = vector.load %arg2[%c8, %c0_96, %c0_97] : memref<9x128x128xbf16, #tpu.memory_space<vmem>>, vector<1x128x128xbf16>
    %79 = vector.shape_cast %78 : vector<1x128x128xbf16> to vector<128x128xbf16>
    %cst_98 = arith.constant dense<0.000000e+00> : vector<256x128xf32>
    %80 = tpu.matmul %76, %79, %cst_98 {dimension_numbers = #tpu.dot_dimension_numbers<[1], [0], [0], [1], [0, 0, 1, 1], [], []>} : vector<256x128xbf16>, vector<128x128xbf16>, vector<256x128xf32> -> vector<256x128xf32>
    %81 = arith.addf %77, %80 : vector<256x128xf32>
    %c0_99 = arith.constant 0 : index
    %c0_100 = arith.constant 0 : index
    %82 = vector.load %arg6[%c0_99, %c0_100] : memref<256x128xf32, #tpu.memory_space<vmem>>, vector<256x128xf32>
    tpu.vector_store %arg6[%c0_99, %c0_100], %81 {strides = array<i32>} : memref<256x128xf32, #tpu.memory_space<vmem>>, vector<256x128xf32>,
    %c0_101 = arith.constant 0 : index
    %c0_102 = arith.constant 0 : index
    %83 = vector.load %arg6[%c0_101, %c0_102] : memref<256x128xf32, #tpu.memory_space<vmem>>, vector<256x128xf32>
    %84 = arith.truncf %83 : vector<256x128xf32> to vector<256x128xbf16>
    %c0_103 = arith.constant 0 : index
    %c0_104 = arith.constant 0 : index
    %85 = vector.load %arg3[%c0_103, %c0_104] : memref<256x128xbf16, #tpu.memory_space<vmem>>, vector<256x128xbf16>
    tpu.vector_store %arg3[%c0_103, %c0_104], %84 {strides = array<i32>} : memref<256x128xbf16, #tpu.memory_space<vmem>>, vector<256x128xbf16>,
    %86 = vector.shape_cast %83 : vector<256x128xf32> to vector<32x8x128xf32>
    %cst_105 = arith.constant dense<0.000000e+00> : vector<8x128xf32>
    %87 = vector.multi_reduction <add>, %86, %cst_105 [0] : vector<32x8x128xf32> to vector<8x128xf32>
    %88 = vector.shape_cast %87 : vector<8x128xf32> to vector<1x8x128xf32>
    %c0_106 = arith.constant 0 : index
    %c0_107 = arith.constant 0 : index
    %c0_108 = arith.constant 0 : index
    %89 = vector.load %arg4[%c0_106, %c0_107, %c0_108] : memref<1x8x128xf32, #tpu.memory_space<vmem>>, vector<1x8x128xf32>
    tpu.vector_store %arg4[%c0_106, %c0_107, %c0_108], %88 {strides = array<i32>} : memref<1x8x128xf32, #tpu.memory_space<vmem>>, vector<1x8x128xf32>,
    %90 = arith.mulf %83, %83 : vector<256x128xf32>
    %91 = vector.shape_cast %90 : vector<256x128xf32> to vector<32x8x128xf32>
    %cst_109 = arith.constant dense<0.000000e+00> : vector<8x128xf32>
    %92 = vector.multi_reduction <add>, %91, %cst_109 [0] : vector<32x8x128xf32> to vector<8x128xf32>
    %93 = vector.shape_cast %92 : vector<8x128xf32> to vector<1x8x128xf32>
    %c0_110 = arith.constant 0 : index
    %c0_111 = arith.constant 0 : index
    %c0_112 = arith.constant 0 : index
    %94 = vector.load %arg5[%c0_110, %c0_111, %c0_112] : memref<1x8x128xf32, #tpu.memory_space<vmem>>, vector<1x8x128xf32>
    tpu.vector_store %arg5[%c0_110, %c0_111, %c0_112], %93 {strides = array<i32>} : memref<1x8x128xf32, #tpu.memory_space<vmem>>, vector<1x8x128xf32>,
    return
  }
  func.func @transform_0(%arg0: i32) -> (i32, i32, i32, i32) {
    %c0_i32 = arith.constant 0 : i32
    %c0_i32_0 = arith.constant 0 : i32
    %c0_i32_1 = arith.constant 0 : i32
    %c0_i32_2 = arith.constant 0 : i32
    return %arg0, %c0_i32, %c0_i32_0, %c0_i32_1 : i32, i32, i32, i32
  }
  func.func @transform_1(%arg0: i32) -> (i32, i32, i32) {
    %c0_i32 = arith.constant 0 : i32
    %c0_i32_0 = arith.constant 0 : i32
    %c0_i32_1 = arith.constant 0 : i32
    %c0_i32_2 = arith.constant 0 : i32
    return %c0_i32, %c0_i32_0, %c0_i32_1 : i32, i32, i32
  }
  func.func @transform_2(%arg0: i32) -> (i32, i32) {
    %c0_i32 = arith.constant 0 : i32
    %c0_i32_0 = arith.constant 0 : i32
    return %arg0, %c0_i32 : i32, i32
  }
  func.func @transform_3(%arg0: i32) -> (i32, i32, i32) {
    %c0_i32 = arith.constant 0 : i32
    %c0_i32_0 = arith.constant 0 : i32
    %c0_i32_1 = arith.constant 0 : i32
    return %arg0, %c0_i32, %c0_i32_0 : i32, i32, i32
  }
  func.func @transform_4(%arg0: i32) -> (i32, i32, i32) {
    %c0_i32 = arith.constant 0 : i32
    %c0_i32_0 = arith.constant 0 : i32
    %c0_i32_1 = arith.constant 0 : i32
    return %arg0, %c0_i32, %c0_i32_0 : i32, i32, i32
  }
}

module attributes {stable_mosaic.version = 11 : i64} {
  func.func @conv3_stats_kernel(%arg0: i32, %arg1: memref<256x128xbf16, #tpu.memory_space<vmem>>, %arg2: memref<1x128xf32, #tpu.memory_space<vmem>>, %arg3: memref<1x128xf32, #tpu.memory_space<vmem>>, %arg4: memref<128x128xbf16, #tpu.memory_space<vmem>>, %arg5: memref<256x128xbf16, #tpu.memory_space<vmem>>, %arg6: memref<1x8x128xf32, #tpu.memory_space<vmem>>, %arg7: memref<1x8x128xf32, #tpu.memory_space<vmem>>) attributes {dimension_semantics = [#tpu.dimension_semantics<parallel>], iteration_bounds = array<i64: 2>, scalar_prefetch = 0 : i64, scratch_operands = 0 : i64, tpu.core_type = #tpu.core_type<tc>, window_params = [{transform_indices = @transform_0, window_bounds = array<i64: 256, 128>}, {pipeline_mode = #tpu.pipeline_mode<synchronous>, transform_indices = @transform_1, window_bounds = array<i64: 1, 128>}, {pipeline_mode = #tpu.pipeline_mode<synchronous>, transform_indices = @transform_2, window_bounds = array<i64: 1, 128>}, {pipeline_mode = #tpu.pipeline_mode<synchronous>, transform_indices = @transform_3, window_bounds = array<i64: 128, 128>}, {transform_indices = @transform_4, window_bounds = array<i64: 256, 128>}, {transform_indices = @transform_5, window_bounds = array<i64: 1, 8, 128>}, {transform_indices = @transform_6, window_bounds = array<i64: 1, 8, 128>}]} {
    %c0 = arith.constant 0 : index
    %c0_0 = arith.constant 0 : index
    %0 = vector.load %arg1[%c0, %c0_0] : memref<256x128xbf16, #tpu.memory_space<vmem>>, vector<256x128xbf16>
    %1 = arith.extf %0 : vector<256x128xbf16> to vector<256x128xf32>
    %c0_1 = arith.constant 0 : index
    %c0_2 = arith.constant 0 : index
    %2 = vector.load %arg2[%c0_1, %c0_2] : memref<1x128xf32, #tpu.memory_space<vmem>>, vector<1x128xf32>
    %3 = vector.broadcast %2 : vector<1x128xf32> to vector<256x128xf32>
    %4 = arith.mulf %1, %3 : vector<256x128xf32>
    %c0_3 = arith.constant 0 : index
    %c0_4 = arith.constant 0 : index
    %5 = vector.load %arg3[%c0_3, %c0_4] : memref<1x128xf32, #tpu.memory_space<vmem>>, vector<1x128xf32>
    %6 = vector.broadcast %5 : vector<1x128xf32> to vector<256x128xf32>
    %7 = arith.addf %4, %6 : vector<256x128xf32>
    %cst = arith.constant 0.000000e+00 : f32
    %8 = vector.broadcast %cst : f32 to vector<256x128xf32>
    %9 = arith.maximumf %7, %8 : vector<256x128xf32>
    %10 = arith.truncf %9 : vector<256x128xf32> to vector<256x128xbf16>
    %c0_5 = arith.constant 0 : index
    %c0_6 = arith.constant 0 : index
    %11 = vector.load %arg4[%c0_5, %c0_6] : memref<128x128xbf16, #tpu.memory_space<vmem>>, vector<128x128xbf16>
    %cst_7 = arith.constant dense<0.000000e+00> : vector<256x128xf32>
    %12 = tpu.matmul %10, %11, %cst_7 {dimension_numbers = #tpu.dot_dimension_numbers<[1], [0], [0], [1], [0, 0, 1, 1], [], []>} : vector<256x128xbf16>, vector<128x128xbf16>, vector<256x128xf32> -> vector<256x128xf32>
    %13 = arith.truncf %12 : vector<256x128xf32> to vector<256x128xbf16>
    %c0_8 = arith.constant 0 : index
    %c0_9 = arith.constant 0 : index
    %14 = vector.load %arg5[%c0_8, %c0_9] : memref<256x128xbf16, #tpu.memory_space<vmem>>, vector<256x128xbf16>
    tpu.vector_store %arg5[%c0_8, %c0_9], %13 {strides = array<i32>} : memref<256x128xbf16, #tpu.memory_space<vmem>>, vector<256x128xbf16>,
    %15 = vector.shape_cast %12 : vector<256x128xf32> to vector<32x8x128xf32>
    %cst_10 = arith.constant dense<0.000000e+00> : vector<8x128xf32>
    %16 = vector.multi_reduction <add>, %15, %cst_10 [0] : vector<32x8x128xf32> to vector<8x128xf32>
    %17 = vector.shape_cast %16 : vector<8x128xf32> to vector<1x8x128xf32>
    %c0_11 = arith.constant 0 : index
    %c0_12 = arith.constant 0 : index
    %c0_13 = arith.constant 0 : index
    %18 = vector.load %arg6[%c0_11, %c0_12, %c0_13] : memref<1x8x128xf32, #tpu.memory_space<vmem>>, vector<1x8x128xf32>
    tpu.vector_store %arg6[%c0_11, %c0_12, %c0_13], %17 {strides = array<i32>} : memref<1x8x128xf32, #tpu.memory_space<vmem>>, vector<1x8x128xf32>,
    %19 = arith.mulf %12, %12 : vector<256x128xf32>
    %20 = vector.shape_cast %19 : vector<256x128xf32> to vector<32x8x128xf32>
    %cst_14 = arith.constant dense<0.000000e+00> : vector<8x128xf32>
    %21 = vector.multi_reduction <add>, %20, %cst_14 [0] : vector<32x8x128xf32> to vector<8x128xf32>
    %22 = vector.shape_cast %21 : vector<8x128xf32> to vector<1x8x128xf32>
    %c0_15 = arith.constant 0 : index
    %c0_16 = arith.constant 0 : index
    %c0_17 = arith.constant 0 : index
    %23 = vector.load %arg7[%c0_15, %c0_16, %c0_17] : memref<1x8x128xf32, #tpu.memory_space<vmem>>, vector<1x8x128xf32>
    tpu.vector_store %arg7[%c0_15, %c0_16, %c0_17], %22 {strides = array<i32>} : memref<1x8x128xf32, #tpu.memory_space<vmem>>, vector<1x8x128xf32>,
    return
  }
  func.func @transform_0(%arg0: i32) -> (i32, i32) {
    %c0_i32 = arith.constant 0 : i32
    %c0_i32_0 = arith.constant 0 : i32
    return %arg0, %c0_i32 : i32, i32
  }
  func.func @transform_1(%arg0: i32) -> (i32, i32) {
    %c0_i32 = arith.constant 0 : i32
    %c0_i32_0 = arith.constant 0 : i32
    %c0_i32_1 = arith.constant 0 : i32
    return %c0_i32, %c0_i32_0 : i32, i32
  }
  func.func @transform_2(%arg0: i32) -> (i32, i32) {
    %c0_i32 = arith.constant 0 : i32
    %c0_i32_0 = arith.constant 0 : i32
    %c0_i32_1 = arith.constant 0 : i32
    return %c0_i32, %c0_i32_0 : i32, i32
  }
  func.func @transform_3(%arg0: i32) -> (i32, i32) {
    %c0_i32 = arith.constant 0 : i32
    %c0_i32_0 = arith.constant 0 : i32
    %c0_i32_1 = arith.constant 0 : i32
    return %c0_i32, %c0_i32_0 : i32, i32
  }
  func.func @transform_4(%arg0: i32) -> (i32, i32) {
    %c0_i32 = arith.constant 0 : i32
    %c0_i32_0 = arith.constant 0 : i32
    return %arg0, %c0_i32 : i32, i32
  }
  func.func @transform_5(%arg0: i32) -> (i32, i32, i32) {
    %c0_i32 = arith.constant 0 : i32
    %c0_i32_0 = arith.constant 0 : i32
    %c0_i32_1 = arith.constant 0 : i32
    return %arg0, %c0_i32, %c0_i32_0 : i32, i32, i32
  }
  func.func @transform_6(%arg0: i32) -> (i32, i32, i32) {
    %c0_i32 = arith.constant 0 : i32
    %c0_i32_0 = arith.constant 0 : i32
    %c0_i32_1 = arith.constant 0 : i32
    return %arg0, %c0_i32, %c0_i32_0 : i32, i32, i32
  }
}

module attributes {stable_mosaic.version = 11 : i64} {
  func.func @bn3_residual_kernel(%arg0: i32, %arg1: memref<256x128xbf16, #tpu.memory_space<vmem>>, %arg2: memref<256x128xbf16, #tpu.memory_space<vmem>>, %arg3: memref<1x128xf32, #tpu.memory_space<vmem>>, %arg4: memref<1x128xf32, #tpu.memory_space<vmem>>, %arg5: memref<256x128xf32, #tpu.memory_space<vmem>>) attributes {dimension_semantics = [#tpu.dimension_semantics<parallel>], iteration_bounds = array<i64: 2>, scalar_prefetch = 0 : i64, scratch_operands = 0 : i64, tpu.core_type = #tpu.core_type<tc>, window_params = [{transform_indices = @transform_0, window_bounds = array<i64: 256, 128>}, {transform_indices = @transform_1, window_bounds = array<i64: 256, 128>}, {pipeline_mode = #tpu.pipeline_mode<synchronous>, transform_indices = @transform_2, window_bounds = array<i64: 1, 128>}, {pipeline_mode = #tpu.pipeline_mode<synchronous>, transform_indices = @transform_3, window_bounds = array<i64: 1, 128>}, {transform_indices = @transform_4, window_bounds = array<i64: 256, 128>}]} {
    %c0 = arith.constant 0 : index
    %c0_0 = arith.constant 0 : index
    %0 = vector.load %arg1[%c0, %c0_0] : memref<256x128xbf16, #tpu.memory_space<vmem>>, vector<256x128xbf16>
    %1 = arith.extf %0 : vector<256x128xbf16> to vector<256x128xf32>
    %c0_1 = arith.constant 0 : index
    %c0_2 = arith.constant 0 : index
    %2 = vector.load %arg3[%c0_1, %c0_2] : memref<1x128xf32, #tpu.memory_space<vmem>>, vector<1x128xf32>
    %3 = vector.broadcast %2 : vector<1x128xf32> to vector<256x128xf32>
    %4 = arith.mulf %1, %3 : vector<256x128xf32>
    %c0_3 = arith.constant 0 : index
    %c0_4 = arith.constant 0 : index
    %5 = vector.load %arg4[%c0_3, %c0_4] : memref<1x128xf32, #tpu.memory_space<vmem>>, vector<1x128xf32>
    %6 = vector.broadcast %5 : vector<1x128xf32> to vector<256x128xf32>
    %7 = arith.addf %4, %6 : vector<256x128xf32>
    %c0_5 = arith.constant 0 : index
    %c0_6 = arith.constant 0 : index
    %8 = vector.load %arg2[%c0_5, %c0_6] : memref<256x128xbf16, #tpu.memory_space<vmem>>, vector<256x128xbf16>
    %9 = arith.extf %8 : vector<256x128xbf16> to vector<256x128xf32>
    %10 = arith.addf %7, %9 : vector<256x128xf32>
    %cst = arith.constant 0.000000e+00 : f32
    %11 = vector.broadcast %cst : f32 to vector<256x128xf32>
    %12 = arith.maximumf %10, %11 : vector<256x128xf32>
    %c0_7 = arith.constant 0 : index
    %c0_8 = arith.constant 0 : index
    %13 = vector.load %arg5[%c0_7, %c0_8] : memref<256x128xf32, #tpu.memory_space<vmem>>, vector<256x128xf32>
    tpu.vector_store %arg5[%c0_7, %c0_8], %12 {strides = array<i32>} : memref<256x128xf32, #tpu.memory_space<vmem>>, vector<256x128xf32>,
    return
  }
  func.func @transform_0(%arg0: i32) -> (i32, i32) {
    %c0_i32 = arith.constant 0 : i32
    %c0_i32_0 = arith.constant 0 : i32
    return %arg0, %c0_i32 : i32, i32
  }
  func.func @transform_1(%arg0: i32) -> (i32, i32) {
    %c0_i32 = arith.constant 0 : i32
    %c0_i32_0 = arith.constant 0 : i32
    return %arg0, %c0_i32 : i32, i32
  }
  func.func @transform_2(%arg0: i32) -> (i32, i32) {
    %c0_i32 = arith.constant 0 : i32
    %c0_i32_0 = arith.constant 0 : i32
    %c0_i32_1 = arith.constant 0 : i32
    return %c0_i32, %c0_i32_0 : i32, i32
  }
  func.func @transform_3(%arg0: i32) -> (i32, i32) {
    %c0_i32 = arith.constant 0 : i32
    %c0_i32_0 = arith.constant 0 : i32
    %c0_i32_1 = arith.constant 0 : i32
    return %c0_i32, %c0_i32_0 : i32, i32
  }
  func.func @transform_4(%arg0: i32) -> (i32, i32) {
    %c0_i32 = arith.constant 0 : i32
    %c0_i32_0 = arith.constant 0 : i32
    return %arg0, %c0_i32 : i32, i32
  }
}

</mosaic_0001>

<bundles_post_ra>
// kernel: bottleneck_forward.7
= control target key start
LH: loop header
LB: loop body
LE: loop exit
PB: predicated region body
PF: predicated region fallthrough
CT: control target
= control target key end

     0   :  { %9 = vsyncpa [#allocation3], 0  ;;  %s1150_s0 = inlined_call_operand.vmem [shape: bf16[512,128], index: 0, kind: input, shape index: {}]   ;;  %s1151_s1 = inlined_call_operand.vmem [shape: bf16[512,128], index: 1, kind: input, shape index: {}]   ;;  %s1152_s2 = inlined_call_operand.vmem [shape: f32[1,128], index: 2, kind: input, shape index: {}]   ;;  %s1153_s3 = inlined_call_operand.vmem [shape: f32[1,128], index: 3, kind: input, shape index: {}]   ;;  %s1154_s4 = inlined_call_operand.hbm [shape: f32[512,128], index: 4, kind: output, shape index: {}]  }
   0x1   :  { %11 = vsyncpa [#allocation3 + $0x1], 0  ;;  %s914_s15 = smov 0   ;;  %s916_s16 = smov 0  }
   0x2   :  { %s918_s17 = smov 0   ;;  %s920_s18 = smov 0  }
   0x3 LB: > { %s935_s19 = sadd.s32 4294967295, %s885_s18   ;;  %s607_s20 = sadd.s32 4294967294, %s885_s18   ;;  %s885_s18 = sphi %s920_s18, %s1160_s18   ;;  %s881_s17 = sphi %s918_s17, %s1159_s17   ;;  %s877_s16 = sphi %s916_s16, %s1158_s16   ;;  %s873_s15 = sphi %s914_s15, %s1157_s15  }
   0x4   : > { %s939_s21 = sadd.s32 1, %s885_s18   ;;  %s118_s22 = sadd.s32 1, %s881_s17 }
   0x5   : > { %s115_s23 = ssub.s32 %s885_s18, %s939_s21  ;;  %p128_p0 = scmp.ne.s32.totalorder %s881_s17, %s877_s16 }
   0x6   : > { %p116_p1 = scmp.eq.s32.totalorder %s115_s23, 0  ;;  %p129_p2 = scmp.eq.s32.totalorder %s935_s19, 1 }
   0x7   : > { %p134_p3 = scmp.ne.s32.totalorder %s877_s16, %s873_s15  ;;  %p135_p4 = scmp.eq.s32.totalorder %s607_s20, 1 }
   0x8   : > { %s950_s24 = scalar_select %p116_p1, %s881_s17, %s118_s22  }
   0x9   : > { %p952_p5 = por %p129_p2, %p128_p0  ;;  %p956_p6 = por %p135_p4, %p134_p3 }
   0xa   : > { %p610_p7 = scmp.ge.s32.totalorder %s885_s18, 1  ;;  %p177_p8 = scmp.lt.s32.totalorder %s885_s18, 3 }
   0xc   : > { %p178_p9 = pnand %p610_p7, %p177_p8 }
   0xd   : > { %s612_s27 = sshll.u32 (!%p178_p9), %s935_s19, 5  ;;  %s205_s13 = sand.u32 (!%p178_p9), 1, %s877_s16  }
   0xe   : > { %181 = sbr.rel (%p178_p9) target bundleno = 80 (0x50), region = 36  ;;  %p209_p10 = scmp.lt.s32.totalorder (!%p178_p9), %s612_s27, 63 }
   0xf   : > { %s611_s14 = sshll.u32 (!%p178_p9), %s205_s13, 8  ;;  %s621_s22 = sshll.u32 (!%p178_p9), %s935_s19, 8 }
  0x10   : > { %s1012_s20 = scalar_lea.vmem (!%p178_p9), [#allocation2], %s611_s14  ;;  %s518_s30 = scalar_lea.sflag (!%p178_p9), [#allocation3], %s205_s13 }
  0x11   : > { %s843_s9 = scalar_lea.hbm (!%p178_p9), %s1154_s4, 512 }
  0x13   : > { %s1162_s27 = smov (!%p209_p10, %s612_s27), 63  ;;  %v976_v0 = vld [vmem:[%s1152_s2] ss:$0 sm:$0xff] }
  0x14   : > { %s613_s28 = sshll.u32 %s1162_s27, 2  ;;  %v981_v1 = vld [vmem:[%s1153_s3] ss:$0 sm:$0xff]  ;;  %s529_s27 = scalar_lea.hbm %s1154_s4, %s621_s22 }
  0x15   : > { %s966_s5 = scalar_lea.vmem %s1150_s0, %s613_s28  ;;  %s971_s8 = scalar_lea.vmem %s1151_s1, %s613_s28 }
  0x16   : > { %v623_v2 = vld [vmem:[%s966_s5] sm:$0xff]   ;;  %v750_v4 = vld [vmem:[%s966_s5 + $0x8] sm:$0xff]   ;;  %v751_v10 = vld [vmem:[%s966_s5 + $0x10] sm:$0xff]   ;;  %s530_s28 = sshll.u32 %s1012_s20, 4  ;;  %s532_s29 = sshll.u32 %s529_s27, 4  ;;  %s531_s28 = int_to_ptr.vmem [resolvable:$true] %s530_s28  ;;  %s533_s29 = int_to_ptr.hbm [resolvable:$true] %s532_s29 }
  0x17   : > { %v687_v3 = vld [vmem:[%s971_s8] sm:$0xff]   ;;  %v624_v5 = vunpack.c.l.bf16 %v623_v2  ;;  %v625_v7 = vunpack.c.h.bf16 %v623_v2  ;;  %v765_v9 = vld [vmem:[%s971_s8 + $0x8] sm:$0xff]   ;;  %v766_v11 = vld [vmem:[%s971_s8 + $0x10] sm:$0xff]   ;;  %v628_v12 = vunpack.c.l.bf16 %v750_v4  ;;  %v629_v14 = vunpack.c.h.bf16 %v750_v4 }
  0x18   : > { %v688_v6 = vunpack.c.l.bf16 %v687_v3  ;;  %v689_v8 = vunpack.c.h.bf16 %v687_v3  ;;  %v692_v13 = vunpack.c.l.bf16 %v765_v9  ;;  %v693_v15 = vunpack.c.h.bf16 %v765_v9  ;;  %v752_v16 = vld [vmem:[%s966_s5 + $0x18] sm:$0xff]   ;;  %v753_v42 = vld [vmem:[%s966_s5 + $0x20] sm:$0xff]   ;;  %v754_v52 = vld [vmem:[%s966_s5 + $0x28] sm:$0xff]  }
  0x19   : > { %v289_v17 = vmul.f32 %v976_v0, %v624_v5  ;;  %v290_v18 = vmul.f32 %v976_v0, %v625_v7  ;;  %v632_v19 = vunpack.c.l.bf16 %v751_v10  ;;  %v696_v20 = vunpack.c.l.bf16 %v766_v11  ;;  %v767_v21 = vld [vmem:[%s971_s8 + $0x18] sm:$0xff]   ;;  %v768_v47 = vld [vmem:[%s971_s8 + $0x20] sm:$0xff]   ;;  %v769_v57 = vld [vmem:[%s971_s8 + $0x28] sm:$0xff]  }
  0x1a   : > { %v291_v22 = vmul.f32 %v976_v0, %v628_v12  ;;  %v292_v23 = vmul.f32 %v976_v0, %v629_v14  ;;  %v633_v24 = vunpack.c.h.bf16 %v751_v10  ;;  %v697_v25 = vunpack.c.h.bf16 %v766_v11  ;;  %v755_v62 = vld [vmem:[%s966_s5 + $0x30] sm:$0xff]   ;;  %v756_v14 = vld [vmem:[%s966_s5 + $0x38] sm:$0xff]  }
  0x1b   : > { %v325_v26 = vadd.f32 %v981_v1, %v289_v17  ;;  %v326_v27 = vadd.f32 %v981_v1, %v290_v18  ;;  %v293_v28 = vmul.f32 %v976_v0, %v632_v19  ;;  %v636_v29 = vunpack.c.l.bf16 %v752_v16  ;;  %v770_v5 = vld [vmem:[%s971_s8 + $0x30] sm:$0xff]  }
  0x1c   : > { %v327_v30 = vadd.f32 %v981_v1, %v291_v22  ;;  %v328_v31 = vadd.f32 %v981_v1, %v292_v23  ;;  %v294_v32 = vmul.f32 %v976_v0, %v633_v24  ;;  %v700_v33 = vunpack.c.l.bf16 %v767_v21  ;;  %v771_v23 = vld [vmem:[%s971_s8 + $0x38] sm:$0xff]  }
  0x1d   : > { %v421_v34 = vadd.f32 %v688_v6, %v325_v26  ;;  %v422_v35 = vadd.f32 %v689_v8, %v326_v27  ;;  %v329_v36 = vadd.f32 %v981_v1, %v293_v28  ;;  %v295_v37 = vmul.f32 %v976_v0, %v636_v29 }
  0x1e   : > { %v423_v38 = vadd.f32 %v692_v13, %v327_v30  ;;  %v424_v39 = vadd.f32 %v693_v15, %v328_v31  ;;  %v330_v40 = vadd.f32 %v981_v1, %v294_v32  ;;  %v637_v41 = vunpack.c.h.bf16 %v752_v16  ;;  %v757_v32 = vld [vmem:[%s966_s5 + $0x40] sm:$0xff]  }
  0x1f   : > { %v453_v43 = vmax.f32 %v421_v34, 0.0  ;;  %v454_v44 = vmax.f32 %v422_v35, 0.0  ;;  %v425_v45 = vadd.f32 %v696_v20, %v329_v36  ;;  %v331_v46 = vadd.f32 %v981_v1, %v295_v37  ;;  %v772_v37 = vld [vmem:[%s971_s8 + $0x40] sm:$0xff]  }
  0x20   : > { %v455_v48 = vmax.f32 %v423_v38, 0.0  ;;  %v456_v49 = vmax.f32 %v424_v39, 0.0  ;;  %v426_v50 = vadd.f32 %v697_v25, %v330_v40  ;;  %v296_v51 = vmul.f32 %v976_v0, %v637_v41 }
  0x21   : > { %485 = vst [vmem:[%s1012_s20] sm:$0xff] %v453_v43  ;;  %v457_v53 = vmax.f32 %v425_v45, 0.0  ;;  %v427_v54 = vadd.f32 %v700_v33, %v331_v46  ;;  %v701_v55 = vunpack.c.h.bf16 %v767_v21  ;;  %v640_v56 = vunpack.c.l.bf16 %v753_v42  ;;  %v758_v46 = vld [vmem:[%s966_s5 + $0x48] sm:$0xff]  }
  0x22   : > { %486 = vst [vmem:[%s1012_s20 + $0x8] sm:$0xff] %v454_v44  ;;  %v458_v58 = vmax.f32 %v426_v50, 0.0  ;;  %v332_v59 = vadd.f32 %v981_v1, %v296_v51  ;;  %v704_v60 = vunpack.c.l.bf16 %v768_v47  ;;  %v641_v61 = vunpack.c.h.bf16 %v753_v42 }
  0x23   : > { %487 = vst [vmem:[%s1012_s20 + $0x10] sm:$0xff] %v455_v48  ;;  %v459_v63 = vmax.f32 %v427_v54, 0.0  ;;  %v297_v2 = vmul.f32 %v976_v0, %v640_v56  ;;  %v705_v3 = vunpack.c.h.bf16 %v768_v47  ;;  %v644_v4 = vunpack.c.l.bf16 %v754_v52  ;;  %v773_v47 = vld [vmem:[%s971_s8 + $0x48] sm:$0xff]   ;;  %v759_v56 = vld [vmem:[%s966_s5 + $0x50] sm:$0xff]  }
  0x24   : > { %488 = vst [vmem:[%s1012_s20 + $0x18] sm:$0xff] %v456_v49  ;;  %v428_v6 = vadd.f32 %v701_v55, %v332_v59  ;;  %v298_v7 = vmul.f32 %v976_v0, %v641_v61  ;;  %v708_v8 = vunpack.c.l.bf16 %v769_v57  ;;  %v645_v9 = vunpack.c.h.bf16 %v754_v52  ;;  %v774_v61 = vld [vmem:[%s971_s8 + $0x50] sm:$0xff]  }
  0x25   : > { %489 = vst [vmem:[%s1012_s20 + $0x20] sm:$0xff] %v457_v53  ;;  %v333_v10 = vadd.f32 %v981_v1, %v297_v2  ;;  %v299_v11 = vmul.f32 %v976_v0, %v644_v4  ;;  %v709_v12 = vunpack.c.h.bf16 %v769_v57  ;;  %v648_v13 = vunpack.c.l.bf16 %v755_v62 }
  0x26   : > { %490 = vst [vmem:[%s1012_s20 + $0x28] sm:$0xff] %v458_v58  ;;  %v460_v15 = vmax.f32 %v428_v6, 0.0  ;;  %v334_v16 = vadd.f32 %v981_v1, %v298_v7  ;;  %v300_v17 = vmul.f32 %v976_v0, %v645_v9  ;;  %v712_v18 = vunpack.c.l.bf16 %v770_v5 }
  0x27   : > { %491 = vst [vmem:[%s1012_s20 + $0x30] sm:$0xff] %v459_v63  ;;  %v429_v19 = vadd.f32 %v704_v60, %v333_v10  ;;  %v335_v20 = vadd.f32 %v981_v1, %v299_v11  ;;  %v301_v21 = vmul.f32 %v976_v0, %v648_v13  ;;  %v649_v22 = vunpack.c.h.bf16 %v755_v62 }
  0x28   : > { %492 = vst [vmem:[%s1012_s20 + $0x38] sm:$0xff] %v460_v15  ;;  %v430_v24 = vadd.f32 %v705_v3, %v334_v16  ;;  %v336_v25 = vadd.f32 %v981_v1, %v300_v17  ;;  %v713_v26 = vunpack.c.h.bf16 %v770_v5  ;;  %v652_v27 = vunpack.c.l.bf16 %v756_v14  ;;  %v775_v17 = vld [vmem:[%s971_s8 + $0x58] sm:$0xff]  }
  0x29   : > { %v461_v28 = vmax.f32 %v429_v19, 0.0  ;;  %v431_v29 = vadd.f32 %v708_v8, %v335_v20  ;;  %v337_v30 = vadd.f32 %v981_v1, %v301_v21  ;;  %v302_v31 = vmul.f32 %v976_v0, %v649_v22 }
  0x2a   : > { %v462_v33 = vmax.f32 %v430_v24, 0.0  ;;  %v432_v34 = vadd.f32 %v709_v12, %v336_v25  ;;  %v303_v35 = vmul.f32 %v976_v0, %v652_v27  ;;  %v716_v36 = vunpack.c.l.bf16 %v771_v23  ;;  %v760_v12 = vld [vmem:[%s966_s5 + $0x58] sm:$0xff]  }
  0x2b   : > { %493 = vst [vmem:[%s1012_s20 + $0x40] sm:$0xff] %v461_v28  ;;  %v463_v38 = vmax.f32 %v431_v29, 0.0  ;;  %v433_v39 = vadd.f32 %v712_v18, %v337_v30  ;;  %v338_v40 = vadd.f32 %v981_v1, %v302_v31  ;;  %v653_v41 = vunpack.c.h.bf16 %v756_v14  ;;  %v776_v31 = vld [vmem:[%s971_s8 + $0x60] sm:$0xff]  }
  0x2c   : > { %494 = vst [vmem:[%s1012_s20 + $0x48] sm:$0xff] %v462_v33  ;;  %v464_v42 = vmax.f32 %v432_v34, 0.0  ;;  %v339_v43 = vadd.f32 %v981_v1, %v303_v35  ;;  %v717_v44 = vunpack.c.h.bf16 %v771_v23  ;;  %v656_v45 = vunpack.c.l.bf16 %v757_v32 }
  0x2d   : > { %495 = vst [vmem:[%s1012_s20 + $0x50] sm:$0xff] %v463_v38  ;;  %v465_v48 = vmax.f32 %v433_v39, 0.0  ;;  %v434_v49 = vadd.f32 %v713_v26, %v338_v40  ;;  %v304_v50 = vmul.f32 %v976_v0, %v653_v41  ;;  %v720_v51 = vunpack.c.l.bf16 %v772_v37  ;;  %v761_v26 = vld [vmem:[%s966_s5 + $0x60] sm:$0xff]   ;;  %v762_v40 = vld [vmem:[%s966_s5 + $0x68] sm:$0xff]  }
  0x2e   : > { %496 = vst [vmem:[%s1012_s20 + $0x58] sm:$0xff] %v464_v42  ;;  %v435_v52 = vadd.f32 %v716_v36, %v339_v43  ;;  %v305_v53 = vmul.f32 %v976_v0, %v656_v45  ;;  %v657_v54 = vunpack.c.h.bf16 %v757_v32  ;;  %v721_v55 = vunpack.c.h.bf16 %v772_v37  ;;  %v777_v41 = vld [vmem:[%s971_s8 + $0x68] sm:$0xff]  }
  0x2f   : > { %497 = vst [vmem:[%s1012_s20 + $0x60] sm:$0xff] %v465_v48  ;;  %v466_v57 = vmax.f32 %v434_v49, 0.0  ;;  %v340_v58 = vadd.f32 %v981_v1, %v304_v50  ;;  %v660_v59 = vunpack.c.l.bf16 %v758_v46  ;;  %v724_v60 = vunpack.c.l.bf16 %v773_v47  ;;  %v763_v50 = vld [vmem:[%s966_s5 + $0x70] sm:$0xff]  }
  0x30   : > { %v467_v62 = vmax.f32 %v435_v52, 0.0  ;;  %v341_v63 = vadd.f32 %v981_v1, %v305_v53  ;;  %v306_v2 = vmul.f32 %v976_v0, %v657_v54  ;;  %v661_v3 = vunpack.c.h.bf16 %v758_v46 }
  0x31   : > { %498 = vst [vmem:[%s1012_s20 + $0x68] sm:$0xff] %v466_v57  ;;  %v436_v4 = vadd.f32 %v717_v44, %v340_v58  ;;  %v307_v5 = vmul.f32 %v976_v0, %v660_v59  ;;  %v725_v6 = vunpack.c.h.bf16 %v773_v47  ;;  %v664_v7 = vunpack.c.l.bf16 %v759_v56  ;;  %v778_v59 = vld [vmem:[%s971_s8 + $0x70] sm:$0xff]  }
  0x32   : > { %499 = vst [vmem:[%s1012_s20 + $0x70] sm:$0xff] %v467_v62  ;;  %v437_v8 = vadd.f32 %v720_v51, %v341_v63  ;;  %v342_v9 = vadd.f32 %v981_v1, %v306_v2  ;;  %v308_v10 = vmul.f32 %v976_v0, %v661_v3  ;;  %v728_v11 = vunpack.c.l.bf16 %v774_v61 }
  0x33   : > { %v468_v13 = vmax.f32 %v436_v4, 0.0  ;;  %v343_v14 = vadd.f32 %v981_v1, %v307_v5  ;;  %v309_v15 = vmul.f32 %v976_v0, %v664_v7  ;;  %v665_v16 = vunpack.c.h.bf16 %v759_v56 }
  0x34   : > { %v469_v18 = vmax.f32 %v437_v8, 0.0  ;;  %v438_v19 = vadd.f32 %v721_v55, %v342_v9  ;;  %v344_v20 = vadd.f32 %v981_v1, %v308_v10  ;;  %v729_v21 = vunpack.c.h.bf16 %v774_v61 }
  0x35   : > { %500 = vst [vmem:[%s1012_s20 + $0x78] sm:$0xff] %v468_v13  ;;  %v439_v22 = vadd.f32 %v724_v60, %v343_v14  ;;  %v345_v23 = vadd.f32 %v981_v1, %v309_v15  ;;  %v310_v24 = vmul.f32 %v976_v0, %v665_v16  ;;  %v668_v25 = vunpack.c.l.bf16 %v760_v12 }
  0x36   : > { %501 = vst [vmem:[%s1012_s20 + $0x80] sm:$0xff] %v469_v18  ;;  %v470_v27 = vmax.f32 %v438_v19, 0.0  ;;  %v440_v28 = vadd.f32 %v725_v6, %v344_v20  ;;  %v732_v29 = vunpack.c.l.bf16 %v775_v17  ;;  %v669_v30 = vunpack.c.h.bf16 %v760_v12  ;;  %v764_v6 = vld [vmem:[%s966_s5 + $0x78] sm:$0xff]   ;;  %s837_s5 = sshra.s32 %s533_s29, 4  ;;  %s838_s5 = int_to_ptr.hbm [resolvable:$true] %s837_s5 }
  0x37   : > { %v471_v32 = vmax.f32 %v439_v22, 0.0  ;;  %v441_v33 = vadd.f32 %v728_v11, %v345_v23  ;;  %v346_v34 = vadd.f32 %v981_v1, %v310_v24  ;;  %v311_v35 = vmul.f32 %v976_v0, %v668_v25  ;;  %v779_v11 = vld [vmem:[%s971_s8 + $0x78] sm:$0xff]   ;;  %s839_s6 = scalar_lea.hbm %s838_s5, 256  ;;  %p844_p0 = scmp.lt.s32.totalorder %s838_s5, %s1154_s4 }
  0x38   : > { %502 = vst [vmem:[%s1012_s20 + $0x88] sm:$0xff] %v470_v27  ;;  %v472_v36 = vmax.f32 %v440_v28, 0.0  ;;  %v312_v37 = vmul.f32 %v976_v0, %v669_v30  ;;  %v733_v38 = vunpack.c.h.bf16 %v775_v17  ;;  %v672_v39 = vunpack.c.l.bf16 %v761_v26  ;;  %p840_p11 = scmp.ne.s32.totalorder %s838_s5, %s839_s6  ;;  %p845_p1 = scmp.lt.s32.totalorder %s843_s9, %s839_s6 }
  0x39   : > { %503 = vst [vmem:[%s1012_s20 + $0x90] sm:$0xff] %v471_v32  ;;  %v473_v42 = vmax.f32 %v441_v33, 0.0  ;;  %v442_v43 = vadd.f32 %v729_v21, %v346_v34  ;;  %v347_v44 = vadd.f32 %v981_v1, %v311_v35  ;;  %v736_v45 = vunpack.c.l.bf16 %v776_v31 }
  0x3a   : > { %504 = vst [vmem:[%s1012_s20 + $0x98] sm:$0xff] %v472_v36  ;;  %v348_v46 = vadd.f32 %v981_v1, %v312_v37  ;;  %v313_v47 = vmul.f32 %v976_v0, %v672_v39  ;;  %v673_v48 = vunpack.c.h.bf16 %v761_v26  ;;  %v737_v49 = vunpack.c.h.bf16 %v776_v31  ;;  %p841_p12 = pnand %p840_p11, %p952_p5  ;;  %p846_p2 = por %p845_p1, %p844_p0 }
  0x3b   : > { %505 = vst [vmem:[%s1012_s20 + $0xa0] sm:$0xff] %v473_v42  ;;  %v474_v51 = vmax.f32 %v442_v43, 0.0  ;;  %v443_v52 = vadd.f32 %v732_v29, %v347_v44  ;;  %v676_v53 = vunpack.c.l.bf16 %v762_v40  ;;  %v740_v54 = vunpack.c.l.bf16 %v777_v41 }
  0x3c   : > { %v444_v55 = vadd.f32 %v733_v38, %v348_v46  ;;  %v349_v56 = vadd.f32 %v981_v1, %v313_v47  ;;  %v314_v57 = vmul.f32 %v976_v0, %v673_v48  ;;  %v677_v58 = vunpack.c.h.bf16 %v762_v40  ;;  %p842_p13 = pneg %p841_p12 }
  0x3d   : > { %506 = vst [vmem:[%s1012_s20 + $0xa8] sm:$0xff] %v474_v51  ;;  %v475_v60 = vmax.f32 %v443_v52, 0.0  ;;  %v315_v61 = vmul.f32 %v976_v0, %v676_v53  ;;  %v741_v62 = vunpack.c.h.bf16 %v777_v41  ;;  %v680_v63 = vunpack.c.l.bf16 %v763_v50 }
  0x3e   : > { %v476_v2 = vmax.f32 %v444_v55, 0.0  ;;  %v445_v3 = vadd.f32 %v736_v45, %v349_v56  ;;  %v350_v4 = vadd.f32 %v981_v1, %v314_v57  ;;  %v316_v5 = vmul.f32 %v976_v0, %v677_v58  ;;  %p847_p3 = pnand %p846_p2, %p842_p13 }
  0x3f   : > { %507 = vst [vmem:[%s1012_s20 + $0xb0] sm:$0xff] %v475_v60  ;;  %v351_v7 = vadd.f32 %v981_v1, %v315_v61  ;;  %v317_v8 = vmul.f32 %v976_v0, %v680_v63  ;;  %v744_v9 = vunpack.c.l.bf16 %v778_v59  ;;  %v681_v10 = vunpack.c.h.bf16 %v763_v50 }
  0x40   : > { %508 = vst [vmem:[%s1012_s20 + $0xb8] sm:$0xff] %v476_v2  ;;  %v477_v12 = vmax.f32 %v445_v3, 0.0  ;;  %v446_v13 = vadd.f32 %v737_v49, %v350_v4  ;;  %v352_v14 = vadd.f32 %v981_v1, %v316_v5  ;;  %v745_v15 = vunpack.c.h.bf16 %v778_v59 }
  0x41   : > { %v447_v16 = vadd.f32 %v740_v54, %v351_v7  ;;  %v353_v17 = vadd.f32 %v981_v1, %v317_v8  ;;  %v318_v18 = vmul.f32 %v976_v0, %v681_v10  ;;  %v684_v19 = vunpack.c.l.bf16 %v764_v6 }
  0x42   : > { %509 = vst [vmem:[%s1012_s20 + $0xc0] sm:$0xff] %v477_v12  ;;  %v478_v20 = vmax.f32 %v446_v13, 0.0  ;;  %v448_v21 = vadd.f32 %v741_v62, %v352_v14  ;;  %v748_v22 = vunpack.c.l.bf16 %v779_v11  ;;  %v685_v23 = vunpack.c.h.bf16 %v764_v6 }
  0x43   : > { %v479_v24 = vmax.f32 %v447_v16, 0.0  ;;  %v449_v25 = vadd.f32 %v744_v9, %v353_v17  ;;  %v354_v26 = vadd.f32 %v981_v1, %v318_v18  ;;  %v319_v27 = vmul.f32 %v976_v0, %v684_v19 }
  0x44   : > { %510 = vst [vmem:[%s1012_s20 + $0xc8] sm:$0xff] %v478_v20  ;;  %v480_v28 = vmax.f32 %v448_v21, 0.0  ;;  %v320_v29 = vmul.f32 %v976_v0, %v685_v23  ;;  %v749_v30 = vunpack.c.h.bf16 %v779_v11 }
  0x45   : > { %511 = vst [vmem:[%s1012_s20 + $0xd0] sm:$0xff] %v479_v24  ;;  %v481_v31 = vmax.f32 %v449_v25, 0.0  ;;  %v450_v32 = vadd.f32 %v745_v15, %v354_v26  ;;  %v355_v33 = vadd.f32 %v981_v1, %v319_v27 }
  0x46   : > { %512 = vst [vmem:[%s1012_s20 + $0xd8] sm:$0xff] %v480_v28  ;;  %v356_v34 = vadd.f32 %v981_v1, %v320_v29 }
  0x47   : > { %513 = vst [vmem:[%s1012_s20 + $0xe0] sm:$0xff] %v481_v31  ;;  %v482_v35 = vmax.f32 %v450_v32, 0.0  ;;  %v451_v36 = vadd.f32 %v748_v22, %v355_v33 }
  0x48   : > { %v452_v37 = vadd.f32 %v749_v30, %v356_v34 }
  0x49   : > { %514 = vst [vmem:[%s1012_s20 + $0xe8] sm:$0xff] %v482_v35  ;;  %v483_v0 = vmax.f32 %v451_v36, 0.0 }
  0x4a   : > { %v484_v38 = vmax.f32 %v452_v37, 0.0 }
  0x4b   : > { %515 = vst [vmem:[%s1012_s20 + $0xf0] sm:$0xff] %v483_v0 }
  0x4c   : > { %516 = vst [vmem:[%s1012_s20 + $0xf8] sm:$0xff] %v484_v38 }
  0x4d   : > { %850 = shalt.err (!%p847_p3)
}
  0x4e   : > { %s887_s12 = smov 128   ;;  %s888_s13 = smov 8  }
  0x4f   : > { %780 = dma.vmem_to_hbm [thread:$0]  (%p952_p5), %s531_s28, 4096, %s533_s29, %s518_s30, %s887_s12, %s887_s12, %s888_s13  }
  0x50 PF: > { %p786_p4 = scmp.ge.s32.totalorder %s885_s18, 2  ;;  %s547_s14 = sand.u32 1, %s873_s15  }
  0x51   : > { %s548_s20 = scalar_lea.sflag [#allocation3], %s547_s14 }
  0x52   : > { %p783_p7 = pnand %p786_p4, %p956_p6 }
  0x54   : > { %p784_p8 = pneg %p783_p7 }
  0x56   : > { %868 = dma.done.wait (%p784_p8), %s548_s20, 4096  }
  0x57   : > { %870 = vsyncadd (%p784_p8), %s548_s20, 4294963200  ;;  %p14_p9 = scmp.ge.s32.totalorder %s939_s21, 4   ;;  %s1157_s15 = smov %s877_s16 }
  0x58   : > { %s1158_s16 = smov %s881_s17  ;;  %s1159_s17 = smov %s950_s24 }
  0x59   : > { %s1160_s18 = smov %s939_s21  ;;  %16 = sbr.rel (!%p14_p9) target bundleno = 3 (0x3), region = 74 }
  0x5e   :  { %554 = vsyncpa [#allocation3], 1 }
  0x5f   :  { %556 = vsyncpa [#allocation3 + $0x1], 1 }

// kernel: bottleneck_forward.4
= control target key start
LH: loop header
LB: loop body
LE: loop exit
PB: predicated region body
PF: predicated region fallthrough
CT: control target
= control target key end

     0   :  { %s1074_s15 = smov 0   ;;  %s1289_s0 = inlined_call_operand.vmem [shape: bf16[512,128], index: 0, kind: input, shape index: {}]   ;;  %s1290_s1 = inlined_call_operand.vmem [shape: bf16[128,128], index: 1, kind: input, shape index: {}]   ;;  %s1291_s2 = inlined_call_operand.vmem [shape: bf16[512,128], index: 2, kind: output, shape index: {0}]   ;;  %s1292_s3 = inlined_call_operand.vmem [shape: f32[2,8,128], index: 3, kind: output, shape index: {1}]   ;;  %s1293_s4 = inlined_call_operand.vmem [shape: f32[2,8,128], index: 4, kind: output, shape index: {2}]  }
   0x1 LB: > { %s1080_s16 = sadd.s32 4294967295, %s1047_s15   ;;  %p785_p0 = scmp.ge.s32.totalorder %s1047_s15, 1  ;;  %s1047_s15 = sphi %s1074_s15, %s15_s15  }
   0x2   : > { %p168_p1 = scmp.lt.s32.totalorder %s1047_s15, 3 }
   0x4   : > { %p169_p2 = pnand %p785_p0, %p168_p1 }
   0x5   : > { %s786_s25 = sshll.u32 (!%p169_p2), %s1080_s16, 5  ;;  %p214_p4 = scmp.lt.s32.totalorder (!%p169_p2), %s1080_s16, 1 }
   0x6   : > { %172 = sbr.rel (%p169_p2) target bundleno = 278 (0x116), region = 28  ;;  %p203_p3 = scmp.lt.s32.totalorder (!%p169_p2), %s786_s25, 63 }
   0xb   : > { %v913_v0 = vld [vmem:[%s1290_s1 + $0x38] sm:$0xff]  ;;  %v912_v1 = vld [vmem:[%s1290_s1 + $0x30] sm:$0xff]  ;;  %v911_v2 = vld [vmem:[%s1290_s1 + $0x28] sm:$0xff]  ;;  %s1295_s25 = smov (!%p203_p3, %s786_s25), 63  ;;  %s1297_s16 = smov (!%p214_p4, %s1080_s16), 1 }
   0xc   : > { %414 = vmatpush.bf16.msra.mxu0 %v913_v0  ;;  %1009 = vmatpush.bf16.msra.mxu1 %v913_v0  ;;  %v910_v3 = vld [vmem:[%s1290_s1 + $0x20] sm:$0xff]  ;;  %v909_v4 = vld [vmem:[%s1290_s1 + $0x18] sm:$0xff]  ;;  %v908_v5 = vld [vmem:[%s1290_s1 + $0x10] sm:$0xff]  ;;  %s787_s6 = sshll.u32 %s1295_s25, 2  ;;  %s790_s17 = sshll.u32 %s1297_s16, 3 }
   0xd   : > { %1010 = vmatpush.bf16.msra.mxu2 %v913_v0  ;;  %1011 = vmatpush.bf16.msra.mxu3 %v913_v0  ;;  %v907_v6 = vld [vmem:[%s1290_s1 + $0x8] sm:$0xff]  ;;  %v906_v7 = vld [vmem:[%s1290_s1] sm:$0xff]  ;;  %s1117_s11 = scalar_lea.vmem %s1289_s0, %s787_s6  ;;  %s1144_s14 = scalar_lea.vmem %s1291_s2, %s787_s6 }
   0xe   : > { %v890_v8 = vld [vmem:[%s1117_s11] sm:$0xff]  ;;  %v891_v12 = vld [vmem:[%s1117_s11 + $0x8] sm:$0xff]  ;;  %v892_v16 = vld [vmem:[%s1117_s11 + $0x10] sm:$0xff]  ;;  %s217_s20 = scalar_lea.vmem %s1292_s3, %s790_s17  ;;  %s221_s16 = scalar_lea.vmem %s1293_s4, %s790_s17 }
   0xf   : > { %v894_v9 = vld [vmem:[%s1117_s11 + $0x20] sm:$0xff]  ;;  %v895_v13 = vld [vmem:[%s1117_s11 + $0x28] sm:$0xff]  ;;  %v896_v17 = vld [vmem:[%s1117_s11 + $0x30] sm:$0xff] }
  0x10   : > { %415 = vmatpush.bf16.msra.mxu0 %v912_v1  ;;  %1012 = vmatpush.bf16.msra.mxu1 %v912_v1  ;;  %v898_v10 = vld [vmem:[%s1117_s11 + $0x40] sm:$0xff]  ;;  %v899_v14 = vld [vmem:[%s1117_s11 + $0x48] sm:$0xff]  ;;  %v900_v18 = vld [vmem:[%s1117_s11 + $0x50] sm:$0xff] }
  0x11   : > { %1013 = vmatpush.bf16.msra.mxu2 %v912_v1  ;;  %1014 = vmatpush.bf16.msra.mxu3 %v912_v1  ;;  %v902_v11 = vld [vmem:[%s1117_s11 + $0x60] sm:$0xff]  ;;  %v903_v15 = vld [vmem:[%s1117_s11 + $0x68] sm:$0xff]  ;;  %v904_v19 = vld [vmem:[%s1117_s11 + $0x70] sm:$0xff] }
  0x12   : > { %v893_v20 = vld [vmem:[%s1117_s11 + $0x18] sm:$0xff] }
  0x13   : > { %v897_v21 = vld [vmem:[%s1117_s11 + $0x38] sm:$0xff] }
  0x14   : > { %416 = vmatpush.bf16.msra.mxu0 %v911_v2  ;;  %1015 = vmatpush.bf16.msra.mxu1 %v911_v2  ;;  %v901_v22 = vld [vmem:[%s1117_s11 + $0x58] sm:$0xff] }
  0x15   : > { %1016 = vmatpush.bf16.msra.mxu2 %v911_v2  ;;  %1017 = vmatpush.bf16.msra.mxu3 %v911_v2  ;;  %v905_v23 = vld [vmem:[%s1117_s11 + $0x78] sm:$0xff] }
  0x18   : > { %417 = vmatpush.bf16.msra.mxu0 %v910_v3  ;;  %1018 = vmatpush.bf16.msra.mxu1 %v910_v3 }
  0x19   : > { %1019 = vmatpush.bf16.msra.mxu2 %v910_v3  ;;  %1020 = vmatpush.bf16.msra.mxu3 %v910_v3 }
  0x1c   : > { %418 = vmatpush.bf16.msra.mxu0 %v909_v4  ;;  %1021 = vmatpush.bf16.msra.mxu1 %v909_v4 }
  0x1d   : > { %1022 = vmatpush.bf16.msra.mxu2 %v909_v4  ;;  %1023 = vmatpush.bf16.msra.mxu3 %v909_v4 }
  0x20   : > { %419 = vmatpush.bf16.msra.mxu0 %v908_v5  ;;  %1024 = vmatpush.bf16.msra.mxu1 %v908_v5 }
  0x21   : > { %1025 = vmatpush.bf16.msra.mxu2 %v908_v5  ;;  %1026 = vmatpush.bf16.msra.mxu3 %v908_v5 }
  0x24   : > { %420 = vmatpush.bf16.msra.mxu0 %v907_v6  ;;  %1027 = vmatpush.bf16.msra.mxu1 %v907_v6 }
  0x25   : > { %1028 = vmatpush.bf16.msra.mxu2 %v907_v6  ;;  %1029 = vmatpush.bf16.msra.mxu3 %v907_v6 }
  0x28   : > { %421 = vmatpush.bf16.msra.mxu0 %v906_v7  ;;  %1030 = vmatpush.bf16.msra.mxu1 %v906_v7 }
  0x29   : > { %1031 = vmatpush.bf16.msra.mxu2 %v906_v7  ;;  %1032 = vmatpush.bf16.msra.mxu3 %v906_v7 }
  0x2b   : > { %422 = vmatmul.bf16.vlgmr.msra.gmra.mxu0 %v890_v8  ;;  %442 = vmatmul.bf16.vlgmr.msra.gmra.mxu1 %v894_v9 }
  0x2c   : > { %462 = vmatmul.bf16.vlgmr.msra.gmra.mxu2 %v898_v10  ;;  %482 = vmatmul.bf16.vlgmr.msra.gmra.mxu3 %v902_v11 }
  0x3b   : > { %427 = vmatmul.bf16.gmra.mxu0 %v891_v12  ;;  %447 = vmatmul.bf16.gmra.mxu1 %v895_v13 }
  0x3c   : > { %467 = vmatmul.bf16.gmra.mxu2 %v899_v14  ;;  %487 = vmatmul.bf16.gmra.mxu3 %v903_v15 }
  0x4b   : > { %432 = vmatmul.bf16.gmra.mxu0 %v892_v16  ;;  %452 = vmatmul.bf16.gmra.mxu1 %v896_v17 }
  0x4c   : > { %472 = vmatmul.bf16.gmra.mxu2 %v900_v18  ;;  %492 = vmatmul.bf16.gmra.mxu3 %v904_v19 }
  0x5b   : > { %437 = vmatmul.bf16.gmra.mxu0 %v893_v20  ;;  %457 = vmatmul.bf16.gmra.mxu1 %v897_v21 }
  0x5c   : > { %477 = vmatmul.bf16.gmra.mxu2 %v901_v22  ;;  %497 = vmatmul.bf16.gmra.mxu3 %v905_v23 }
  0xa8   : > { %v423_v24 = vpop.f32.mrf.mxu0  ;;  %v1135_v25 = vpop.f32.mrf.mxu1 }
  0xa9   : > { %v599_v57 = vmul.f32 %v423_v24, %v423_v24 }
  0xaf   : > { %v1137_v26 = vpop.f32.mrf.mxu2  ;;  %v1150_v31 = vpop.f32.mrf.mxu3 }
  0xb0   : > { %v425_v27 = vpop.f32.mrf.mxu0  ;;  %v1146_v28 = vpop.f32.mrf.mxu1 }
  0xb1   : > { %v917_v29 = vpack.c.bf16 %v425_v27, %v423_v24  ;;  %v937_v30 = vpack.c.bf16 %v1146_v28, %v1135_v25  ;;  %v600_v56 = vmul.f32 %v425_v27, %v425_v27  ;;  %v567_v59 = vadd.f32 %v425_v27, %v423_v24 }
  0xb2   : > { %v607_v27 = vmul.f32 %v1135_v25, %v1135_v25 }
  0xb3   : > { %918 = vst [vmem:[%s1144_s14] sm:$0xff] %v917_v29   ;;  %v631_v60 = vadd.f32 %v600_v56, %v599_v57 }
  0xb4   : > { %997 = vst [vmem:[%s1144_s14 + $0x20] sm:$0xff] %v937_v30  }
  0xb7   : > { %v1154_v32 = vpop.f32.mrf.mxu2  ;;  %v1160_v36 = vpop.f32.mrf.mxu3 }
  0xb8   : > { %v428_v33 = vpop.f32.mrf.mxu0  ;;  %v1156_v34 = vpop.f32.mrf.mxu1  ;;  %v957_v35 = vpack.c.bf16 %v1154_v32, %v1137_v26  ;;  %v977_v37 = vpack.c.bf16 %v1160_v36, %v1150_v31 }
  0xb9   : > { %v601_v58 = vmul.f32 %v428_v33, %v428_v33  ;;  %v568_v62 = vadd.f32 %v567_v59, %v428_v33 }
  0xba   : > { %1001 = vst [vmem:[%s1144_s14 + $0x40] sm:$0xff] %v957_v35  }
  0xbb   : > { %1005 = vst [vmem:[%s1144_s14 + $0x60] sm:$0xff] %v977_v37   ;;  %v632_v0 = vadd.f32 %v631_v60, %v601_v58 }
  0xbf   : > { %v1166_v38 = vpop.f32.mrf.mxu2  ;;  %v1172_v43 = vpop.f32.mrf.mxu3 }
  0xc0   : > { %v430_v39 = vpop.f32.mrf.mxu0  ;;  %v1168_v40 = vpop.f32.mrf.mxu1 }
  0xc1   : > { %v922_v41 = vpack.c.bf16 %v430_v39, %v428_v33  ;;  %v942_v42 = vpack.c.bf16 %v1168_v40, %v1156_v34  ;;  %v602_v61 = vmul.f32 %v430_v39, %v430_v39  ;;  %v569_v5 = vadd.f32 %v568_v62, %v430_v39 }
  0xc2   : > { %v608_v33 = vmul.f32 %v1146_v28, %v1146_v28  ;;  %v609_v39 = vmul.f32 %v1156_v34, %v1156_v34 }
  0xc3   : > { %994 = vst [vmem:[%s1144_s14 + $0x8] sm:$0xff] %v922_v41   ;;  %v633_v7 = vadd.f32 %v632_v0, %v602_v61 }
  0xc4   : > { %998 = vst [vmem:[%s1144_s14 + $0x28] sm:$0xff] %v942_v42  }
  0xc7   : > { %v1176_v44 = vpop.f32.mrf.mxu2  ;;  %v1182_v48 = vpop.f32.mrf.mxu3 }
  0xc8   : > { %v433_v45 = vpop.f32.mrf.mxu0  ;;  %v1178_v46 = vpop.f32.mrf.mxu1  ;;  %v962_v47 = vpack.c.bf16 %v1176_v44, %v1166_v38  ;;  %v982_v49 = vpack.c.bf16 %v1182_v48, %v1172_v43 }
  0xc9   : > { %v603_v1 = vmul.f32 %v433_v45, %v433_v45  ;;  %v570_v10 = vadd.f32 %v569_v5, %v433_v45  ;;  %v616_v5 = vmul.f32 %v1154_v32, %v1154_v32 }
  0xca   : > { %1002 = vst [vmem:[%s1144_s14 + $0x48] sm:$0xff] %v962_v47  }
  0xcb   : > { %1006 = vst [vmem:[%s1144_s14 + $0x68] sm:$0xff] %v982_v49   ;;  %v634_v11 = vadd.f32 %v633_v7, %v603_v1 }
  0xcf   : > { %v1188_v50 = vpop.f32.mrf.mxu2  ;;  %v1194_v55 = vpop.f32.mrf.mxu3 }
  0xd0   : > { %v435_v51 = vpop.f32.mrf.mxu0  ;;  %v1190_v52 = vpop.f32.mrf.mxu1 }
  0xd1   : > { %v927_v53 = vpack.c.bf16 %v435_v51, %v433_v45  ;;  %v947_v54 = vpack.c.bf16 %v1190_v52, %v1178_v46  ;;  %v604_v8 = vmul.f32 %v435_v51, %v435_v51  ;;  %v571_v13 = vadd.f32 %v570_v10, %v435_v51 }
  0xd2   : > { %v612_v57 = vmul.f32 %v1190_v52, %v1190_v52  ;;  %v618_v10 = vmul.f32 %v1176_v44, %v1176_v44 }
  0xd3   : > { %995 = vst [vmem:[%s1144_s14 + $0x10] sm:$0xff] %v927_v53   ;;  %v635_v14 = vadd.f32 %v634_v11, %v604_v8 }
  0xd4   : > { %999 = vst [vmem:[%s1144_s14 + $0x30] sm:$0xff] %v947_v54   ;;  %v611_v54 = vmul.f32 %v1178_v46, %v1178_v46 }
  0xd7   : > { %v1198_v63 = vpop.f32.mrf.mxu2  ;;  %v1202_v6 = vpop.f32.mrf.mxu3 }
  0xd8   : > { %v438_v2 = vpop.f32.mrf.mxu0  ;;  %v458_v3 = vpop.f32.mrf.mxu1  ;;  %v967_v4 = vpack.c.bf16 %v1198_v63, %v1188_v50  ;;  %v987_v9 = vpack.c.bf16 %v1202_v6, %v1194_v55 }
  0xd9   : > { %v605_v12 = vmul.f32 %v438_v2, %v438_v2  ;;  %v572_v15 = vadd.f32 %v571_v13, %v438_v2  ;;  %v613_v60 = vmul.f32 %v458_v3, %v458_v3 }
  0xda   : > { %1003 = vst [vmem:[%s1144_s14 + $0x50] sm:$0xff] %v967_v4  }
  0xdb   : > { %1007 = vst [vmem:[%s1144_s14 + $0x70] sm:$0xff] %v987_v9   ;;  %v636_v17 = vadd.f32 %v635_v14, %v605_v12 }
  0xdf   : > { %v478_v16 = vpop.f32.mrf.mxu2  ;;  %v1208_v24 = vpop.f32.mrf.mxu3 }
  0xe0   : > { %v440_v18 = vpop.f32.mrf.mxu0  ;;  %v460_v19 = vpop.f32.mrf.mxu1 }
  0xe1   : > { %v932_v20 = vpack.c.bf16 %v440_v18, %v438_v2  ;;  %v573_v21 = vadd.f32 %v572_v15, %v440_v18  ;;  %v606_v22 = vmul.f32 %v440_v18, %v440_v18  ;;  %v952_v23 = vpack.c.bf16 %v460_v19, %v458_v3 }
  0xe2   : > { %v614_v1 = vmul.f32 %v460_v19, %v460_v19  ;;  %v615_v2 = vmul.f32 %v1137_v26, %v1137_v26  ;;  %v620_v15 = vmul.f32 %v1198_v63, %v1198_v63 }
  0xe3   : > { %996 = vst [vmem:[%s1144_s14 + $0x18] sm:$0xff] %v932_v20   ;;  %v574_v29 = vadd.f32 %v573_v21, %v1135_v25  ;;  %v637_v30 = vadd.f32 %v636_v17, %v606_v22  ;;  %v610_v25 = vmul.f32 %v1168_v40, %v1168_v40  ;;  %v623_v22 = vmul.f32 %v1150_v31, %v1150_v31 }
  0xe4   : > { %1000 = vst [vmem:[%s1144_s14 + $0x38] sm:$0xff] %v952_v23  }
  0xe5   : > { %v575_v35 = vadd.f32 %v574_v29, %v1146_v28  ;;  %v638_v37 = vadd.f32 %v637_v30, %v607_v27  ;;  %v624_v27 = vmul.f32 %v1160_v36, %v1160_v36 }
  0xe7   : > { %v576_v41 = vadd.f32 %v575_v35, %v1156_v34  ;;  %v639_v42 = vadd.f32 %v638_v37, %v608_v33  ;;  %v480_v45 = vpop.f32.mrf.mxu2  ;;  %v1224_v53 = vpop.f32.mrf.mxu3  ;;  %v626_v35 = vmul.f32 %v1182_v48, %v1182_v48 }
  0xe8   : > { %v972_v47 = vpack.c.bf16 %v480_v45, %v478_v16  ;;  %v992_v28 = vpack.c.bf16 %v1224_v53, %v1208_v24 }
  0xe9   : > { %v640_v49 = vadd.f32 %v639_v42, %v609_v39  ;;  %v577_v51 = vadd.f32 %v576_v41, %v1168_v40  ;;  %v627_v39 = vmul.f32 %v1194_v55, %v1194_v55 }
  0xea   : > { %1004 = vst [vmem:[%s1144_s14 + $0x58] sm:$0xff] %v972_v47  }
  0xeb   : > { %v578_v34 = vadd.f32 %v577_v51, %v1178_v46  ;;  %v641_v56 = vadd.f32 %v640_v49, %v610_v25  ;;  %1008 = vst [vmem:[%s1144_s14 + $0x78] sm:$0xff] %v992_v28   ;;  %v630_v51 = vmul.f32 %v1224_v53, %v1224_v53 }
  0xed   : > { %v579_v58 = vadd.f32 %v578_v34, %v1190_v52  ;;  %v642_v59 = vadd.f32 %v641_v56, %v611_v54  ;;  %v617_v52 = vmul.f32 %v1166_v38, %v1166_v38 }
  0xef   : > { %v580_v40 = vadd.f32 %v579_v58, %v458_v3  ;;  %v643_v61 = vadd.f32 %v642_v59, %v612_v57 }
  0xf1   : > { %v644_v62 = vadd.f32 %v643_v61, %v613_v60  ;;  %v581_v0 = vadd.f32 %v580_v40, %v460_v19  ;;  %v621_v19 = vmul.f32 %v478_v16, %v478_v16 }
  0xf3   : > { %v582_v4 = vadd.f32 %v581_v0, %v1137_v26  ;;  %v645_v46 = vadd.f32 %v644_v62, %v614_v1  ;;  %v619_v26 = vmul.f32 %v1188_v50, %v1188_v50 }
  0xf5   : > { %v583_v7 = vadd.f32 %v582_v4, %v1154_v32  ;;  %v646_v8 = vadd.f32 %v645_v46, %v615_v2 }
  0xf7   : > { %v584_v3 = vadd.f32 %v583_v7, %v1166_v38  ;;  %v647_v9 = vadd.f32 %v646_v8, %v616_v5 }
  0xf9   : > { %v648_v11 = vadd.f32 %v647_v9, %v617_v52  ;;  %v585_v12 = vadd.f32 %v584_v3, %v1176_v44  ;;  %v622_v44 = vmul.f32 %v480_v45, %v480_v45 }
  0xfb   : > { %v586_v13 = vadd.f32 %v585_v12, %v1188_v50  ;;  %v649_v14 = vadd.f32 %v648_v11, %v618_v10 }
  0xfd   : > { %v587_v32 = vadd.f32 %v586_v13, %v1198_v63  ;;  %v650_v38 = vadd.f32 %v649_v14, %v619_v26 }
  0xff   : > { %v651_v17 = vadd.f32 %v650_v38, %v620_v15  ;;  %v588_v18 = vadd.f32 %v587_v32, %v478_v16  ;;  %v625_v16 = vmul.f32 %v1172_v43, %v1172_v43 }
 0x101   : > { %v652_v20 = vadd.f32 %v651_v17, %v621_v19  ;;  %v589_v21 = vadd.f32 %v588_v18, %v480_v45  ;;  %v628_v45 = vmul.f32 %v1202_v6, %v1202_v6 }
 0x103   : > { %v590_v50 = vadd.f32 %v589_v21, %v1150_v31  ;;  %v653_v23 = vadd.f32 %v652_v20, %v622_v44 }
 0x105   : > { %v591_v29 = vadd.f32 %v590_v50, %v1160_v36  ;;  %v654_v63 = vadd.f32 %v653_v23, %v623_v22 }
 0x107   : > { %v592_v30 = vadd.f32 %v591_v29, %v1172_v43  ;;  %v655_v33 = vadd.f32 %v654_v63, %v624_v27 }
 0x109   : > { %v656_v37 = vadd.f32 %v655_v33, %v625_v16  ;;  %v593_v31 = vadd.f32 %v592_v30, %v1182_v48  ;;  %v629_v48 = vmul.f32 %v1208_v24, %v1208_v24 }
 0x10b   : > { %v594_v36 = vadd.f32 %v593_v31, %v1194_v55  ;;  %v657_v41 = vadd.f32 %v656_v37, %v626_v35 }
 0x10d   : > { %v595_v42 = vadd.f32 %v594_v36, %v1202_v6  ;;  %v658_v43 = vadd.f32 %v657_v41, %v627_v39 }
 0x10f   : > { %v659_v47 = vadd.f32 %v658_v43, %v628_v45  ;;  %v596_v25 = vadd.f32 %v595_v42, %v1208_v24 }
 0x111   : > { %v660_v49 = vadd.f32 %v659_v47, %v629_v48  ;;  %v597_v55 = vadd.f32 %v596_v25, %v1224_v53 }
 0x113   : > { %598 = vst [vmem:[%s217_s20] sm:$0xff] %v597_v55  ;;  %v661_v6 = vadd.f32 %v660_v49, %v630_v51 }
 0x115   : > { %662 = vst [vmem:[%s221_s16] sm:$0xff] %v661_v6 }
 0x116 PF: > { %s15_s15 = sadd.s32 1, %s1047_s15  }
 0x117   : > { %p12_p5 = scmp.ge.s32.totalorder %s15_s15, 4  }
 0x119   :  { %14 = sbr.rel (!%p12_p5) target bundleno = 1 (0x1), region = 82 }

// kernel: bottleneck_forward.6
= control target key start
LH: loop header
LB: loop body
LE: loop exit
PB: predicated region body
PF: predicated region fallthrough
CT: control target
= control target key end

     0   :  { %s1195_s21 = smov 0   ;;  %s1484_s0 = inlined_call_operand.vmem [shape: bf16[512,128], index: 0, kind: input, shape index: {}]   ;;  %s1485_s1 = inlined_call_operand.vmem [shape: f32[1,128], index: 1, kind: input, shape index: {}]   ;;  %s1486_s2 = inlined_call_operand.vmem [shape: f32[1,128], index: 2, kind: input, shape index: {}]   ;;  %s1487_s3 = inlined_call_operand.vmem [shape: bf16[128,128], index: 3, kind: input, shape index: {}]   ;;  %s1488_s4 = inlined_call_operand.vmem [shape: bf16[512,128], index: 4, kind: output, shape index: {0}]   ;;  %s1489_s5 = inlined_call_operand.vmem [shape: f32[2,8,128], index: 5, kind: output, shape index: {1}]   ;;  %s1490_s6 = inlined_call_operand.vmem [shape: f32[2,8,128], index: 6, kind: output, shape index: {2}]  }
   0x1 LB: > { %s1201_s22 = sadd.s32 4294967295, %s1158_s21   ;;  %p895_p0 = scmp.ge.s32.totalorder %s1158_s21, 1  ;;  %s1158_s21 = sphi %s1195_s21, %s17_s21  }
   0x2   : > { %p218_p1 = scmp.lt.s32.totalorder %s1158_s21, 3 }
   0x4   : > { %p219_p2 = pnand %p895_p0, %p218_p1 }
   0x5   : > { %s896_s25 = sshll.u32 (!%p219_p2), %s1201_s22, 5  ;;  %p268_p4 = scmp.lt.s32.totalorder (!%p219_p2), %s1201_s22, 1 }
   0x6   : > { %222 = sbr.rel (%p219_p2) target bundleno = 278 (0x116), region = 36  ;;  %p257_p3 = scmp.lt.s32.totalorder (!%p219_p2), %s896_s25, 63 }
   0xb   : > { %v943_v0 = vld [vmem:[%s1487_s3 + $0x38] sm:$0xff]  ;;  %v942_v1 = vld [vmem:[%s1487_s3 + $0x30] sm:$0xff]  ;;  %s1492_s25 = smov (!%p257_p3, %s896_s25), 63  ;;  %v941_v2 = vld [vmem:[%s1487_s3 + $0x28] sm:$0xff]  ;;  %s1494_s22 = smov (!%p268_p4, %s1201_s22), 1 }
   0xc   : > { %524 = vmatpush.bf16.msra.mxu0 %v943_v0  ;;  %1118 = vmatpush.bf16.msra.mxu1 %v943_v0  ;;  %s897_s28 = sshll.u32 %s1492_s25, 2  ;;  %v940_v4 = vld [vmem:[%s1487_s3 + $0x20] sm:$0xff]  ;;  %v939_v12 = vld [vmem:[%s1487_s3 + $0x18] sm:$0xff]  ;;  %v938_v20 = vld [vmem:[%s1487_s3 + $0x10] sm:$0xff]  ;;  %s900_s25 = sshll.u32 %s1494_s22, 3 }
   0xd   : > { %1119 = vmatpush.bf16.msra.mxu2 %v943_v0  ;;  %1120 = vmatpush.bf16.msra.mxu3 %v943_v0  ;;  %s1223_s9 = scalar_lea.vmem %s1484_s0, %s897_s28  ;;  %v1234_v9 = vld [vmem:[%s1485_s1] ss:$0 sm:$0xff]  ;;  %v937_v27 = vld [vmem:[%s1487_s3 + $0x8] sm:$0xff]  ;;  %s1339_s30 = scalar_lea.vmem %s1488_s4, %s897_s28 }
   0xe   : > { %v945_v3 = vld [vmem:[%s1223_s9] sm:$0xff]   ;;  %v1088_v32 = vld [vmem:[%s1223_s9 + $0x8] sm:$0xff]   ;;  %s271_s8 = scalar_lea.vmem %s1489_s5, %s900_s25  ;;  %s275_s22 = scalar_lea.vmem %s1490_s6, %s900_s25 }
   0xf   : > { %v1091_v5 = vld [vmem:[%s1223_s9 + $0x20] sm:$0xff]   ;;  %v946_v7 = vunpack.c.l.bf16 %v945_v3  ;;  %v947_v8 = vunpack.c.h.bf16 %v945_v3  ;;  %v1092_v36 = vld [vmem:[%s1223_s9 + $0x28] sm:$0xff]   ;;  %v950_v42 = vunpack.c.l.bf16 %v1088_v32  ;;  %v951_v45 = vunpack.c.h.bf16 %v1088_v32 }
  0x10   : > { %525 = vmatpush.bf16.msra.mxu0 %v942_v1  ;;  %1121 = vmatpush.bf16.msra.mxu1 %v942_v1  ;;  %v1095_v6 = vld [vmem:[%s1223_s9 + $0x40] sm:$0xff]   ;;  %v962_v10 = vunpack.c.l.bf16 %v1091_v5  ;;  %v963_v11 = vunpack.c.h.bf16 %v1091_v5  ;;  %v1096_v43 = vld [vmem:[%s1223_s9 + $0x48] sm:$0xff]   ;;  %v966_v46 = vunpack.c.l.bf16 %v1092_v36  ;;  %v967_v47 = vunpack.c.h.bf16 %v1092_v36 }
  0x11   : > { %1122 = vmatpush.bf16.msra.mxu2 %v942_v1  ;;  %1123 = vmatpush.bf16.msra.mxu3 %v942_v1  ;;  %v978_v13 = vunpack.c.l.bf16 %v1095_v6  ;;  %v979_v14 = vunpack.c.h.bf16 %v1095_v6  ;;  %v344_v15 = vmul.f32 %v1234_v9, %v946_v7  ;;  %v345_v16 = vmul.f32 %v1234_v9, %v947_v8  ;;  %v1244_v17 = vld [vmem:[%s1486_s2] ss:$0 sm:$0xff] }
  0x12   : > { %v352_v18 = vmul.f32 %v1234_v9, %v962_v10  ;;  %v353_v19 = vmul.f32 %v1234_v9, %v963_v11  ;;  %v1099_v33 = vld [vmem:[%s1223_s9 + $0x60] sm:$0xff]   ;;  %v982_v53 = vunpack.c.l.bf16 %v1096_v43  ;;  %v983_v54 = vunpack.c.h.bf16 %v1096_v43  ;;  %v1101_v43 = vld [vmem:[%s1223_s9 + $0x70] sm:$0xff]  }
  0x13   : > { %v360_v21 = vmul.f32 %v1234_v9, %v978_v13  ;;  %v361_v22 = vmul.f32 %v1234_v9, %v979_v14  ;;  %v380_v23 = vadd.f32 %v1244_v17, %v344_v15  ;;  %v381_v24 = vadd.f32 %v1244_v17, %v345_v16  ;;  %v936_v39 = vld [vmem:[%s1487_s3] sm:$0xff]  ;;  %v1089_v13 = vld [vmem:[%s1223_s9 + $0x10] sm:$0xff]  }
  0x14   : > { %526 = vmatpush.bf16.msra.mxu0 %v941_v2  ;;  %1124 = vmatpush.bf16.msra.mxu1 %v941_v2  ;;  %v388_v25 = vadd.f32 %v1244_v17, %v352_v18  ;;  %v389_v26 = vadd.f32 %v1244_v17, %v353_v19  ;;  %v994_v37 = vunpack.c.l.bf16 %v1099_v33  ;;  %v995_v38 = vunpack.c.h.bf16 %v1099_v33  ;;  %v1093_v19 = vld [vmem:[%s1223_s9 + $0x30] sm:$0xff]  }
  0x15   : > { %1125 = vmatpush.bf16.msra.mxu2 %v941_v2  ;;  %1126 = vmatpush.bf16.msra.mxu3 %v941_v2  ;;  %v396_v28 = vadd.f32 %v1244_v17, %v360_v21  ;;  %v397_v29 = vadd.f32 %v1244_v17, %v361_v22  ;;  %v412_v30 = vmax.f32 %v380_v23, 0.0  ;;  %v413_v31 = vmax.f32 %v381_v24, 0.0 }
  0x16   : > { %v420_v34 = vmax.f32 %v388_v25, 0.0  ;;  %v421_v35 = vmax.f32 %v389_v26, 0.0  ;;  %v368_v44 = vmul.f32 %v1234_v9, %v994_v37  ;;  %v369_v48 = vmul.f32 %v1234_v9, %v995_v38 }
  0x17   : > { %v428_v40 = vmax.f32 %v396_v28, 0.0  ;;  %v429_v41 = vmax.f32 %v397_v29, 0.0  ;;  %v444_v49 = vpack.c.bf16 %v413_v31, %v412_v30  ;;  %v346_v56 = vmul.f32 %v1234_v9, %v950_v42 }
  0x18   : > { %527 = vmatpush.bf16.msra.mxu0 %v940_v4  ;;  %1127 = vmatpush.bf16.msra.mxu1 %v940_v4  ;;  %v448_v50 = vpack.c.bf16 %v421_v35, %v420_v34  ;;  %v404_v51 = vadd.f32 %v1244_v17, %v368_v44  ;;  %v405_v55 = vadd.f32 %v1244_v17, %v369_v48  ;;  %v954_v25 = vunpack.c.l.bf16 %v1089_v13 }
  0x19   : > { %1128 = vmatpush.bf16.msra.mxu2 %v940_v4  ;;  %1129 = vmatpush.bf16.msra.mxu3 %v940_v4  ;;  %v452_v52 = vpack.c.bf16 %v429_v41, %v428_v40  ;;  %v347_v58 = vmul.f32 %v1234_v9, %v951_v45  ;;  %v354_v59 = vmul.f32 %v1234_v9, %v966_v46  ;;  %v955_v26 = vunpack.c.h.bf16 %v1089_v13 }
  0x1a   : > { %v436_v57 = vmax.f32 %v404_v51, 0.0  ;;  %v355_v60 = vmul.f32 %v1234_v9, %v967_v47  ;;  %v437_v61 = vmax.f32 %v405_v55, 0.0  ;;  %v362_v62 = vmul.f32 %v1234_v9, %v982_v53 }
  0x1b   : > { %v363_v63 = vmul.f32 %v1234_v9, %v983_v54  ;;  %v382_v1 = vadd.f32 %v1244_v17, %v346_v56  ;;  %v383_v2 = vadd.f32 %v1244_v17, %v347_v58  ;;  %v390_v3 = vadd.f32 %v1244_v17, %v354_v59 }
  0x1c   : > { %528 = vmatpush.bf16.msra.mxu0 %v939_v12  ;;  %1130 = vmatpush.bf16.msra.mxu1 %v939_v12  ;;  %v456_v0 = vpack.c.bf16 %v437_v61, %v436_v57  ;;  %v391_v4 = vadd.f32 %v1244_v17, %v355_v60  ;;  %v398_v5 = vadd.f32 %v1244_v17, %v362_v62  ;;  %v971_v28 = vunpack.c.h.bf16 %v1093_v19  ;;  %v1090_v60 = vld [vmem:[%s1223_s9 + $0x18] sm:$0xff]  }
  0x1d   : > { %1131 = vmatpush.bf16.msra.mxu2 %v939_v12  ;;  %1132 = vmatpush.bf16.msra.mxu3 %v939_v12  ;;  %v399_v6 = vadd.f32 %v1244_v17, %v363_v63  ;;  %v414_v7 = vmax.f32 %v382_v1, 0.0  ;;  %v415_v8 = vmax.f32 %v383_v2, 0.0  ;;  %v422_v10 = vmax.f32 %v390_v3, 0.0  ;;  %v1100_v12 = vld [vmem:[%s1223_s9 + $0x68] sm:$0xff]   ;;  %v1094_v63 = vld [vmem:[%s1223_s9 + $0x38] sm:$0xff]  }
  0x1e   : > { %v423_v11 = vmax.f32 %v391_v4, 0.0  ;;  %v998_v14 = vunpack.c.l.bf16 %v1100_v12  ;;  %v999_v15 = vunpack.c.h.bf16 %v1100_v12  ;;  %v430_v16 = vmax.f32 %v398_v5, 0.0 }
  0x1f   : > { %v431_v18 = vmax.f32 %v399_v6, 0.0  ;;  %v445_v23 = vpack.c.bf16 %v415_v8, %v414_v7  ;;  %v348_v36 = vmul.f32 %v1234_v9, %v954_v25  ;;  %v349_v37 = vmul.f32 %v1234_v9, %v955_v26 }
  0x20   : > { %529 = vmatpush.bf16.msra.mxu0 %v938_v20  ;;  %1133 = vmatpush.bf16.msra.mxu1 %v938_v20  ;;  %v370_v21 = vmul.f32 %v1234_v9, %v998_v14  ;;  %v371_v22 = vmul.f32 %v1234_v9, %v999_v15  ;;  %v449_v24 = vpack.c.bf16 %v423_v11, %v422_v10  ;;  %v1002_v44 = vunpack.c.l.bf16 %v1101_v43  ;;  %v1102_v10 = vld [vmem:[%s1223_s9 + $0x78] sm:$0xff]  }
  0x21   : > { %1134 = vmatpush.bf16.msra.mxu2 %v938_v20  ;;  %1135 = vmatpush.bf16.msra.mxu3 %v938_v20  ;;  %v1097_v20 = vld [vmem:[%s1223_s9 + $0x50] sm:$0xff]   ;;  %v453_v31 = vpack.c.bf16 %v431_v18, %v430_v16  ;;  %v1003_v45 = vunpack.c.h.bf16 %v1101_v43  ;;  %v384_v46 = vadd.f32 %v1244_v17, %v348_v36  ;;  %v385_v47 = vadd.f32 %v1244_v17, %v349_v37 }
  0x22   : > { %v406_v29 = vadd.f32 %v1244_v17, %v370_v21  ;;  %v407_v30 = vadd.f32 %v1244_v17, %v371_v22  ;;  %v986_v32 = vunpack.c.l.bf16 %v1097_v20  ;;  %v987_v33 = vunpack.c.h.bf16 %v1097_v20 }
  0x23   : > { %v373_v51 = vmul.f32 %v1234_v9, %v1003_v45  ;;  %v416_v54 = vmax.f32 %v384_v46, 0.0  ;;  %v417_v55 = vmax.f32 %v385_v47, 0.0  ;;  %v958_v2 = vunpack.c.l.bf16 %v1090_v60 }
  0x24   : > { %530 = vmatpush.bf16.msra.mxu0 %v937_v27  ;;  %1136 = vmatpush.bf16.msra.mxu1 %v937_v27  ;;  %v438_v34 = vmax.f32 %v406_v29, 0.0  ;;  %v439_v35 = vmax.f32 %v407_v30, 0.0  ;;  %v364_v41 = vmul.f32 %v1234_v9, %v986_v32  ;;  %v365_v42 = vmul.f32 %v1234_v9, %v987_v33 }
  0x25   : > { %1137 = vmatpush.bf16.msra.mxu2 %v937_v27  ;;  %1138 = vmatpush.bf16.msra.mxu3 %v937_v27  ;;  %v970_v27 = vunpack.c.l.bf16 %v1093_v19  ;;  %v409_v57 = vadd.f32 %v1244_v17, %v373_v51  ;;  %v446_v1 = vpack.c.bf16 %v417_v55, %v416_v54  ;;  %v959_v6 = vunpack.c.h.bf16 %v1090_v60 }
  0x26   : > { %v457_v40 = vpack.c.bf16 %v439_v35, %v438_v34  ;;  %v401_v53 = vadd.f32 %v1244_v17, %v365_v42  ;;  %v974_v7 = vunpack.c.l.bf16 %v1094_v63  ;;  %v975_v8 = vunpack.c.h.bf16 %v1094_v63 }
  0x27   : > { %v356_v38 = vmul.f32 %v1234_v9, %v970_v27  ;;  %v441_v4 = vmax.f32 %v409_v57, 0.0  ;;  %v350_v14 = vmul.f32 %v1234_v9, %v958_v2  ;;  %v1006_v16 = vunpack.c.l.bf16 %v1102_v10 }
  0x28   : > { %531 = vmatpush.bf16.msra.mxu0 %v936_v39  ;;  %1139 = vmatpush.bf16.msra.mxu1 %v936_v39  ;;  %v433_v62 = vmax.f32 %v401_v53, 0.0  ;;  %v1007_v18 = vunpack.c.h.bf16 %v1102_v10  ;;  %v351_v19 = vmul.f32 %v1234_v9, %v959_v6  ;;  %v358_v20 = vmul.f32 %v1234_v9, %v974_v7 }
  0x29   : > { %1140 = vmatpush.bf16.msra.mxu2 %v936_v39  ;;  %1141 = vmatpush.bf16.msra.mxu3 %v936_v39  ;;  %v357_v39 = vmul.f32 %v1234_v9, %v971_v28  ;;  %v392_v48 = vadd.f32 %v1244_v17, %v356_v38  ;;  %v359_v21 = vmul.f32 %v1234_v9, %v975_v8 }
  0x2a   : > { %v375_v25 = vmul.f32 %v1234_v9, %v1007_v18  ;;  %v386_v26 = vadd.f32 %v1244_v17, %v350_v14  ;;  %v387_v27 = vadd.f32 %v1244_v17, %v351_v19  ;;  %v394_v28 = vadd.f32 %v1244_v17, %v358_v20 }
  0x2b   : > { %532 = vmatmul.bf16.vlgmr.msra.gmra.mxu0 %v444_v49  ;;  %552 = vmatmul.bf16.vlgmr.msra.gmra.mxu1 %v448_v50  ;;  %v393_v49 = vadd.f32 %v1244_v17, %v357_v39  ;;  %v372_v50 = vmul.f32 %v1234_v9, %v1002_v44  ;;  %v424_v58 = vmax.f32 %v392_v48, 0.0  ;;  %v395_v29 = vadd.f32 %v1244_v17, %v359_v21 }
  0x2c   : > { %572 = vmatmul.bf16.vlgmr.msra.gmra.mxu2 %v452_v52  ;;  %592 = vmatmul.bf16.vlgmr.msra.gmra.mxu3 %v456_v0  ;;  %v400_v52 = vadd.f32 %v1244_v17, %v364_v41  ;;  %v1098_v0 = vld [vmem:[%s1223_s9 + $0x58] sm:$0xff]   ;;  %v411_v33 = vadd.f32 %v1244_v17, %v375_v25  ;;  %v418_v34 = vmax.f32 %v386_v26, 0.0  ;;  %v419_v35 = vmax.f32 %v387_v27, 0.0 }
  0x2d   : > { %v408_v56 = vadd.f32 %v1244_v17, %v372_v50  ;;  %v425_v59 = vmax.f32 %v393_v49, 0.0  ;;  %v990_v12 = vunpack.c.l.bf16 %v1098_v0  ;;  %v991_v13 = vunpack.c.h.bf16 %v1098_v0 }
  0x2e   : > { %v432_v61 = vmax.f32 %v400_v52, 0.0  ;;  %v426_v36 = vmax.f32 %v394_v28, 0.0  ;;  %v447_v41 = vpack.c.bf16 %v419_v35, %v418_v34 }
  0x2f   : > { %v440_v3 = vmax.f32 %v408_v56, 0.0  ;;  %v450_v5 = vpack.c.bf16 %v425_v59, %v424_v58  ;;  %v366_v22 = vmul.f32 %v1234_v9, %v990_v12 }
  0x30   : > { %v454_v11 = vpack.c.bf16 %v433_v62, %v432_v61 }
  0x31   : > { %v458_v15 = vpack.c.bf16 %v441_v4, %v440_v3  ;;  %v402_v30 = vadd.f32 %v1244_v17, %v366_v22 }
  0x33   : > { %v434_v37 = vmax.f32 %v402_v30, 0.0 }
  0x3b   : > { %537 = vmatmul.bf16.gmra.mxu0 %v445_v23  ;;  %557 = vmatmul.bf16.gmra.mxu1 %v449_v24  ;;  %v367_v23 = vmul.f32 %v1234_v9, %v991_v13  ;;  %v374_v24 = vmul.f32 %v1234_v9, %v1006_v16  ;;  %v427_v9 = vmax.f32 %v395_v29, 0.0 }
  0x3c   : > { %577 = vmatmul.bf16.gmra.mxu2 %v453_v31  ;;  %597 = vmatmul.bf16.gmra.mxu3 %v457_v40  ;;  %v443_v40 = vmax.f32 %v411_v33, 0.0 }
  0x3d   : > { %v403_v31 = vadd.f32 %v1244_v17, %v367_v23  ;;  %v410_v32 = vadd.f32 %v1244_v17, %v374_v24  ;;  %v451_v42 = vpack.c.bf16 %v427_v9, %v426_v36 }
  0x3f   : > { %v435_v38 = vmax.f32 %v403_v31, 0.0  ;;  %v442_v39 = vmax.f32 %v410_v32, 0.0 }
  0x41   : > { %v455_v43 = vpack.c.bf16 %v435_v38, %v434_v37  ;;  %v459_v44 = vpack.c.bf16 %v443_v40, %v442_v39 }
  0x4b   : > { %542 = vmatmul.bf16.gmra.mxu0 %v446_v1  ;;  %562 = vmatmul.bf16.gmra.mxu1 %v450_v5 }
  0x4c   : > { %582 = vmatmul.bf16.gmra.mxu2 %v454_v11  ;;  %602 = vmatmul.bf16.gmra.mxu3 %v458_v15 }
  0x5b   : > { %547 = vmatmul.bf16.gmra.mxu0 %v447_v41  ;;  %567 = vmatmul.bf16.gmra.mxu1 %v451_v42 }
  0x5c   : > { %587 = vmatmul.bf16.gmra.mxu2 %v455_v43  ;;  %607 = vmatmul.bf16.gmra.mxu3 %v459_v44 }
  0xa8   : > { %v533_v45 = vpop.f32.mrf.mxu0  ;;  %v1330_v46 = vpop.f32.mrf.mxu1 }
  0xa9   : > { %v709_v14 = vmul.f32 %v533_v45, %v533_v45 }
  0xaf   : > { %v1332_v17 = vpop.f32.mrf.mxu2  ;;  %v1345_v51 = vpop.f32.mrf.mxu3 }
  0xb0   : > { %v535_v47 = vpop.f32.mrf.mxu0  ;;  %v1341_v48 = vpop.f32.mrf.mxu1 }
  0xb1   : > { %v1011_v49 = vpack.c.bf16 %v535_v47, %v533_v45  ;;  %v1031_v50 = vpack.c.bf16 %v1341_v48, %v1330_v46  ;;  %v710_v13 = vmul.f32 %v535_v47, %v535_v47  ;;  %v677_v16 = vadd.f32 %v535_v47, %v533_v45 }
  0xb2   : > { %v717_v47 = vmul.f32 %v1330_v46, %v1330_v46 }
  0xb3   : > { %1012 = vst [vmem:[%s1339_s30] sm:$0xff] %v1011_v49   ;;  %v741_v18 = vadd.f32 %v710_v13, %v709_v14 }
  0xb4   : > { %1106 = vst [vmem:[%s1339_s30 + $0x20] sm:$0xff] %v1031_v50  }
  0xb7   : > { %v1349_v52 = vpop.f32.mrf.mxu2  ;;  %v1355_v56 = vpop.f32.mrf.mxu3 }
  0xb8   : > { %v538_v53 = vpop.f32.mrf.mxu0  ;;  %v1351_v54 = vpop.f32.mrf.mxu1  ;;  %v1051_v55 = vpack.c.bf16 %v1349_v52, %v1332_v17  ;;  %v1071_v57 = vpack.c.bf16 %v1355_v56, %v1345_v51 }
  0xb9   : > { %v711_v15 = vmul.f32 %v538_v53, %v538_v53  ;;  %v678_v20 = vadd.f32 %v677_v16, %v538_v53 }
  0xba   : > { %1110 = vst [vmem:[%s1339_s30 + $0x40] sm:$0xff] %v1051_v55  }
  0xbb   : > { %1114 = vst [vmem:[%s1339_s30 + $0x60] sm:$0xff] %v1071_v57   ;;  %v742_v22 = vadd.f32 %v741_v18, %v711_v15 }
  0xbf   : > { %v1361_v58 = vpop.f32.mrf.mxu2  ;;  %v1367_v63 = vpop.f32.mrf.mxu3 }
  0xc0   : > { %v540_v59 = vpop.f32.mrf.mxu0  ;;  %v1363_v60 = vpop.f32.mrf.mxu1 }
  0xc1   : > { %v1016_v61 = vpack.c.bf16 %v540_v59, %v538_v53  ;;  %v1036_v62 = vpack.c.bf16 %v1363_v60, %v1351_v54  ;;  %v712_v19 = vmul.f32 %v540_v59, %v540_v59  ;;  %v679_v27 = vadd.f32 %v678_v20, %v540_v59 }
  0xc2   : > { %v718_v53 = vmul.f32 %v1341_v48, %v1341_v48  ;;  %v719_v59 = vmul.f32 %v1351_v54, %v1351_v54 }
  0xc3   : > { %1103 = vst [vmem:[%s1339_s30 + $0x8] sm:$0xff] %v1016_v61   ;;  %v743_v29 = vadd.f32 %v742_v22, %v712_v19 }
  0xc4   : > { %1107 = vst [vmem:[%s1339_s30 + $0x28] sm:$0xff] %v1036_v62  }
  0xc7   : > { %v1371_v0 = vpop.f32.mrf.mxu2  ;;  %v1377_v4 = vpop.f32.mrf.mxu3 }
  0xc8   : > { %v543_v1 = vpop.f32.mrf.mxu0  ;;  %v1373_v2 = vpop.f32.mrf.mxu1  ;;  %v1056_v3 = vpack.c.bf16 %v1371_v0, %v1361_v58  ;;  %v1076_v5 = vpack.c.bf16 %v1377_v4, %v1367_v63 }
  0xc9   : > { %v713_v23 = vmul.f32 %v543_v1, %v543_v1  ;;  %v680_v32 = vadd.f32 %v679_v27, %v543_v1  ;;  %v726_v27 = vmul.f32 %v1349_v52, %v1349_v52 }
  0xca   : > { %1111 = vst [vmem:[%s1339_s30 + $0x48] sm:$0xff] %v1056_v3  }
  0xcb   : > { %1115 = vst [vmem:[%s1339_s30 + $0x68] sm:$0xff] %v1076_v5   ;;  %v744_v33 = vadd.f32 %v743_v29, %v713_v23 }
  0xcf   : > { %v1383_v6 = vpop.f32.mrf.mxu2  ;;  %v1389_v12 = vpop.f32.mrf.mxu3 }
  0xd0   : > { %v545_v7 = vpop.f32.mrf.mxu0  ;;  %v1385_v8 = vpop.f32.mrf.mxu1 }
  0xd1   : > { %v1021_v10 = vpack.c.bf16 %v545_v7, %v543_v1  ;;  %v1041_v11 = vpack.c.bf16 %v1385_v8, %v1373_v2  ;;  %v714_v30 = vmul.f32 %v545_v7, %v545_v7  ;;  %v681_v35 = vadd.f32 %v680_v32, %v545_v7 }
  0xd2   : > { %v722_v14 = vmul.f32 %v1385_v8, %v1385_v8  ;;  %v728_v32 = vmul.f32 %v1371_v0, %v1371_v0 }
  0xd3   : > { %1104 = vst [vmem:[%s1339_s30 + $0x10] sm:$0xff] %v1021_v10   ;;  %v745_v36 = vadd.f32 %v744_v33, %v714_v30 }
  0xd4   : > { %1108 = vst [vmem:[%s1339_s30 + $0x30] sm:$0xff] %v1041_v11   ;;  %v721_v11 = vmul.f32 %v1373_v2, %v1373_v2 }
  0xd7   : > { %v1393_v21 = vpop.f32.mrf.mxu2  ;;  %v1397_v28 = vpop.f32.mrf.mxu3 }
  0xd8   : > { %v548_v24 = vpop.f32.mrf.mxu0  ;;  %v568_v25 = vpop.f32.mrf.mxu1  ;;  %v1061_v26 = vpack.c.bf16 %v1393_v21, %v1383_v6  ;;  %v1081_v31 = vpack.c.bf16 %v1397_v28, %v1389_v12 }
  0xd9   : > { %v715_v34 = vmul.f32 %v548_v24, %v548_v24  ;;  %v682_v9 = vadd.f32 %v681_v35, %v548_v24  ;;  %v723_v18 = vmul.f32 %v568_v25, %v568_v25 }
  0xda   : > { %1112 = vst [vmem:[%s1339_s30 + $0x50] sm:$0xff] %v1061_v26  }
  0xdb   : > { %1116 = vst [vmem:[%s1339_s30 + $0x70] sm:$0xff] %v1081_v31   ;;  %v746_v38 = vadd.f32 %v745_v36, %v715_v34 }
  0xdf   : > { %v588_v37 = vpop.f32.mrf.mxu2  ;;  %v1403_v45 = vpop.f32.mrf.mxu3 }
  0xe0   : > { %v550_v39 = vpop.f32.mrf.mxu0  ;;  %v570_v40 = vpop.f32.mrf.mxu1 }
  0xe1   : > { %v1026_v41 = vpack.c.bf16 %v550_v39, %v548_v24  ;;  %v683_v42 = vadd.f32 %v682_v9, %v550_v39  ;;  %v716_v43 = vmul.f32 %v550_v39, %v550_v39  ;;  %v1046_v44 = vpack.c.bf16 %v570_v40, %v568_v25 }
  0xe2   : > { %v724_v23 = vmul.f32 %v570_v40, %v570_v40  ;;  %v725_v24 = vmul.f32 %v1332_v17, %v1332_v17  ;;  %v730_v9 = vmul.f32 %v1393_v21, %v1393_v21 }
  0xe3   : > { %1105 = vst [vmem:[%s1339_s30 + $0x18] sm:$0xff] %v1026_v41   ;;  %v684_v49 = vadd.f32 %v683_v42, %v1330_v46  ;;  %v747_v50 = vadd.f32 %v746_v38, %v716_v43  ;;  %v720_v46 = vmul.f32 %v1363_v60, %v1363_v60  ;;  %v733_v43 = vmul.f32 %v1345_v51, %v1345_v51 }
  0xe4   : > { %1109 = vst [vmem:[%s1339_s30 + $0x38] sm:$0xff] %v1046_v44  }
  0xe5   : > { %v685_v55 = vadd.f32 %v684_v49, %v1341_v48  ;;  %v748_v57 = vadd.f32 %v747_v50, %v717_v47  ;;  %v734_v47 = vmul.f32 %v1355_v56, %v1355_v56 }
  0xe7   : > { %v686_v61 = vadd.f32 %v685_v55, %v1351_v54  ;;  %v749_v62 = vadd.f32 %v748_v57, %v718_v53  ;;  %v590_v1 = vpop.f32.mrf.mxu2  ;;  %v1419_v10 = vpop.f32.mrf.mxu3  ;;  %v736_v55 = vmul.f32 %v1377_v4, %v1377_v4 }
  0xe8   : > { %v1066_v3 = vpack.c.bf16 %v590_v1, %v588_v37  ;;  %v1086_v48 = vpack.c.bf16 %v1419_v10, %v1403_v45 }
  0xe9   : > { %v750_v5 = vadd.f32 %v749_v62, %v719_v59  ;;  %v687_v7 = vadd.f32 %v686_v61, %v1363_v60  ;;  %v737_v59 = vmul.f32 %v1389_v12, %v1389_v12 }
  0xea   : > { %1113 = vst [vmem:[%s1339_s30 + $0x58] sm:$0xff] %v1066_v3  }
  0xeb   : > { %v688_v54 = vadd.f32 %v687_v7, %v1373_v2  ;;  %v751_v13 = vadd.f32 %v750_v5, %v720_v46  ;;  %1117 = vst [vmem:[%s1339_s30 + $0x78] sm:$0xff] %v1086_v48   ;;  %v740_v7 = vmul.f32 %v1419_v10, %v1419_v10 }
  0xed   : > { %v689_v15 = vadd.f32 %v688_v54, %v1385_v8  ;;  %v752_v16 = vadd.f32 %v751_v13, %v721_v11  ;;  %v727_v8 = vmul.f32 %v1361_v58, %v1361_v58 }
  0xef   : > { %v690_v60 = vadd.f32 %v689_v15, %v568_v25  ;;  %v753_v19 = vadd.f32 %v752_v16, %v722_v14 }
  0xf1   : > { %v754_v20 = vadd.f32 %v753_v19, %v723_v18  ;;  %v691_v22 = vadd.f32 %v690_v60, %v570_v40  ;;  %v731_v40 = vmul.f32 %v588_v37, %v588_v37 }
  0xf3   : > { %v692_v26 = vadd.f32 %v691_v22, %v1332_v17  ;;  %v755_v2 = vadd.f32 %v754_v20, %v724_v23  ;;  %v729_v17 = vmul.f32 %v1383_v6, %v1383_v6 }
  0xf5   : > { %v693_v29 = vadd.f32 %v692_v26, %v1349_v52  ;;  %v756_v30 = vadd.f32 %v755_v2, %v725_v24 }
  0xf7   : > { %v694_v25 = vadd.f32 %v693_v29, %v1361_v58  ;;  %v757_v31 = vadd.f32 %v756_v30, %v726_v27 }
  0xf9   : > { %v758_v33 = vadd.f32 %v757_v31, %v727_v8  ;;  %v695_v34 = vadd.f32 %v694_v25, %v1371_v0  ;;  %v732_v0 = vmul.f32 %v590_v1, %v590_v1 }
  0xfb   : > { %v696_v35 = vadd.f32 %v695_v34, %v1383_v6  ;;  %v759_v36 = vadd.f32 %v758_v33, %v728_v32 }
  0xfd   : > { %v697_v52 = vadd.f32 %v696_v35, %v1393_v21  ;;  %v760_v58 = vadd.f32 %v759_v36, %v729_v17 }
  0xff   : > { %v761_v38 = vadd.f32 %v760_v58, %v730_v9  ;;  %v698_v39 = vadd.f32 %v697_v52, %v588_v37  ;;  %v735_v37 = vmul.f32 %v1367_v63, %v1367_v63 }
 0x101   : > { %v762_v41 = vadd.f32 %v761_v38, %v731_v40  ;;  %v699_v42 = vadd.f32 %v698_v39, %v590_v1  ;;  %v738_v1 = vmul.f32 %v1397_v28, %v1397_v28 }
 0x103   : > { %v700_v6 = vadd.f32 %v699_v42, %v1345_v51  ;;  %v763_v44 = vadd.f32 %v762_v41, %v732_v0 }
 0x105   : > { %v701_v49 = vadd.f32 %v700_v6, %v1355_v56  ;;  %v764_v21 = vadd.f32 %v763_v44, %v733_v43 }
 0x107   : > { %v702_v50 = vadd.f32 %v701_v49, %v1367_v63  ;;  %v765_v53 = vadd.f32 %v764_v21, %v734_v47 }
 0x109   : > { %v766_v57 = vadd.f32 %v765_v53, %v735_v37  ;;  %v703_v51 = vadd.f32 %v702_v50, %v1377_v4  ;;  %v739_v4 = vmul.f32 %v1403_v45, %v1403_v45 }
 0x10b   : > { %v704_v56 = vadd.f32 %v703_v51, %v1389_v12  ;;  %v767_v61 = vadd.f32 %v766_v57, %v736_v55 }
 0x10d   : > { %v705_v62 = vadd.f32 %v704_v56, %v1397_v28  ;;  %v768_v63 = vadd.f32 %v767_v61, %v737_v59 }
 0x10f   : > { %v769_v3 = vadd.f32 %v768_v63, %v738_v1  ;;  %v706_v46 = vadd.f32 %v705_v62, %v1403_v45 }
 0x111   : > { %v770_v5 = vadd.f32 %v769_v3, %v739_v4  ;;  %v707_v12 = vadd.f32 %v706_v46, %v1419_v10 }
 0x113   : > { %708 = vst [vmem:[%s271_s8] sm:$0xff] %v707_v12  ;;  %v771_v28 = vadd.f32 %v770_v5, %v740_v7 }
 0x115   : > { %772 = vst [vmem:[%s275_s22] sm:$0xff] %v771_v28 }
 0x116 PF: > { %s17_s21 = sadd.s32 1, %s1158_s21  }
 0x117   : > { %p14_p5 = scmp.ge.s32.totalorder %s17_s21, 4  }
 0x119   :  { %16 = sbr.rel (!%p14_p5) target bundleno = 1 (0x1), region = 90 }

// kernel: bottleneck_forward.5
= control target key start
LH: loop header
LB: loop body
LE: loop exit
PB: predicated region body
PF: predicated region fallthrough
CT: control target
= control target key end

     0   :  { %s6712_s15 = smov 0   ;;  %s8092_s0 = inlined_call_operand.vmem [shape: bf16[2,18,18,128], index: 0, kind: input, shape index: {}]   ;;  %s8093_s1 = inlined_call_operand.vmem [shape: bf16[9,128,128], index: 1, kind: input, shape index: {}]   ;;  %s8094_s2 = inlined_call_operand.vmem [shape: bf16[512,128], index: 2, kind: output, shape index: {0}]   ;;  %s8095_s3 = inlined_call_operand.vmem [shape: f32[2,8,128], index: 3, kind: output, shape index: {1}]   ;;  %s8096_s4 = inlined_call_operand.vmem [shape: f32[2,8,128], index: 4, kind: output, shape index: {2}]  }
   0x1 LB: > { %s6718_s16 = sadd.s32 4294967295, %s6685_s15   ;;  %p5511_p0 = scmp.ge.s32.totalorder %s6685_s15, 1  ;;  %s6685_s15 = sphi %s6712_s15, %s15_s15  }
   0x2   : > { %p167_p1 = scmp.lt.s32.totalorder %s6685_s15, 3 }
   0x4   : > { %p168_p2 = pnand %p5511_p0, %p167_p1 }
   0x6   : > { %171 = sbr.rel (%p168_p2) target bundleno = 754 (0x2f2), region = 28 }
   0xb   : > { %v6454_v0 = vld [vmem:[%s8093_s1 + $0x38] sm:$0xff]  ;;  %v6453_v1 = vld [vmem:[%s8093_s1 + $0x30] sm:$0xff]  ;;  %v6452_v2 = vld [vmem:[%s8093_s1 + $0x28] sm:$0xff]  ;;  %p201_p3 = scmp.lt.s32.totalorder %s6718_s16, 1  ;;  %vm677_vm0 = vsmask.f32 3328 }
   0xc   : > { %6646 = vmatpush.bf16.msra.mxu1 %v6454_v0  ;;  %6647 = vmatpush.bf16.msra.mxu2 %v6454_v0  ;;  %v6451_v3 = vld [vmem:[%s8093_s1 + $0x20] sm:$0xff]  ;;  %v6450_v4 = vld [vmem:[%s8093_s1 + $0x18] sm:$0xff]  ;;  %v6449_v5 = vld [vmem:[%s8093_s1 + $0x10] sm:$0xff]  ;;  %vm678_vm1 = vsmask.f32 7440  ;;  %vm1474_vm2 = vcmask 1042432  }
   0xd   : > { %6648 = vmatpush.bf16.msra.mxu3 %v6454_v0  ;;  %476 = vmatpush.bf16.msra.mxu0 %v6454_v0  ;;  %s6742_s29 = scalar_select %p201_p3, %s6718_s16, 1  ;;  %v6448_v6 = vld [vmem:[%s8093_s1 + $0x8] sm:$0xff]  ;;  %v6447_v7 = vld [vmem:[%s8093_s1] sm:$0xff]  ;;  %v6470_v8 = vld [vmem:[%s8093_s1 + $0xb8] sm:$0xff]  ;;  %vm1475_vm3 = vcmask 1046532  }
   0xe   : > { %v6494_v9 = vld [vmem:[%s8093_s1 + $0xf8] sm:$0xff]  ;;  %v6469_v16 = vld [vmem:[%s8093_s1 + $0xb0] sm:$0xff]  ;;  %v6468_v20 = vld [vmem:[%s8093_s1 + $0xa8] sm:$0xff]  ;;  %s5513_s7 = sshll.u32 %s6718_s16, 5 }
   0xf   : > { %s6670_s6 = smul.u32 216, %s6742_s29  ;;  %v6462_v14 = vld [vmem:[%s8093_s1 + $0x78] sm:$0xff]  ;;  %v6493_v17 = vld [vmem:[%s8093_s1 + $0xf0] sm:$0xff]  ;;  %v6492_v21 = vld [vmem:[%s8093_s1 + $0xe8] sm:$0xff]  ;;  %p7857_p4 = scmp.lt.s32.totalorder %s5513_s7, 63 }
  0x10   : > { %6649 = vmatpush.bf16.msra.mxu1 %v6453_v1  ;;  %6650 = vmatpush.bf16.msra.mxu2 %v6453_v1  ;;  %v6502_v15 = vld [vmem:[%s8093_s1 + $0x138] sm:$0xff]  ;;  %v6461_v18 = vld [vmem:[%s8093_s1 + $0x70] sm:$0xff]  ;;  %v6460_v22 = vld [vmem:[%s8093_s1 + $0x68] sm:$0xff] }
  0x11   : > { %6651 = vmatpush.bf16.msra.mxu3 %v6453_v1  ;;  %477 = vmatpush.bf16.msra.mxu0 %v6453_v1  ;;  %s6754_s11 = scalar_lea.vmem %s8092_s0, %s6670_s6  ;;  %v6501_v19 = vld [vmem:[%s8093_s1 + $0x130] sm:$0xff]  ;;  %v6500_v23 = vld [vmem:[%s8093_s1 + $0x128] sm:$0xff]  ;;  %v6467_v24 = vld [vmem:[%s8093_s1 + $0xa0] sm:$0xff]  ;;  %s8125_s7 = smov (!%p7857_p4, %s5513_s7), 63 }
  0x12   : > { %v6435_v10 = vld [vmem:[%s6754_s11 + $0x30] sm:$0xff]  ;;  %v6439_v11 = vld [vmem:[%s6754_s11 + $0x60] sm:$0xff]  ;;  %v6466_v28 = vld [vmem:[%s8093_s1 + $0x98] sm:$0xff]  ;;  %s5514_s16 = sshll.u32 %s8125_s7, 2 }
  0x13   : > { %v6443_v12 = vld [vmem:[%s6754_s11 + $0x90] sm:$0xff]  ;;  %v6431_v13 = vld [vmem:[%s6754_s11] sm:$0xff]  ;;  %v6490_v29 = vld [vmem:[%s8093_s1 + $0xd8] sm:$0xff]  ;;  %s7891_s12 = scalar_lea.vmem %s8094_s2, %s5514_s16 }
  0x14   : > { %6652 = vmatpush.bf16.msra.mxu1 %v6452_v2  ;;  %6653 = vmatpush.bf16.msra.mxu2 %v6452_v2  ;;  %v6491_v25 = vld [vmem:[%s8093_s1 + $0xe0] sm:$0xff]  ;;  %v6440_v31 = vld [vmem:[%s6754_s11 + $0x6c] sm:$0xff]  ;;  %v6458_v34 = vld [vmem:[%s8093_s1 + $0x58] sm:$0xff] }
  0x15   : > { %6654 = vmatpush.bf16.msra.mxu3 %v6452_v2  ;;  %478 = vmatpush.bf16.msra.mxu0 %v6452_v2  ;;  %v6459_v26 = vld [vmem:[%s8093_s1 + $0x60] sm:$0xff]  ;;  %v6432_v33 = vld [vmem:[%s6754_s11 + $0xc] sm:$0xff]  ;;  %v6498_v35 = vld [vmem:[%s8093_s1 + $0x118] sm:$0xff] }
  0x16   : > { %v6499_v27 = vld [vmem:[%s8093_s1 + $0x120] sm:$0xff]  ;;  %v6465_v36 = vld [vmem:[%s8093_s1 + $0x90] sm:$0xff]  ;;  %v6464_v40 = vld [vmem:[%s8093_s1 + $0x88] sm:$0xff] }
  0x17   : > { %v6436_v30 = vld [vmem:[%s6754_s11 + $0x3c] sm:$0xff]  ;;  %v6489_v37 = vld [vmem:[%s8093_s1 + $0xd0] sm:$0xff]  ;;  %v6488_v41 = vld [vmem:[%s8093_s1 + $0xc8] sm:$0xff] }
  0x18   : > { %6655 = vmatpush.bf16.msra.mxu1 %v6451_v3  ;;  %6656 = vmatpush.bf16.msra.mxu2 %v6451_v3  ;;  %v6444_v32 = vld [vmem:[%s6754_s11 + $0x9c] sm:$0xff]  ;;  %v6457_v38 = vld [vmem:[%s8093_s1 + $0x50] sm:$0xff]  ;;  %v6456_v42 = vld [vmem:[%s8093_s1 + $0x48] sm:$0xff] }
  0x19   : > { %6657 = vmatpush.bf16.msra.mxu3 %v6451_v3  ;;  %479 = vmatpush.bf16.msra.mxu0 %v6451_v3  ;;  %v6497_v39 = vld [vmem:[%s8093_s1 + $0x110] sm:$0xff]  ;;  %v6496_v43 = vld [vmem:[%s8093_s1 + $0x108] sm:$0xff]  ;;  %v6463_v44 = vld [vmem:[%s8093_s1 + $0x80] sm:$0xff] }
  0x1a   : > { %v6487_v45 = vld [vmem:[%s8093_s1 + $0xc0] sm:$0xff]  ;;  %v6437_v48 = vld [vmem:[%s6754_s11 + $0x48] sm:$0xff]  ;;  %v6441_v49 = vld [vmem:[%s6754_s11 + $0x78] sm:$0xff] }
  0x1b   : > { %v6455_v46 = vld [vmem:[%s8093_s1 + $0x40] sm:$0xff]  ;;  %v6445_v50 = vld [vmem:[%s6754_s11 + $0xa8] sm:$0xff]  ;;  %v6433_v51 = vld [vmem:[%s6754_s11 + $0x18] sm:$0xff] }
  0x1c   : > { %6658 = vmatpush.bf16.msra.mxu1 %v6450_v4  ;;  %6659 = vmatpush.bf16.msra.mxu2 %v6450_v4  ;;  %v6495_v47 = vld [vmem:[%s8093_s1 + $0x100] sm:$0xff]  ;;  %v5869_v54 = vld [vmem:[%s6754_s11 + $0xc] sm:$0xf]  ;;  %v5870_v55 = vld [vmem:[%s6754_s11 + $0x10] sm:$0xf] }
  0x1d   : > { %6660 = vmatpush.bf16.msra.mxu3 %v6450_v4  ;;  %480 = vmatpush.bf16.msra.mxu0 %v6450_v4  ;;  %v629_v52 = vld [vmem:[%s6754_s11] sm:$0xf]  ;;  %v630_v53 = vld [vmem:[%s6754_s11 + $0x4] sm:$0xf]  ;;  %v6534_v56 = vld [vmem:[%s8093_s1 + $0x1b8] sm:$0xff]  ;;  %v2331_v0 = vshrl.u32 %v5869_v54, 16 }
  0x1e   : > { %v6542_v57 = vld [vmem:[%s8093_s1 + $0x1f8] sm:$0xff]  ;;  %v681_v60 = vshrl.u32 %v629_v52, 16  ;;  %v684_v61 = vshll.u32 %v629_v52, 16  ;;  %v690_v62 = vshll.u32 %v630_v53, 16  ;;  %v694_v63 = vshrl.u32 %v630_v53, 16  ;;  %vm6898_vm4 = vmor %vm677_vm0, %vm678_vm1 }
  0x1f   : > { %v6510_v58 = vld [vmem:[%s8093_s1 + $0x178] sm:$0xff]  ;;  %v2334_v1 = vshll.u32 %v5869_v54, 16  ;;  %v2340_v2 = vshll.u32 %v5870_v55, 16  ;;  %v2344_v3 = vshrl.u32 %v5870_v55, 16  ;;  %v631_v4 = vld [vmem:[%s6754_s11 + $0x8] sm:$0x1]  ;;  %vm6902_vm5 = vmor %vm1474_vm2, %vm1475_vm3 }
  0x20   : > { %6661 = vmatpush.bf16.msra.mxu1 %v6449_v5  ;;  %6662 = vmatpush.bf16.msra.mxu2 %v6449_v5  ;;  %v6550_v59 = vld [vmem:[%s8093_s1 + $0x238] sm:$0xff]  ;;  %v634_v53 = vld [vmem:[%s6754_s11 + $0x14] sm:$0x1] }
  0x21   : > { %6663 = vmatpush.bf16.msra.mxu3 %v6449_v5  ;;  %481 = vmatpush.bf16.msra.mxu0 %v6449_v5  ;;  %v683_v5 = vrot.slane %v681_v60, 4 }
  0x24   : > { %6664 = vmatpush.bf16.msra.mxu1 %v6448_v6  ;;  %6665 = vmatpush.bf16.msra.mxu2 %v6448_v6 }
  0x25   : > { %6666 = vmatpush.bf16.msra.mxu3 %v6448_v6  ;;  %482 = vmatpush.bf16.msra.mxu0 %v6448_v6  ;;  %v686_v6 = vrot.slane %v684_v61, 5 }
  0x28   : > { %6667 = vmatpush.bf16.msra.mxu1 %v6447_v7  ;;  %6668 = vmatpush.bf16.msra.mxu2 %v6447_v7 }
  0x29   : > { %6669 = vmatpush.bf16.msra.mxu3 %v6447_v7  ;;  %483 = vmatpush.bf16.msra.mxu0 %v6447_v7  ;;  %v6881_v7 = vrot.slane %v690_v62, 5 }
  0x2b   : > { %504 = vmatmul.bf16.vlgmr.msra.gmra.mxu1 %v6435_v10  ;;  %524 = vmatmul.bf16.vlgmr.msra.gmra.mxu2 %v6439_v11  ;;  %v2333_v10 = vrot.slane %v2331_v0, 4  ;;  %v2336_v11 = vrot.slane %v2334_v1, 5 }
  0x2c   : > { %1750 = vmatpush.bf16.msrb.mxu2 %v6470_v8  ;;  %544 = vmatmul.bf16.vlgmr.msra.gmra.mxu3 %v6443_v12  ;;  %v696_v8 = vrot.slane %v694_v63, 4  ;;  %v6884_v12 = vrot.slane %v2340_v2, 5 }
  0x2d   : > { %2129 = vmatpush.bf16.msrb.mxu3 %v6494_v9  ;;  %484 = vmatmul.bf16.vlgmr.msra.gmra.mxu0 %v6431_v13  ;;  %v1379_v9 = vld [vmem:[%s6754_s11 + $0x4] sm:$0xf]  ;;  %v2346_v13 = vrot.slane %v2344_v3, 4 }
  0x2e   : > { %1225 = vmatpush.bf16.msrb.mxu1 %v6462_v14  ;;  %2875 = vmatpush.bf16.msrb.mxu0 %v6502_v15  ;;  %v5871_v14 = vld [vmem:[%s6754_s11 + $0x14] sm:$0x1]  ;;  %v700_v15 = vshll.u32 %v631_v4, 16 }
  0x30   : > { %1751 = vmatpush.bf16.msrb.mxu2 %v6469_v16  ;;  %v6438_v16 = vld [vmem:[%s6754_s11 + $0x54] sm:$0xff] }
  0x31   : > { %2130 = vmatpush.bf16.msrb.mxu3 %v6493_v17  ;;  %v687_v17 = vor.u32 %v686_v6, %v683_v5  ;;  %v724_v5 = vshll.u32 %v634_v53, 16 }
  0x32   : > { %1226 = vmatpush.bf16.msrb.mxu1 %v6461_v18  ;;  %2876 = vmatpush.bf16.msrb.mxu0 %v6501_v19  ;;  %v697_v18 = vor.u32 %v696_v8, %v6881_v7  ;;  %v1479_v19 = vrot.slane %v1379_v9, 5  ;;  %v1381_v9 = vld [vmem:[%s6754_s11 + $0xc] sm:$0xe] }
  0x34   : > { %1752 = vmatpush.bf16.msrb.mxu2 %v6468_v20  ;;  %v6442_v20 = vld [vmem:[%s6754_s11 + $0x84] sm:$0xff] }
  0x35   : > { %2131 = vmatpush.bf16.msrb.mxu3 %v6492_v21  ;;  %v1378_v21 = vld [vmem:[%s6754_s11] sm:$0xe] }
  0x36   : > { %1227 = vmatpush.bf16.msrb.mxu1 %v6460_v22  ;;  %2877 = vmatpush.bf16.msrb.mxu0 %v6500_v23  ;;  %v2337_v22 = vor.u32 %v2336_v11, %v2333_v10  ;;  %v2347_v23 = vor.u32 %v2346_v13, %v6884_v12 }
  0x38   : > { %1753 = vmatpush.bf16.msrb.mxu2 %v6467_v24  ;;  %v2350_v24 = vshll.u32 %v5871_v14, 16  ;;  %v1383_v14 = vld [vmem:[%s6754_s11 + $0x14] sm:$0x1] }
  0x39   : > { %2132 = vmatpush.bf16.msrb.mxu3 %v6491_v25  ;;  %v6446_v25 = vld [vmem:[%s6754_s11 + $0xb4] sm:$0xff] }
  0x3a   : > { %1228 = vmatpush.bf16.msrb.mxu1 %v6459_v26  ;;  %2878 = vmatpush.bf16.msrb.mxu0 %v6499_v27  ;;  %v6434_v26 = vld [vmem:[%s6754_s11 + $0x24] sm:$0xff] }
  0x3b   : > { %509 = vmatmul.bf16.gmra.mxu1 %v6436_v30  ;;  %529 = vmatmul.bf16.gmra.mxu2 %v6440_v31  ;;  %v1380_v27 = vld [vmem:[%s6754_s11 + $0x8] sm:$0x1]  ;;  %v633_v30 = vld [vmem:[%s6754_s11 + $0x10] sm:$0xf] }
  0x3c   : > { %1754 = vmatpush.bf16.msrb.mxu2 %v6466_v28  ;;  %549 = vmatmul.bf16.gmra.mxu3 %v6444_v32  ;;  %v702_v28 = vrot.slane %v700_v15, 5  ;;  %v688_v32 = vrot.slane %v687_v17, 4  ;;  %v5874_v15 = vld [vmem:[%s6754_s11 + $0x20] sm:$0x1] }
  0x3d   : > { %2133 = vmatpush.bf16.msrb.mxu3 %v6490_v29  ;;  %489 = vmatmul.bf16.gmra.mxu0 %v6432_v33  ;;  %v632_v29 = vld [vmem:[%s6754_s11 + $0xc] sm:$0xf]  ;;  %v698_v33 = vrot.slane %v697_v18, 4 }
  0x3e   : > { %1229 = vmatpush.bf16.msrb.mxu1 %v6458_v34  ;;  %2879 = vmatpush.bf16.msrb.mxu0 %v6498_v35  ;;  %v5661_v34 = vrot.slane %v1378_v21, 9  ;;  %v1481_v35 = vrot.slane %v1479_v19, 4 }
  0x40   : > { %1755 = vmatpush.bf16.msrb.mxu2 %v6465_v36 }
  0x41   : > { %2134 = vmatpush.bf16.msrb.mxu3 %v6489_v37  ;;  %v1482_v37 = vrot.slane %v1380_v27, 5 }
  0x42   : > { %1230 = vmatpush.bf16.msrb.mxu1 %v6457_v38  ;;  %2880 = vmatpush.bf16.msrb.mxu0 %v6497_v39  ;;  %v2338_v38 = vrot.slane %v2337_v22, 4  ;;  %v2348_v39 = vrot.slane %v2347_v23, 4  ;;  %v5662_v23 = vrot.slane %v1381_v9, 9 }
  0x44   : > { %1756 = vmatpush.bf16.msrb.mxu2 %v6464_v40  ;;  %v2352_v40 = vrot.slane %v2350_v24, 5 }
  0x45   : > { %2135 = vmatpush.bf16.msrb.mxu3 %v6488_v41  ;;  %v705_v41 = vshrl.u32 %v632_v29, 16 }
  0x46   : > { %1231 = vmatpush.bf16.msrb.mxu1 %v6456_v42  ;;  %2881 = vmatpush.bf16.msrb.mxu0 %v6496_v43  ;;  %v708_v42 = vshll.u32 %v632_v29, 16  ;;  %v714_v43 = vshll.u32 %v633_v30, 16  ;;  %v2353_v52 = vsel %vm6898_vm4, %v2348_v39, %v2352_v40  ;;  %v635_v29 = vld [vmem:[%s6754_s11 + $0x18] sm:$0xf]  ;;  %v6541_v39 = vld [vmem:[%s8093_s1 + $0x1f0] sm:$0xff] }
  0x47   : > { %v707_v54 = vrot.slane %v705_v41, 4  ;;  %v2764_v4 = vunpack.c.l.b16 %v2353_v52  ;;  %v6509_v40 = vld [vmem:[%s8093_s1 + $0x170] sm:$0xff] }
  0x48   : > { %1757 = vmatpush.bf16.msrb.mxu2 %v6463_v44  ;;  %v718_v44 = vshrl.u32 %v633_v30, 16  ;;  %v710_v55 = vrot.slane %v708_v42, 5  ;;  %v636_v30 = vld [vmem:[%s6754_s11 + $0x1c] sm:$0xf] }
  0x49   : > { %2136 = vmatpush.bf16.msrb.mxu3 %v6487_v45  ;;  %v693_v45 = vsel %vm6898_vm4, %v688_v32, %v6881_v7  ;;  %v5875_v32 = vld [vmem:[%s6754_s11 + $0x24] sm:$0xf] }
  0x4a   : > { %1232 = vmatpush.bf16.msrb.mxu1 %v6455_v46  ;;  %2882 = vmatpush.bf16.msrb.mxu0 %v6495_v47  ;;  %v1480_v46 = vsel %vm6902_vm5, %v5661_v34, %v1479_v19  ;;  %v5872_v47 = vld [vmem:[%s6754_s11 + $0x18] sm:$0xf]  ;;  %v1113_v63 = vunpack.c.l.b16 %v693_v45  ;;  %v711_v6 = vor.u32 %v710_v55, %v707_v54  ;;  %v726_v19 = vrot.slane %v724_v5, 5  ;;  %v6549_v45 = vld [vmem:[%s8093_s1 + $0x230] sm:$0xff] }
  0x4b   : > { %514 = vmatmul.bf16.gmra.mxu1 %v6437_v48  ;;  %534 = vmatmul.bf16.gmra.mxu2 %v6441_v49  ;;  %v5873_v48 = vld [vmem:[%s6754_s11 + $0x1c] sm:$0xf]  ;;  %v703_v49 = vsel %vm6898_vm4, %v698_v33, %v702_v28  ;;  %v2358_v60 = vshll.u32 %v5872_v47, 16  ;;  %v1638_v1 = vunpack.c.l.b16 %v1480_v46  ;;  %v2374_v28 = vshll.u32 %v5874_v15, 16  ;;  %v5876_v33 = vld [vmem:[%s6754_s11 + $0x28] sm:$0xf] }
  0x4c   : > { %554 = vmatmul.bf16.gmra.mxu3 %v6445_v50  ;;  %3776 = vmatpush.bf16.msra.mxu2 %v6534_v56  ;;  %v1483_v50 = vsel %vm6902_vm5, %v1481_v35, %v1482_v37  ;;  %v6923_v56 = vrot.slane %v714_v43, 5  ;;  %v2364_v61 = vshll.u32 %v5873_v48, 16  ;;  %v2368_v62 = vshrl.u32 %v5873_v48, 16  ;;  %v1384_v15 = vld [vmem:[%s6754_s11 + $0x18] sm:$0xe] }
  0x4d   : > { %494 = vmatmul.bf16.gmra.mxu0 %v6433_v51  ;;  %4522 = vmatpush.bf16.msra.mxu3 %v6542_v57  ;;  %v2343_v51 = vsel %vm6898_vm4, %v2338_v38, %v6884_v12  ;;  %v720_v57 = vrot.slane %v718_v44, 4  ;;  %v1114_v0 = vunpack.c.l.b16 %v703_v49  ;;  %v1639_v2 = vunpack.c.l.b16 %v1483_v50  ;;  %v6533_v38 = vld [vmem:[%s8093_s1 + $0x1b0] sm:$0xff] }
  0x4e   : > { %3397 = vmatpush.bf16.msra.mxu1 %v6510_v58  ;;  %5044 = vmatpush.bf16.msra.mxu0 %v6550_v59  ;;  %v1382_v58 = vld [vmem:[%s6754_s11 + $0x10] sm:$0xf]  ;;  %v2355_v59 = vshrl.u32 %v5872_v47, 16  ;;  %v2763_v3 = vunpack.c.l.b16 %v2343_v51  ;;  %v2360_v11 = vrot.slane %v2358_v60, 5  ;;  %v6928_v12 = vrot.slane %v2364_v61, 5 }
  0x4f   : > { %v721_v7 = vor.u32 %v720_v57, %v6923_v56  ;;  %v1486_v8 = vrot.slane %v1382_v58, 5  ;;  %v2370_v13 = vrot.slane %v2368_v62, 4  ;;  %v1670_v17 = vpack.c.b16 %v1639_v2, %v1638_v1  ;;  %v637_v60 = vld [vmem:[%s6754_s11 + $0x20] sm:$0x1]  ;;  %v1385_v1 = vld [vmem:[%s6754_s11 + $0x1c] sm:$0xf] }
  0x50   : > { %v2357_v10 = vrot.slane %v2355_v59, 4  ;;  %v2795_v18 = vpack.c.b16 %v2764_v4, %v2763_v3  ;;  %v712_v21 = vrot.slane %v711_v6, 4  ;;  %v2376_v44 = vrot.slane %v2374_v28, 5  ;;  %3777 = vmatpush.bf16.msra.mxu2 %v6533_v38 }
  0x51   : > { %v722_v22 = vrot.slane %v721_v7, 4  ;;  %v1488_v24 = vrot.slane %v1486_v8, 4  ;;  %v2371_v27 = vor.u32 %v2370_v13, %v6928_v12  ;;  %v1487_v37 = vsel %vm6902_vm5, %v5662_v23, %v1486_v8  ;;  %4523 = vmatpush.bf16.msra.mxu3 %v6541_v39  ;;  %v5877_v8 = vld [vmem:[%s6754_s11 + $0x2c] sm:$0x1]  ;;  %v638_v23 = vld [vmem:[%s6754_s11 + $0x24] sm:$0xf] }
  0x52   : > { %v717_v34 = vsel %vm6898_vm4, %v712_v21, %v6923_v56  ;;  %v729_v46 = vshrl.u32 %v635_v29, 16  ;;  %v732_v47 = vshll.u32 %v635_v29, 16  ;;  %v738_v48 = vshll.u32 %v636_v30, 16  ;;  %3398 = vmatpush.bf16.msra.mxu1 %v6509_v40  ;;  %5045 = vmatpush.bf16.msra.mxu0 %v6549_v45  ;;  %v1386_v21 = vld [vmem:[%s6754_s11 + $0x20] sm:$0x1] }
  0x53   : > { %v727_v35 = vsel %vm6898_vm4, %v722_v22, %v726_v19  ;;  %v2372_v43 = vrot.slane %v2371_v27, 4  ;;  %v742_v49 = vshrl.u32 %v636_v30, 16  ;;  %v2379_v50 = vshrl.u32 %v5875_v32, 16  ;;  %v6472_v19 = vld [vmem:[%s6754_s11 + $0x18] sm:$0xff] }
  0x54   : > { %v2382_v51 = vshll.u32 %v5875_v32, 16  ;;  %v2388_v52 = vshll.u32 %v5876_v33, 16  ;;  %v2392_v53 = vshrl.u32 %v5876_v33, 16  ;;  %v1115_v54 = vunpack.c.l.b16 %v717_v34 }
  0x55   : > { %v1116_v55 = vunpack.c.l.b16 %v727_v35  ;;  %v1640_v56 = vunpack.c.l.b16 %v1487_v37  ;;  %v2377_v59 = vsel %vm6898_vm4, %v2372_v43, %v2376_v44  ;;  %v731_v61 = vrot.slane %v729_v46, 4 }
  0x56   : > { %v734_v62 = vrot.slane %v732_v47, 5  ;;  %v2381_v2 = vrot.slane %v2379_v50, 4  ;;  %v2384_v3 = vrot.slane %v2382_v51, 5  ;;  %v2390_v4 = vrot.slane %v2388_v52, 5  ;;  %v640_v51 = vld [vmem:[%s6754_s11 + $0x2c] sm:$0x1] }
  0x57   : > { %v2394_v5 = vrot.slane %v2392_v53, 4  ;;  %v2766_v7 = vunpack.c.l.b16 %v2377_v59  ;;  %v748_v9 = vshll.u32 %v637_v60, 16  ;;  %v1493_v13 = vrot.slane %v1385_v1, 5  ;;  %v1388_v1 = vld [vmem:[%s6754_s11 + $0x28] sm:$0xf] }
  0x58   : > { %v5663_v27 = vrot.slane %v1384_v15, 9  ;;  %v1496_v29 = vrot.slane %v1386_v21, 5  ;;  %v753_v34 = vshrl.u32 %v638_v23, 16  ;;  %v756_v35 = vshll.u32 %v638_v23, 16  ;;  %v641_v21 = vld [vmem:[%s6754_s11 + $0x30] sm:$0xf] }
  0x59   : > { %v750_v22 = vrot.slane %v748_v9, 5  ;;  %v1495_v28 = vrot.slane %v1493_v13, 4  ;;  %v6473_v9 = vld [vmem:[%s6754_s11 + $0x24] sm:$0xff] }
  0x5a   : > { %v1494_v43 = vsel %vm6902_vm5, %v5663_v27, %v1493_v13  ;;  %v755_v47 = vrot.slane %v753_v34, 4  ;;  %v1387_v13 = vld [vmem:[%s6754_s11 + $0x24] sm:$0xe]  ;;  %v5881_v27 = vld [vmem:[%s6754_s11 + $0x3c] sm:$0xf]  ;;  %v777_v34 = vshrl.u32 %v641_v21, 16 }
  0x5b   : > { %519 = vmatmul.bf16.gmra.mxu1 %v6438_v16  ;;  %539 = vmatmul.bf16.gmra.mxu2 %v6442_v20  ;;  %v1145_v16 = vpack.c.b16 %v1114_v0, %v1113_v63  ;;  %v6471_v20 = vld [vmem:[%s6754_s11 + $0xc] sm:$0xff]  ;;  %v740_v63 = vrot.slane %v738_v48, 5  ;;  %v744_v0 = vrot.slane %v742_v49, 4  ;;  %v1497_v44 = vsel %vm6902_vm5, %v1495_v28, %v1496_v29 }
  0x5c   : > { %559 = vmatmul.bf16.gmra.mxu3 %v6446_v25  ;;  %v1489_v25 = vrot.slane %v1383_v14, 5  ;;  %v758_v48 = vrot.slane %v756_v35, 5  ;;  %v1643_v59 = vunpack.c.l.b16 %v1497_v44  ;;  %v6540_v28 = vld [vmem:[%s8093_s1 + $0x1e8] sm:$0xff]  ;;  %v780_v35 = vshll.u32 %v641_v21, 16 }
  0x5d   : > { %499 = vmatmul.bf16.gmra.mxu0 %v6434_v26  ;;  %v2361_v26 = vor.u32 %v2360_v11, %v2357_v10  ;;  %v1146_v10 = vpack.c.b16 %v1116_v55, %v1115_v54  ;;  %v735_v11 = vor.u32 %v734_v62, %v731_v61  ;;  %4524 = vmatpush.bf16.msra.mxu3 %v6540_v28 }
  0x5e   : > { %v1490_v41 = vsel %vm6902_vm5, %v1488_v24, %v1489_v25  ;;  %v639_v24 = vld [vmem:[%s6754_s11 + $0x28] sm:$0xf]  ;;  %v759_v62 = vor.u32 %v758_v48, %v755_v47 }
  0x5f   : > { %v2362_v42 = vrot.slane %v2361_v26, 4  ;;  %v1641_v57 = vunpack.c.l.b16 %v1490_v41  ;;  %v736_v25 = vrot.slane %v735_v11, 4  ;;  %v762_v37 = vshll.u32 %v639_v24, 16  ;;  %v5878_v41 = vld [vmem:[%s6754_s11 + $0x30] sm:$0xf] }
  0x60   : > { %v766_v38 = vshrl.u32 %v639_v24, 16  ;;  %v2403_v52 = vshrl.u32 %v5878_v41, 16  ;;  %v2406_v53 = vshll.u32 %v5878_v41, 16  ;;  %v760_v11 = vrot.slane %v759_v62, 4 }
  0x61   : > { %v2367_v58 = vsel %vm6898_vm4, %v2362_v42, %v6928_v12  ;;  %v745_v12 = vor.u32 %v744_v0, %v740_v63  ;;  %v1671_v14 = vpack.c.b16 %v1641_v57, %v1640_v56  ;;  %v741_v39 = vsel %vm6898_vm4, %v736_v25, %v740_v63  ;;  %v5879_v42 = vld [vmem:[%s6754_s11 + $0x34] sm:$0xf] }
  0x62   : > { %v2765_v6 = vunpack.c.l.b16 %v2367_v58  ;;  %v764_v49 = vrot.slane %v762_v37, 5  ;;  %v768_v50 = vrot.slane %v766_v38, 4  ;;  %v2412_v54 = vshll.u32 %v5879_v42, 16 }
  0x63   : > { %v746_v26 = vrot.slane %v745_v12, 4  ;;  %v2416_v55 = vshrl.u32 %v5879_v42, 16  ;;  %v1117_v56 = vunpack.c.l.b16 %v741_v39  ;;  %v1642_v58 = vunpack.c.l.b16 %v1494_v43  ;;  %v5882_v39 = vld [vmem:[%s6754_s11 + $0x40] sm:$0xf]  ;;  %v6508_v42 = vld [vmem:[%s8093_s1 + $0x168] sm:$0xff] }
  0x64   : > { %v769_v63 = vor.u32 %v768_v50, %v764_v49  ;;  %v772_v0 = vshll.u32 %v640_v51, 16  ;;  %v765_v23 = vsel %vm6898_vm4, %v760_v11, %v764_v49  ;;  %v2430_v41 = vshll.u32 %v5881_v27, 16  ;;  %3399 = vmatpush.bf16.msra.mxu1 %v6508_v42  ;;  %v6548_v51 = vld [vmem:[%s8093_s1 + $0x228] sm:$0xff] }
  0x65   : > { %v751_v40 = vsel %vm6898_vm4, %v746_v26, %v750_v22  ;;  %v642_v22 = vld [vmem:[%s6754_s11 + $0x34] sm:$0xf]  ;;  %v6532_v26 = vld [vmem:[%s8093_s1 + $0x1a8] sm:$0xff]  ;;  %v1119_v43 = vunpack.c.l.b16 %v765_v23  ;;  %v2436_v49 = vshll.u32 %v5882_v39, 16  ;;  %v2440_v50 = vshrl.u32 %v5882_v39, 16  ;;  %5046 = vmatpush.bf16.msra.mxu0 %v6548_v51 }
  0x66   : > { %v1118_v57 = vunpack.c.l.b16 %v751_v40  ;;  %v774_v12 = vrot.slane %v772_v0, 5  ;;  %v770_v15 = vrot.slane %v769_v63, 4  ;;  %v786_v37 = vshll.u32 %v642_v22, 16  ;;  %3778 = vmatpush.bf16.msra.mxu2 %v6532_v26  ;;  %v1391_v63 = vld [vmem:[%s6754_s11 + $0x34] sm:$0xf] }
  0x67   : > { %v790_v38 = vshrl.u32 %v642_v22, 16  ;;  %v2427_v40 = vshrl.u32 %v5881_v27, 16  ;;  %v2438_v0 = vrot.slane %v2436_v49, 5 }
  0x68   : > { %v775_v29 = vsel %vm6898_vm4, %v770_v15, %v774_v12  ;;  %v1390_v12 = vld [vmem:[%s6754_s11 + $0x30] sm:$0xe] }
  0x69   : > { %v1120_v44 = vunpack.c.l.b16 %v775_v29  ;;  %v5884_v29 = vld [vmem:[%s6754_s11 + $0x48] sm:$0xf] }
  0x6a   : > { %v2451_v42 = vshrl.u32 %v5884_v29, 16 }
  0x6b   : > { %1233 = vmatmul.bf16.vlgmr.msrb.gmra.mxu1 %v1145_v16  ;;  %1758 = vmatmul.bf16.vlgmr.msrb.gmra.mxu2 %v1670_v17  ;;  %v2385_v16 = vor.u32 %v2384_v3, %v2381_v2  ;;  %v2395_v17 = vor.u32 %v2394_v5, %v2390_v4  ;;  %v2405_v2 = vrot.slane %v2403_v52, 4  ;;  %v2408_v3 = vrot.slane %v2406_v53, 5 }
  0x6c   : > { %2137 = vmatmul.bf16.vlgmr.msrb.gmra.mxu3 %v6471_v20  ;;  %v2796_v20 = vpack.c.b16 %v2766_v7, %v2765_v6  ;;  %v2418_v5 = vrot.slane %v2416_v55, 4  ;;  %v5880_v6 = vld [vmem:[%s6754_s11 + $0x38] sm:$0x1]  ;;  %v1147_v7 = vpack.c.b16 %v1118_v57, %v1117_v56  ;;  %v779_v52 = vrot.slane %v777_v34, 4  ;;  %v5885_v34 = vld [vmem:[%s6754_s11 + $0x4c] sm:$0xf] }
  0x6d   : > { %2883 = vmatmul.bf16.vlgmr.msrb.gmra.mxu0 %v2795_v18  ;;  %v2398_v18 = vshll.u32 %v5877_v8, 16  ;;  %v2386_v30 = vrot.slane %v2385_v16, 4  ;;  %v2396_v32 = vrot.slane %v2395_v17, 4  ;;  %v1672_v8 = vpack.c.b16 %v1643_v59, %v1642_v58  ;;  %v1389_v16 = vld [vmem:[%s6754_s11 + $0x2c] sm:$0x1] }
  0x6e   : > { %v2409_v17 = vor.u32 %v2408_v3, %v2405_v2  ;;  %v1503_v25 = vrot.slane %v1389_v16, 5  ;;  %v782_v53 = vrot.slane %v780_v35, 5  ;;  %v792_v55 = vrot.slane %v790_v38, 4  ;;  %v643_v58 = vld [vmem:[%s6754_s11 + $0x38] sm:$0x1] }
  0x6f   : > { %v2400_v33 = vrot.slane %v2398_v18, 5  ;;  %v2391_v45 = vsel %vm6898_vm4, %v2386_v30, %v2390_v4  ;;  %v6988_v4 = vrot.slane %v2412_v54, 5  ;;  %v788_v54 = vrot.slane %v786_v37, 5  ;;  %v644_v16 = vld [vmem:[%s6754_s11 + $0x3c] sm:$0xf] }
  0x70   : > { %v2767_v60 = vunpack.c.l.b16 %v2391_v45  ;;  %v2410_v30 = vrot.slane %v2409_v17, 4  ;;  %v2429_v59 = vrot.slane %v2427_v40, 4  ;;  %v783_v2 = vor.u32 %v782_v53, %v779_v52 }
  0x71   : > { %v2401_v46 = vsel %vm6898_vm4, %v2396_v32, %v2400_v33  ;;  %v2419_v18 = vor.u32 %v2418_v5, %v6988_v4  ;;  %v793_v3 = vor.u32 %v792_v55, %v788_v54  ;;  %v5883_v5 = vld [vmem:[%s6754_s11 + $0x44] sm:$0x1]  ;;  %v804_v26 = vshll.u32 %v644_v16, 16  ;;  %v1394_v55 = vld [vmem:[%s6754_s11 + $0x40] sm:$0xf] }
  0x72   : > { %v2768_v61 = vunpack.c.l.b16 %v2401_v46  ;;  %v2415_v47 = vsel %vm6898_vm4, %v2410_v30, %v6988_v4  ;;  %v796_v4 = vshll.u32 %v643_v58, 16  ;;  %v2446_v15 = vshll.u32 %v5883_v5, 16  ;;  %v1395_v5 = vld [vmem:[%s6754_s11 + $0x44] sm:$0x1] }
  0x73   : > { %v2420_v32 = vrot.slane %v2419_v18, 4  ;;  %v784_v17 = vrot.slane %v783_v2, 4  ;;  %v794_v18 = vrot.slane %v793_v3, 4  ;;  %v2453_v58 = vrot.slane %v2451_v42, 4  ;;  %v5886_v2 = vld [vmem:[%s6754_s11 + $0x50] sm:$0x1] }
  0x74   : > { %v2448_v28 = vrot.slane %v2446_v15, 5 }
  0x75   : > { %v789_v30 = vsel %vm6898_vm4, %v784_v17, %v788_v54  ;;  %v646_v54 = vld [vmem:[%s6754_s11 + $0x44] sm:$0x1] }
  0x7b   : > { %1238 = vmatmul.bf16.gmra.mxu1 %v1146_v10  ;;  %1763 = vmatmul.bf16.gmra.mxu2 %v1671_v14  ;;  %v2797_v10 = vpack.c.b16 %v2768_v61, %v2767_v60  ;;  %v1500_v14 = vrot.slane %v1388_v1, 5  ;;  %v2432_v60 = vrot.slane %v2430_v41, 5  ;;  %v2769_v61 = vunpack.c.l.b16 %v2415_v47 }
  0x7c   : > { %2142 = vmatmul.bf16.gmra.mxu3 %v6472_v19  ;;  %v2422_v19 = vshll.u32 %v5880_v6, 16  ;;  %v2442_v1 = vrot.slane %v2440_v50, 4  ;;  %v1148_v6 = vpack.c.b16 %v1120_v44, %v1119_v43  ;;  %v806_v41 = vrot.slane %v804_v26, 5  ;;  %v5888_v26 = vld [vmem:[%s6754_s11 + $0x58] sm:$0xf] }
  0x7d   : > { %2888 = vmatmul.bf16.gmra.mxu0 %v2796_v20  ;;  %v5664_v20 = vrot.slane %v1387_v13, 9  ;;  %v1502_v24 = vrot.slane %v1500_v14, 4  ;;  %v1392_v13 = vld [vmem:[%s6754_s11 + $0x38] sm:$0x1]  ;;  %v2454_v43 = vshll.u32 %v5884_v29, 16  ;;  %v1121_v47 = vunpack.c.l.b16 %v789_v30 }
  0x7e   : > { %v2424_v33 = vrot.slane %v2422_v19, 5  ;;  %v798_v19 = vrot.slane %v796_v4, 5  ;;  %v1510_v22 = vrot.slane %v1392_v13, 5  ;;  %v2484_v42 = vshll.u32 %v5888_v26, 16 }
  0x7f   : > { %v1501_v45 = vsel %vm6902_vm5, %v5664_v20, %v1500_v14  ;;  %v1504_v46 = vsel %vm6902_vm5, %v1502_v24, %v1503_v25  ;;  %v2443_v14 = vor.u32 %v2442_v1, %v2438_v0  ;;  %v5665_v20 = vrot.slane %v1390_v12, 9  ;;  %v645_v24 = vld [vmem:[%s6754_s11 + $0x40] sm:$0xf] }
  0x80   : > { %v2425_v48 = vsel %vm6898_vm4, %v2420_v32, %v2424_v33  ;;  %v1644_v56 = vunpack.c.l.b16 %v1501_v45  ;;  %v1645_v57 = vunpack.c.l.b16 %v1504_v46  ;;  %v801_v25 = vshrl.u32 %v644_v16, 16 }
  0x81   : > { %v2770_v62 = vunpack.c.l.b16 %v2425_v48  ;;  %v2444_v27 = vrot.slane %v2443_v14, 4  ;;  %v810_v32 = vshll.u32 %v645_v24, 16  ;;  %v814_v33 = vshrl.u32 %v645_v24, 16 }
  0x82   : > { %v799_v35 = vsel %vm6898_vm4, %v794_v18, %v798_v19  ;;  %v803_v40 = vrot.slane %v801_v25, 4  ;;  %v2460_v45 = vshll.u32 %v5885_v34, 16  ;;  %v2464_v46 = vshrl.u32 %v5885_v34, 16  ;;  %v647_v19 = vld [vmem:[%s6754_s11 + $0x48] sm:$0xf]  ;;  %v6531_v25 = vld [vmem:[%s8093_s1 + $0x1a0] sm:$0xff] }
  0x83   : > { %v2798_v11 = vpack.c.b16 %v2770_v62, %v2769_v61  ;;  %v2449_v44 = vsel %vm6898_vm4, %v2444_v27, %v2448_v28  ;;  %v7046_v48 = vrot.slane %v810_v32, 5  ;;  %v816_v49 = vrot.slane %v814_v33, 4  ;;  %v6539_v27 = vld [vmem:[%s8093_s1 + $0x1e0] sm:$0xff]  ;;  %3779 = vmatpush.bf16.msra.mxu2 %v6531_v25 }
  0x84   : > { %v1122_v50 = vunpack.c.l.b16 %v799_v35  ;;  %v7051_v61 = vrot.slane %v2460_v45, 5  ;;  %v2466_v62 = vrot.slane %v2464_v46, 4  ;;  %v1514_v1 = vrot.slane %v1394_v55, 5  ;;  %4525 = vmatpush.bf16.msra.mxu3 %v6539_v27 }
  0x85   : > { %v2470_v14 = vshll.u32 %v5886_v2, 16  ;;  %v1517_v18 = vrot.slane %v1395_v5, 5  ;;  %v825_v30 = vshrl.u32 %v647_v19, 16  ;;  %v828_v32 = vshll.u32 %v647_v19, 16  ;;  %v5889_v2 = vld [vmem:[%s6754_s11 + $0x5c] sm:$0x1] }
  0x86   : > { %v1149_v3 = vpack.c.b16 %v1122_v50, %v1121_v47  ;;  %v2467_v13 = vor.u32 %v2466_v62, %v7051_v61  ;;  %v1516_v17 = vrot.slane %v1514_v1, 4  ;;  %v7104_v62 = vrot.slane %v2484_v42, 5  ;;  %v6476_v19 = vld [vmem:[%s6754_s11 + $0x48] sm:$0xff] }
  0x87   : > { %v2472_v29 = vrot.slane %v2470_v14, 5  ;;  %v1398_v14 = vld [vmem:[%s6754_s11 + $0x50] sm:$0x1] }
  0x88   : > { %v2468_v28 = vrot.slane %v2467_v13, 4  ;;  %v1518_v35 = vsel %vm6902_vm5, %v1516_v17, %v1517_v18  ;;  %v2494_v17 = vshll.u32 %v5889_v2, 16  ;;  %v1524_v27 = vrot.slane %v1398_v14, 5 }
  0x89   : > { %v1649_v55 = vunpack.c.l.b16 %v1518_v35 }
  0x8a   : > { %v2473_v50 = vsel %vm6898_vm4, %v2468_v28, %v2472_v29 }
  0x8b   : > { %1243 = vmatmul.bf16.gmra.mxu1 %v1147_v7  ;;  %1768 = vmatmul.bf16.gmra.mxu2 %v1672_v8  ;;  %v1673_v7 = vpack.c.b16 %v1645_v57, %v1644_v56  ;;  %v1507_v8 = vrot.slane %v1391_v63, 5  ;;  %v2772_v56 = vunpack.c.l.b16 %v2449_v44  ;;  %v807_v57 = vor.u32 %v806_v41, %v803_v40  ;;  %v6507_v44 = vld [vmem:[%s8093_s1 + $0x160] sm:$0xff] }
  0x8c   : > { %2147 = vmatmul.bf16.gmra.mxu3 %v6473_v9  ;;  %v2433_v9 = vor.u32 %v2432_v60, %v2429_v59  ;;  %v2456_v59 = vrot.slane %v2454_v43, 5  ;;  %v1393_v60 = vld [vmem:[%s6754_s11 + $0x3c] sm:$0xe]  ;;  %v817_v63 = vor.u32 %v816_v49, %v7046_v48  ;;  %v2488_v43 = vshrl.u32 %v5888_v26, 16  ;;  %3400 = vmatpush.bf16.msra.mxu1 %v6507_v44 }
  0x8d   : > { %2893 = vmatmul.bf16.gmra.mxu0 %v2797_v10  ;;  %v6474_v10 = vld [vmem:[%s6754_s11 + $0x30] sm:$0xff]  ;;  %v1509_v21 = vrot.slane %v1507_v8, 4  ;;  %v1508_v37 = vsel %vm6902_vm5, %v5665_v20, %v1507_v8  ;;  %v648_v20 = vld [vmem:[%s6754_s11 + $0x4c] sm:$0xf] }
  0x8e   : > { %v2434_v23 = vrot.slane %v2433_v9, 4  ;;  %v1646_v51 = vunpack.c.l.b16 %v1508_v37  ;;  %v808_v9 = vrot.slane %v807_v57, 4  ;;  %v818_v15 = vrot.slane %v817_v63, 4 }
  0x8f   : > { %v1511_v38 = vsel %vm6902_vm5, %v1509_v21, %v1510_v22  ;;  %v5887_v21 = vld [vmem:[%s6754_s11 + $0x54] sm:$0xf]  ;;  %v834_v37 = vshll.u32 %v648_v20, 16  ;;  %v2490_v63 = vrot.slane %v2488_v43, 4 }
  0x90   : > { %v2439_v39 = vsel %vm6898_vm4, %v2434_v23, %v2438_v0  ;;  %v1647_v52 = vunpack.c.l.b16 %v1511_v38  ;;  %v820_v0 = vshll.u32 %v646_v54, 16  ;;  %v813_v22 = vsel %vm6898_vm4, %v808_v9, %v7046_v48  ;;  %v1396_v9 = vld [vmem:[%s6754_s11 + $0x48] sm:$0xe] }
  0x91   : > { %v2771_v53 = vunpack.c.l.b16 %v2439_v39  ;;  %v838_v38 = vshrl.u32 %v648_v20, 16  ;;  %v2475_v40 = vshrl.u32 %v5887_v21, 16  ;;  %v2478_v41 = vshll.u32 %v5887_v21, 16 }
  0x92   : > { %v1674_v4 = vpack.c.b16 %v1647_v52, %v1646_v51  ;;  %v822_v16 = vrot.slane %v820_v0, 5  ;;  %v1123_v46 = vunpack.c.l.b16 %v813_v22  ;;  %v827_v51 = vrot.slane %v825_v30, 4 }
  0x93   : > { %v2799_v8 = vpack.c.b16 %v2772_v56, %v2771_v53  ;;  %v830_v52 = vrot.slane %v828_v32, 5  ;;  %v6547_v53 = vld [vmem:[%s8093_s1 + $0x220] sm:$0xff]  ;;  %v649_v56 = vld [vmem:[%s6754_s11 + $0x50] sm:$0x1]  ;;  %v7101_v57 = vrot.slane %v834_v37, 5  ;;  %v2496_v30 = vrot.slane %v2494_v17, 5 }
  0x94   : > { %v823_v34 = vsel %vm6898_vm4, %v818_v15, %v822_v16  ;;  %5047 = vmatpush.bf16.msra.mxu0 %v6547_v53  ;;  %v2491_v16 = vor.u32 %v2490_v63, %v7104_v62  ;;  %v650_v32 = vld [vmem:[%s6754_s11 + $0x54] sm:$0xf] }
  0x95   : > { %v1124_v54 = vunpack.c.l.b16 %v823_v34  ;;  %v651_v34 = vld [vmem:[%s6754_s11 + $0x58] sm:$0xf]  ;;  %v849_v44 = vshrl.u32 %v650_v32, 16 }
  0x96   : > { %v2492_v29 = vrot.slane %v2491_v16, 4 }
  0x97   : > { %v1150_v5 = vpack.c.b16 %v1124_v54, %v1123_v46  ;;  %v852_v46 = vshll.u32 %v650_v32, 16  ;;  %v851_v63 = vrot.slane %v849_v44, 4  ;;  %v1401_v32 = vld [vmem:[%s6754_s11 + $0x5c] sm:$0x1] }
  0x9b   : > { %1248 = vmatmul.bf16.gmra.mxu1 %v1148_v6  ;;  %1773 = vmatmul.bf16.gmra.mxu2 %v1673_v7  ;;  %v6475_v7 = vld [vmem:[%s6754_s11 + $0x3c] sm:$0xff] }
  0x9c   : > { %2152 = vmatmul.bf16.gmra.mxu3 %v6474_v10  ;;  %v5666_v10 = vrot.slane %v1393_v60, 9  ;;  %v2477_v60 = vrot.slane %v2475_v40, 4  ;;  %v5891_v40 = vld [vmem:[%s6754_s11 + $0x64] sm:$0xf] }
  0x9d   : > { %2898 = vmatmul.bf16.gmra.mxu0 %v2798_v11  ;;  %v2457_v11 = vor.u32 %v2456_v59, %v2453_v58  ;;  %v840_v58 = vrot.slane %v838_v38, 4  ;;  %v1397_v59 = vld [vmem:[%s6754_s11 + $0x4c] sm:$0xf]  ;;  %v5890_v38 = vld [vmem:[%s6754_s11 + $0x60] sm:$0xf] }
  0x9e   : > { %v1515_v23 = vsel %vm6902_vm5, %v5666_v10, %v1514_v1  ;;  %v2774_v1 = vunpack.c.l.b16 %v2473_v50  ;;  %v1521_v10 = vrot.slane %v1397_v59, 5  ;;  %v2497_v50 = vsel %vm6898_vm4, %v2492_v29, %v2496_v30  ;;  %v6477_v29 = vld [vmem:[%s6754_s11 + $0x54] sm:$0xff] }
  0x9f   : > { %v2458_v24 = vrot.slane %v2457_v11, 4  ;;  %v1648_v47 = vunpack.c.l.b16 %v1515_v23  ;;  %v5667_v23 = vrot.slane %v1396_v9, 9  ;;  %v2499_v54 = vshrl.u32 %v5890_v38, 16  ;;  %v5892_v9 = vld [vmem:[%s6754_s11 + $0x68] sm:$0x1] }
  0xa0   : > { %v1523_v26 = vrot.slane %v1521_v10, 4  ;;  %v2776_v2 = vunpack.c.l.b16 %v2497_v50 }
  0xa1   : > { %v2463_v49 = vsel %vm6898_vm4, %v2458_v24, %v7051_v61  ;;  %v2480_v61 = vrot.slane %v2478_v41, 5  ;;  %v1675_v13 = vpack.c.b16 %v1649_v55, %v1648_v47  ;;  %v1522_v37 = vsel %vm6902_vm5, %v5667_v23, %v1521_v10 }
  0xa2   : > { %v2773_v0 = vunpack.c.l.b16 %v2463_v49  ;;  %v1525_v43 = vsel %vm6902_vm5, %v1523_v26, %v1524_v27  ;;  %v2502_v55 = vshll.u32 %v5890_v38, 16  ;;  %v2501_v10 = vrot.slane %v2499_v54, 4  ;;  %v653_v38 = vld [vmem:[%s6754_s11 + $0x60] sm:$0xf] }
  0xa3   : > { %v2481_v15 = vor.u32 %v2480_v61, %v2477_v60  ;;  %v1650_v60 = vunpack.c.l.b16 %v1522_v37  ;;  %v2518_v27 = vshll.u32 %v5892_v9, 16 }
  0xa4   : > { %v2800_v20 = vpack.c.b16 %v2774_v1, %v2773_v0  ;;  %v854_v0 = vrot.slane %v852_v46, 5 }
  0xa5   : > { %v2482_v28 = vrot.slane %v2481_v15, 4  ;;  %v2520_v50 = vrot.slane %v2518_v27, 5 }
  0xa7   : > { %v2487_v49 = vsel %vm6898_vm4, %v2482_v28, %v7104_v62  ;;  %v1651_v62 = vunpack.c.l.b16 %v1525_v43 }
  0xa8   : > { %v7056_v6 = vpop.f32.mrf.mxu1  ;;  %v2775_v1 = vunpack.c.l.b16 %v2487_v49  ;;  %v1531_v49 = vrot.slane %v1401_v32, 5 }
  0xa9   : > { %v1676_v23 = vpack.c.b16 %v1651_v62, %v1650_v60 }
  0xaa   : > { %v7059_v12 = vpop.f32.mrf.mxu0  ;;  %v2801_v30 = vpack.c.b16 %v2776_v2, %v2775_v1 }
  0xab   : > { %1253 = vmatmul.bf16.gmra.mxu1 %v1149_v3  ;;  %1778 = vmatmul.bf16.gmra.mxu2 %v1674_v4  ;;  %v831_v3 = vor.u32 %v830_v52, %v827_v51  ;;  %v858_v51 = vshll.u32 %v651_v34, 16  ;;  %v862_v52 = vshrl.u32 %v651_v34, 16 }
  0xac   : > { %2157 = vmatmul.bf16.gmra.mxu3 %v6475_v7  ;;  %v841_v7 = vor.u32 %v840_v58, %v7101_v57 }
  0xad   : > { %2903 = vmatmul.bf16.gmra.mxu0 %v2799_v8  ;;  %v844_v8 = vshll.u32 %v649_v56, 16  ;;  %v832_v22 = vrot.slane %v831_v3, 4  ;;  %v2508_v56 = vshll.u32 %v5891_v40, 16  ;;  %v652_v3 = vld [vmem:[%s6754_s11 + $0x5c] sm:$0x1] }
  0xae   : > { %v7077_v33 = vpop.f32.mrf.mxu2  ;;  %v842_v24 = vrot.slane %v841_v7, 4  ;;  %v864_v7 = vrot.slane %v862_v52, 4 }
  0xaf   : > { %v7083_v39 = vpop.f32.mrf.mxu3  ;;  %v846_v25 = vrot.slane %v844_v8, 5  ;;  %v837_v35 = vsel %vm6898_vm4, %v832_v22, %v7101_v57  ;;  %v2512_v57 = vshrl.u32 %v5891_v40, 16  ;;  %v1400_v8 = vld [vmem:[%s6754_s11 + $0x58] sm:$0xf]  ;;  %v7151_v14 = vrot.slane %v2508_v56, 5 }
  0xb0   : > { %v7088_v45 = vpop.f32.mrf.mxu1  ;;  %v1125_v59 = vunpack.c.l.b16 %v837_v35  ;;  %v1528_v26 = vrot.slane %v1400_v8, 5  ;;  %v876_v56 = vshll.u32 %v653_v38, 16 }
  0xb1   : > { %v847_v42 = vsel %vm6898_vm4, %v842_v24, %v846_v25  ;;  %v2514_v15 = vrot.slane %v2512_v57, 4  ;;  %v1399_v25 = vld [vmem:[%s6754_s11 + $0x54] sm:$0xe]  ;;  %v6530_v57 = vld [vmem:[%s8093_s1 + $0x198] sm:$0xff] }
  0xb2   : > { %v7090_v48 = vpop.f32.mrf.mxu0  ;;  %v1126_v61 = vunpack.c.l.b16 %v847_v42  ;;  %v5668_v43 = vrot.slane %v1399_v25, 9  ;;  %v1530_v46 = vrot.slane %v1528_v26, 4  ;;  %3780 = vmatpush.bf16.msra.mxu2 %v6530_v57  ;;  %v6506_v25 = vld [vmem:[%s8093_s1 + $0x158] sm:$0xff] }
  0xb3   : > { %v2515_v35 = vor.u32 %v2514_v15, %v7151_v14  ;;  %v878_v15 = vrot.slane %v876_v56, 5  ;;  %3401 = vmatpush.bf16.msra.mxu1 %v6506_v25  ;;  %v656_v25 = vld [vmem:[%s6754_s11 + $0x6c] sm:$0xf] }
  0xb4   : > { %v1151_v17 = vpack.c.b16 %v1126_v61, %v1125_v59  ;;  %v6538_v59 = vld [vmem:[%s8093_s1 + $0x1d8] sm:$0xff]  ;;  %v1532_v8 = vsel %vm6902_vm5, %v1530_v46, %v1531_v49  ;;  %v5895_v46 = vld [vmem:[%s6754_s11 + $0x74] sm:$0x1] }
  0xb5   : > { %v2516_v54 = vrot.slane %v2515_v35, 4  ;;  %4526 = vmatpush.bf16.msra.mxu3 %v6538_v59  ;;  %v655_v35 = vld [vmem:[%s6754_s11 + $0x68] sm:$0x1] }
  0xb6   : > { %v7107_v4 = vpop.f32.mrf.mxu2  ;;  %v892_v56 = vshll.u32 %v655_v35, 16 }
  0xb7   : > { %v7111_v11 = vpop.f32.mrf.mxu3 }
  0xb8   : > { %v7115_v18 = vpop.f32.mrf.mxu1 }
  0xba   : > { %v7118_v21 = vpop.f32.mrf.mxu0 }
  0xbb   : > { %1258 = vmatmul.bf16.gmra.mxu1 %v1150_v5  ;;  %1783 = vmatmul.bf16.gmra.mxu2 %v1675_v13  ;;  %v7147_v5 = vrot.slane %v858_v51, 5  ;;  %v2504_v13 = vrot.slane %v2502_v55, 5  ;;  %v654_v51 = vld [vmem:[%s6754_s11 + $0x64] sm:$0xf]  ;;  %v873_v55 = vshrl.u32 %v653_v38, 16 }
  0xbc   : > { %2162 = vmatmul.bf16.gmra.mxu3 %v6476_v19  ;;  %v855_v19 = vor.u32 %v854_v0, %v851_v63  ;;  %v882_v61 = vshll.u32 %v654_v51, 16  ;;  %v886_v62 = vshrl.u32 %v654_v51, 16  ;;  %v5893_v63 = vld [vmem:[%s6754_s11 + $0x6c] sm:$0xf]  ;;  %v5894_v0 = vld [vmem:[%s6754_s11 + $0x70] sm:$0xf] }
  0xbd   : > { %2908 = vmatmul.bf16.gmra.mxu0 %v2800_v20  ;;  %v868_v20 = vshll.u32 %v652_v3, 16  ;;  %v865_v24 = vor.u32 %v864_v7, %v7147_v5  ;;  %v2505_v34 = vor.u32 %v2504_v13, %v2501_v10  ;;  %v1529_v7 = vsel %vm6902_vm5, %v5668_v43, %v1528_v26  ;;  %v1403_v38 = vld [vmem:[%s6754_s11 + $0x64] sm:$0xf] }
  0xbe   : > { %v7129_v41 = vpop.f32.mrf.mxu2  ;;  %v856_v40 = vrot.slane %v855_v19, 4  ;;  %v2521_v13 = vsel %vm6898_vm4, %v2516_v54, %v2520_v50  ;;  %v2523_v19 = vshrl.u32 %v5893_v63, 16  ;;  %v7204_v26 = vrot.slane %v882_v61, 5 }
  0xbf   : > { %v7135_v47 = vpop.f32.mrf.mxu3  ;;  %v870_v42 = vrot.slane %v868_v20, 5  ;;  %v866_v44 = vrot.slane %v865_v24, 4  ;;  %v2506_v52 = vrot.slane %v2505_v34, 4  ;;  %v2526_v20 = vshll.u32 %v5893_v63, 16  ;;  %v1404_v63 = vld [vmem:[%s6754_s11 + $0x68] sm:$0x1] }
  0xc0   : > { %8101 = vst [vmem:[#allocation3_spill] sm:$0xff] %v7135_v47  ;;  %v7142_v53 = vpop.f32.mrf.mxu1  ;;  %v861_v2 = vsel %vm6898_vm4, %v856_v40, %v7147_v5  ;;  %v875_v5 = vrot.slane %v873_v55, 4  ;;  %v2536_v24 = vshrl.u32 %v5894_v0, 16  ;;  %v888_v27 = vrot.slane %v886_v62, 4 }
  0xc1   : > { %v871_v3 = vsel %vm6898_vm4, %v866_v44, %v870_v42  ;;  %v2511_v10 = vsel %vm6898_vm4, %v2506_v52, %v7151_v14  ;;  %v6546_v14 = vld [vmem:[%s8093_s1 + $0x218] sm:$0xff]  ;;  %v1652_v32 = vunpack.c.l.b16 %v1529_v7  ;;  %v1653_v34 = vunpack.c.l.b16 %v1532_v8  ;;  %v1402_v44 = vld [vmem:[%s6754_s11 + $0x60] sm:$0xe] }
  0xc2   : > { %v7144_v58 = vpop.f32.mrf.mxu0  ;;  %5048 = vmatpush.bf16.msra.mxu0 %v6546_v14  ;;  %v2777_v40 = vunpack.c.l.b16 %v2511_v10  ;;  %v2778_v42 = vunpack.c.l.b16 %v2521_v13  ;;  %v879_v43 = vor.u32 %v878_v15, %v875_v5  ;;  %v2525_v49 = vrot.slane %v2523_v19, 4  ;;  %v657_v14 = vld [vmem:[%s6754_s11 + $0x70] sm:$0xf] }
  0xc3   : > { %v2528_v50 = vrot.slane %v2526_v20, 5  ;;  %v2538_v52 = vrot.slane %v2536_v24, 4  ;;  %v889_v55 = vor.u32 %v888_v27, %v7204_v26  ;;  %v1535_v57 = vrot.slane %v1403_v38, 5 }
  0xc4   : > { %v1677_v62 = vpack.c.b16 %v1653_v34, %v1652_v32  ;;  %v880_v7 = vrot.slane %v879_v43, 4  ;;  %v5669_v8 = vrot.slane %v1402_v44, 9  ;;  %v2542_v10 = vshll.u32 %v5895_v46, 16  ;;  %v5896_v32 = vld [vmem:[%s6754_s11 + $0x78] sm:$0xf] }
  0xc5   : > { %v2529_v5 = vor.u32 %v2528_v50, %v2525_v49  ;;  %v890_v19 = vrot.slane %v889_v55, 4  ;;  %v894_v20 = vrot.slane %v892_v56, 5  ;;  %v1538_v24 = vrot.slane %v1404_v63, 5  ;;  %v5897_v34 = vld [vmem:[%s6754_s11 + $0x7c] sm:$0xf] }
  0xc6   : > { %v7153_v16 = vpop.f32.mrf.mxu2  ;;  %v885_v27 = vsel %vm6898_vm4, %v880_v7, %v7204_v26  ;;  %v906_v49 = vshll.u32 %v657_v14, 16  ;;  %v910_v26 = vshrl.u32 %v657_v14, 16  ;;  %v2550_v55 = vshll.u32 %v5896_v32, 16 }
  0xc7   : > { %v7155_v22 = vpop.f32.mrf.mxu3  ;;  %v2530_v35 = vrot.slane %v2529_v5, 4  ;;  %v895_v44 = vsel %vm6898_vm4, %v890_v19, %v894_v20  ;;  %v2556_v56 = vshll.u32 %v5897_v34, 16  ;;  %v658_v19 = vld [vmem:[%s6754_s11 + $0x74] sm:$0x1] }
  0xc8   : > { %8102 = vst [vmem:[#allocation4_spill] sm:$0xff] %v7155_v22  ;;  %v7159_v28 = vpop.f32.mrf.mxu1  ;;  %v1130_v5 = vunpack.c.l.b16 %v895_v44  ;;  %v7251_v20 = vrot.slane %v906_v49, 5  ;;  %v2552_v14 = vrot.slane %v2550_v55, 5  ;;  %v1410_v22 = vld [vmem:[%s6754_s11 + $0x80] sm:$0x1] }
  0xca   : > { %v7164_v37 = vpop.f32.mrf.mxu0 }
  0xcb   : > { %1263 = vmatmul.bf16.gmra.mxu1 %v1151_v17  ;;  %1788 = vmatmul.bf16.gmra.mxu2 %v1676_v23  ;;  %v2532_v23 = vshll.u32 %v5894_v0, 16 }
  0xcc   : > { %2167 = vmatmul.bf16.gmra.mxu3 %v6477_v29  ;;  %v1127_v29 = vunpack.c.l.b16 %v861_v2  ;;  %v6478_v2 = vld [vmem:[%s6754_s11 + $0x60] sm:$0xff] }
  0xcd   : > { %2913 = vmatmul.bf16.gmra.mxu0 %v2801_v30  ;;  %v1128_v30 = vunpack.c.l.b16 %v871_v3  ;;  %v7210_v51 = vrot.slane %v2532_v23, 5  ;;  %v2802_v3 = vpack.c.b16 %v2778_v42, %v2777_v40  ;;  %v1537_v23 = vrot.slane %v1535_v57, 4 }
  0xce   : > { %v7174_v60 = vpop.f32.mrf.mxu2  ;;  %v897_v40 = vshrl.u32 %v656_v25, 16  ;;  %v900_v42 = vshll.u32 %v656_v25, 16 }
  0xcf   : > { %v7178_v1 = vpop.f32.mrf.mxu3  ;;  %v1152_v61 = vpack.c.b16 %v1128_v30, %v1127_v29  ;;  %v2539_v15 = vor.u32 %v2538_v52, %v7210_v51  ;;  %v1536_v29 = vsel %vm6902_vm5, %v5669_v8, %v1535_v57  ;;  %v2544_v30 = vrot.slane %v2542_v10, 5 }
  0xd0   : > { %8103 = vst [vmem:[#allocation5_spill] sm:$0xff] %v7178_v1  ;;  %v7189_v9 = vpop.f32.mrf.mxu1  ;;  %v1539_v46 = vsel %vm6902_vm5, %v1537_v23, %v1538_v24  ;;  %v2547_v52 = vshrl.u32 %v5896_v32, 16  ;;  %v2560_v57 = vshrl.u32 %v5897_v34, 16  ;;  %v1654_v63 = vunpack.c.l.b16 %v1536_v29  ;;  %v1406_v24 = vld [vmem:[%s6754_s11 + $0x70] sm:$0xf] }
  0xd1   : > { %v2540_v38 = vrot.slane %v2539_v15, 4  ;;  %v899_v8 = vrot.slane %v897_v40, 4  ;;  %v902_v10 = vrot.slane %v900_v42, 5  ;;  %v1655_v15 = vunpack.c.l.b16 %v1539_v46  ;;  %v5898_v34 = vld [vmem:[%s6754_s11 + $0x80] sm:$0x1] }
  0xd2   : > { %v7196_v17 = vpop.f32.mrf.mxu0  ;;  %v912_v23 = vrot.slane %v910_v26, 4  ;;  %v2549_v25 = vrot.slane %v2547_v52, 4  ;;  %v2562_v29 = vrot.slane %v2560_v57, 4  ;;  %v916_v42 = vshll.u32 %v658_v19, 16  ;;  %v1405_v26 = vld [vmem:[%s6754_s11 + $0x6c] sm:$0xe] }
  0xd3   : > { %v2545_v7 = vsel %vm6898_vm4, %v2540_v38, %v2544_v30  ;;  %v903_v30 = vor.u32 %v902_v10, %v899_v8  ;;  %v1542_v44 = vrot.slane %v1406_v24, 5  ;;  %v1678_v49 = vpack.c.b16 %v1655_v15, %v1654_v63  ;;  %v1407_v8 = vld [vmem:[%s6754_s11 + $0x74] sm:$0x1]  ;;  %v659_v15 = vld [vmem:[%s6754_s11 + $0x78] sm:$0xf] }
  0xd4   : > { %v2780_v32 = vunpack.c.l.b16 %v2545_v7  ;;  %v913_v40 = vor.u32 %v912_v23, %v7251_v20  ;;  %v2553_v52 = vor.u32 %v2552_v14, %v2549_v25  ;;  %v918_v23 = vrot.slane %v916_v42, 5  ;;  %v5899_v42 = vld [vmem:[%s6754_s11 + $0x84] sm:$0xf] }
  0xd5   : > { %v5670_v24 = vrot.slane %v1405_v26, 9  ;;  %v1544_v63 = vrot.slane %v1542_v44, 4  ;;  %v1545_v25 = vrot.slane %v1407_v8, 5 }
  0xd6   : > { %v7212_v54 = vpop.f32.mrf.mxu2  ;;  %v914_v19 = vrot.slane %v913_v40, 4  ;;  %v2554_v14 = vrot.slane %v2553_v52, 4  ;;  %v924_v40 = vshll.u32 %v659_v15, 16 }
  0xd7   : > { %v7215_v59 = vpop.f32.mrf.mxu3 }
  0xd8   : > { %8104 = vst [vmem:[#allocation6_spill] sm:$0xff] %v7215_v59  ;;  %v7218_v0 = vpop.f32.mrf.mxu1  ;;  %v919_v52 = vsel %vm6898_vm4, %v914_v19, %v918_v23  ;;  %v2571_v23 = vshrl.u32 %v5899_v42, 16 }
  0xda   : > { %v7221_v13 = vpop.f32.mrf.mxu0 }
  0xdb   : > { %1268 = vmatmul.bf16.gmra.mxu1 %v1152_v61  ;;  %1793 = vmatmul.bf16.gmra.mxu2 %v1677_v62  ;;  %v1129_v62 = vunpack.c.l.b16 %v885_v27  ;;  %v7254_v27 = vrot.slane %v2556_v56, 5  ;;  %v2566_v56 = vshll.u32 %v5898_v34, 16  ;;  %v6537_v34 = vld [vmem:[%s8093_s1 + $0x1d0] sm:$0xff] }
  0xdc   : > { %2172 = vmatmul.bf16.gmra.mxu3 %v6478_v2 }
  0xdd   : > { %2918 = vmatmul.bf16.gmra.mxu0 %v2802_v3  ;;  %v2535_v3 = vsel %vm6898_vm4, %v2530_v35, %v7210_v51  ;;  %v1153_v38 = vpack.c.b16 %v1130_v5, %v1129_v62  ;;  %v2563_v55 = vor.u32 %v2562_v29, %v7254_v27  ;;  %v904_v5 = vrot.slane %v903_v30, 4  ;;  %4527 = vmatpush.bf16.msra.mxu3 %v6537_v34 }
  0xde   : > { %v7233_v43 = vpop.f32.mrf.mxu2  ;;  %v2779_v51 = vunpack.c.l.b16 %v2535_v3  ;;  %v6479_v3 = vld [vmem:[%s6754_s11 + $0x6c] sm:$0xff]  ;;  %v2559_v8 = vsel %vm6898_vm4, %v2554_v14, %v7254_v27 }
  0xdf   : > { %v7239_v50 = vpop.f32.mrf.mxu3  ;;  %v2564_v29 = vrot.slane %v2563_v55, 4  ;;  %v909_v30 = vsel %vm6898_vm4, %v904_v5, %v7251_v20  ;;  %v1543_v55 = vsel %vm6902_vm5, %v5670_v24, %v1542_v44  ;;  %v1546_v20 = vsel %vm6902_vm5, %v1544_v63, %v1545_v25  ;;  %v6505_v27 = vld [vmem:[%s8093_s1 + $0x150] sm:$0xff] }
  0xe0   : > { %8105 = vst [vmem:[#allocation7_spill] sm:$0xff] %v7239_v50  ;;  %v7241_v61 = vpop.f32.mrf.mxu1  ;;  %v2803_v7 = vpack.c.b16 %v2780_v32, %v2779_v51  ;;  %v2568_v51 = vrot.slane %v2566_v56, 5  ;;  %v660_v32 = vld [vmem:[%s6754_s11 + $0x7c] sm:$0xf]  ;;  %v926_v63 = vrot.slane %v924_v40, 5  ;;  %v6545_v25 = vld [vmem:[%s8093_s1 + $0x210] sm:$0xff]  ;;  %v1131_v14 = vunpack.c.l.b16 %v909_v30  ;;  %3402 = vmatpush.bf16.msra.mxu1 %v6505_v27 }
  0xe1   : > { %v930_v56 = vshll.u32 %v660_v32, 16  ;;  %5049 = vmatpush.bf16.msra.mxu0 %v6545_v25  ;;  %v5901_v40 = vld [vmem:[%s6754_s11 + $0x8c] sm:$0x1]  ;;  %v1408_v25 = vld [vmem:[%s6754_s11 + $0x78] sm:$0xe] }
  0xe2   : > { %v7243_v2 = vpop.f32.mrf.mxu0  ;;  %v2569_v5 = vsel %vm6898_vm4, %v2564_v29, %v2568_v51  ;;  %v1656_v29 = vunpack.c.l.b16 %v1543_v55  ;;  %v2590_v1 = vshll.u32 %v5901_v40, 16  ;;  %v5903_v40 = vld [vmem:[%s6754_s11 + $0x94] sm:$0xf] }
  0xe3   : > { %v7300_v51 = vrot.slane %v930_v56, 5 }
  0xe6   : > { %v7257_v35 = vpop.f32.mrf.mxu2 }
  0xe7   : > { %v7260_v46 = vpop.f32.mrf.mxu3 }
  0xe8   : > { %8106 = vst [vmem:[#allocation8_spill] sm:$0xff] %v7260_v46  ;;  %v1234_v57 = vpop.f32.mrf.mxu1 }
  0xe9   : > { %v1314_v62 = vadd.f32 %v1234_v57, %v7059_v12  ;;  %v6529_v12 = vld [vmem:[%s8093_s1 + $0x190] sm:$0xff]  ;;  %v934_v57 = vshrl.u32 %v660_v32, 16 }
  0xea   : > { %v7267_v10 = vpop.f32.mrf.mxu0  ;;  %3781 = vmatpush.bf16.msra.mxu2 %v6529_v12 }
  0xeb   : > { %1273 = vmatmul.bf16.gmra.mxu1 %v1153_v38  ;;  %1798 = vmatmul.bf16.gmra.mxu2 %v1678_v49  ;;  %v921_v38 = vshrl.u32 %v659_v15, 16  ;;  %v5900_v49 = vld [vmem:[%s6754_s11 + $0x88] sm:$0xf]  ;;  %v2574_v15 = vshll.u32 %v5899_v42, 16  ;;  %v936_v42 = vrot.slane %v934_v57, 4 }
  0xec   : > { %2177 = vmatmul.bf16.gmra.mxu3 %v6479_v3  ;;  %v2580_v44 = vshll.u32 %v5900_v49, 16  ;;  %v2584_v24 = vshrl.u32 %v5900_v49, 16  ;;  %v1132_v49 = vunpack.c.l.b16 %v919_v52 }
  0xed   : > { %2923 = vmatmul.bf16.gmra.mxu0 %v2803_v7  ;;  %v923_v34 = vrot.slane %v921_v38, 4  ;;  %v661_v38 = vld [vmem:[%s6754_s11 + $0x80] sm:$0x1]  ;;  %v2576_v46 = vrot.slane %v2574_v15, 5  ;;  %v937_v52 = vor.u32 %v936_v42, %v7300_v51  ;;  %v6480_v15 = vld [vmem:[%s6754_s11 + $0x78] sm:$0xff] }
  0xee   : > { %v1759_v26 = vpop.f32.mrf.mxu2  ;;  %v7305_v50 = vrot.slane %v2580_v44, 5  ;;  %v2586_v30 = vrot.slane %v2584_v24, 4  ;;  %v940_v57 = vshll.u32 %v661_v38, 16  ;;  %v1154_v27 = vpack.c.b16 %v1132_v49, %v1131_v14  ;;  %v662_v14 = vld [vmem:[%s6754_s11 + $0x84] sm:$0xf] }
  0xef   : > { %v1839_v3 = vadd.f32 %v1759_v26, %v1314_v62  ;;  %v2138_v7 = vpop.f32.mrf.mxu3  ;;  %v1657_v26 = vunpack.c.l.b16 %v1546_v20  ;;  %v927_v55 = vor.u32 %v926_v63, %v923_v34 }
  0xf0   : > { %v1236_v19 = vpop.f32.mrf.mxu1  ;;  %v2587_v24 = vor.u32 %v2586_v30, %v7305_v50  ;;  %v942_v49 = vrot.slane %v940_v57, 5 }
  0xf1   : > { %v2218_v32 = vadd.f32 %v2138_v7, %v1839_v3  ;;  %v1315_v62 = vadd.f32 %v1236_v19, %v7090_v48  ;;  %v2781_v48 = vunpack.c.l.b16 %v2559_v8  ;;  %v2782_v3 = vunpack.c.l.b16 %v2569_v5  ;;  %v1409_v7 = vld [vmem:[%s6754_s11 + $0x7c] sm:$0xf] }
  0xf2   : > { %v2886_v12 = vpop.f32.mrf.mxu0  ;;  %v2573_v19 = vrot.slane %v2571_v23, 4  ;;  %v1549_v20 = vrot.slane %v1409_v7, 5  ;;  %v1679_v59 = vpack.c.b16 %v1657_v26, %v1656_v29  ;;  %v928_v42 = vrot.slane %v927_v55, 4  ;;  %v663_v7 = vld [vmem:[%s6754_s11 + $0x88] sm:$0xf] }
  0xf3   : > { %v2804_v44 = vpack.c.b16 %v2782_v3, %v2781_v48  ;;  %v938_v29 = vrot.slane %v937_v52, 4  ;;  %v5671_v26 = vrot.slane %v1408_v25, 9  ;;  %v1552_v48 = vrot.slane %v1410_v22, 5  ;;  %v5902_v3 = vld [vmem:[%s6754_s11 + $0x90] sm:$0xf] }
  0xf4   : > { %v2577_v47 = vor.u32 %v2576_v46, %v2573_v19  ;;  %v1551_v38 = vrot.slane %v1549_v20, 4  ;;  %v2592_v46 = vrot.slane %v2590_v1, 5  ;;  %v7320_v19 = vadd.f32 %v7267_v10, %v2218_v32 }
  0xf5   : > { %v2588_v55 = vrot.slane %v2587_v24, 4  ;;  %v948_v52 = vshll.u32 %v662_v14, 16  ;;  %v933_v57 = vsel %vm6898_vm4, %v928_v42, %v7300_v51  ;;  %v958_v22 = vshrl.u32 %v663_v7, 16 }
  0xf6   : > { %v1761_v56 = vpop.f32.mrf.mxu2  ;;  %8107 = vst [vmem:[#allocation9_spill] sm:$0xff] %v7320_v19  ;;  %v2604_v10 = vshll.u32 %v5903_v40, 16  ;;  %v2608_v32 = vshrl.u32 %v5903_v40, 16  ;;  %v1550_v25 = vsel %vm6902_vm5, %v5671_v26, %v1549_v20  ;;  %v664_v20 = vld [vmem:[%s6754_s11 + $0x8c] sm:$0x1] }
  0xf7   : > { %v1840_v8 = vadd.f32 %v1761_v56, %v1315_v62  ;;  %v2140_v5 = vpop.f32.mrf.mxu3  ;;  %v945_v56 = vshrl.u32 %v662_v14, 16 }
  0xf8   : > { %v1239_v23 = vpop.f32.mrf.mxu1 }
  0xf9   : > { %v2219_v34 = vadd.f32 %v2140_v5, %v1840_v8  ;;  %v1316_v63 = vadd.f32 %v1239_v23, %v7118_v21  ;;  %v2578_v21 = vrot.slane %v2577_v47, 4  ;;  %v2595_v8 = vshrl.u32 %v5902_v3, 16 }
  0xfa   : > { %v7313_v62 = vpop.f32.mrf.mxu0  ;;  %v2598_v5 = vshll.u32 %v5902_v3, 16  ;;  %v943_v47 = vsel %vm6898_vm4, %v938_v29, %v942_v49  ;;  %v1553_v23 = vsel %vm6902_vm5, %v1551_v38, %v1552_v48  ;;  %v947_v24 = vrot.slane %v945_v56, 4 }
  0xfb   : > { %1278 = vmatmul.bf16.gmra.mxu1 %v1154_v27  ;;  %1803 = vmatmul.bf16.gmra.mxu2 %v1679_v59  ;;  %v7322_v30 = vadd.f32 %v2886_v12, %v2219_v34  ;;  %v954_v59 = vshll.u32 %v663_v7, 16  ;;  %v950_v34 = vrot.slane %v948_v52, 5  ;;  %v960_v49 = vrot.slane %v958_v22, 4 }
  0xfc   : > { %2182 = vmatmul.bf16.gmra.mxu3 %v6480_v15  ;;  %v2583_v15 = vsel %vm6898_vm4, %v2578_v21, %v7305_v50  ;;  %v2597_v26 = vrot.slane %v2595_v8, 4  ;;  %v2600_v38 = vrot.slane %v2598_v5, 5  ;;  %v7342_v50 = vrot.slane %v2604_v10, 5  ;;  %v1412_v21 = vld [vmem:[%s6754_s11 + $0x88] sm:$0xf] }
  0xfd   : > { %8108 = vst [vmem:[#allocation10_spill] sm:$0xff] %v7322_v30  ;;  %2928 = vmatmul.bf16.gmra.mxu0 %v2804_v44  ;;  %v2593_v44 = vsel %vm6898_vm4, %v2588_v55, %v2592_v46  ;;  %v7340_v29 = vrot.slane %v954_v59, 5  ;;  %v2610_v7 = vrot.slane %v2608_v32, 4  ;;  %v1133_v48 = vunpack.c.l.b16 %v933_v57  ;;  %v5904_v55 = vld [vmem:[%s6754_s11 + $0x98] sm:$0x1] }
  0xfe   : > { %v1764_v1 = vpop.f32.mrf.mxu2  ;;  %v1134_v46 = vunpack.c.l.b16 %v943_v47  ;;  %v1658_v3 = vunpack.c.l.b16 %v1550_v25  ;;  %v1659_v40 = vunpack.c.l.b16 %v1553_v23  ;;  %v2783_v56 = vunpack.c.l.b16 %v2583_v15  ;;  %v1413_v8 = vld [vmem:[%s6754_s11 + $0x8c] sm:$0x1]  ;;  %v6481_v15 = vld [vmem:[%s6754_s11 + $0x84] sm:$0xff] }
  0xff   : > { %v1841_v12 = vadd.f32 %v1764_v1, %v1316_v63  ;;  %v2143_v27 = vpop.f32.mrf.mxu3  ;;  %v964_v52 = vshll.u32 %v664_v20, 16  ;;  %v951_v59 = vor.u32 %v950_v34, %v947_v24  ;;  %v961_v22 = vor.u32 %v960_v49, %v7340_v29  ;;  %v1411_v1 = vld [vmem:[%s6754_s11 + $0x84] sm:$0xe]  ;;  %v665_v49 = vld [vmem:[%s6754_s11 + $0x90] sm:$0xf] }
 0x100   : > { %v1241_v51 = vpop.f32.mrf.mxu1  ;;  %v1556_v10 = vrot.slane %v1412_v21, 5  ;;  %v2611_v57 = vor.u32 %v2610_v7, %v7342_v50  ;;  %v2614_v32 = vshll.u32 %v5904_v55, 16  ;;  %v1155_v25 = vpack.c.b16 %v1134_v46, %v1133_v48  ;;  %v666_v46 = vld [vmem:[%s6754_s11 + $0x94] sm:$0xf] }
 0x101   : > { %v2220_v63 = vadd.f32 %v2143_v27, %v1841_v12  ;;  %v1317_v42 = vadd.f32 %v1241_v51, %v7144_v58  ;;  %v2784_v58 = vunpack.c.l.b16 %v2593_v44  ;;  %v2601_v12 = vor.u32 %v2600_v38, %v2597_v26 }
 0x102   : > { %v2891_v14 = vpop.f32.mrf.mxu0  ;;  %v1680_v23 = vpack.c.b16 %v1659_v40, %v1658_v3  ;;  %v966_v24 = vrot.slane %v964_v52, 5  ;;  %v5672_v34 = vrot.slane %v1411_v1, 9  ;;  %v1559_v20 = vrot.slane %v1413_v8, 5  ;;  %v6536_v52 = vld [vmem:[%s8093_s1 + $0x1c8] sm:$0xff] }
 0x103   : > { %v2805_v44 = vpack.c.b16 %v2784_v58, %v2783_v56  ;;  %v952_v26 = vrot.slane %v951_v59, 4  ;;  %v962_v38 = vrot.slane %v961_v22, 4  ;;  %v1558_v7 = vrot.slane %v1556_v10, 4  ;;  %v5906_v22 = vld [vmem:[%s6754_s11 + $0xa0] sm:$0xf]  ;;  %4528 = vmatpush.bf16.msra.mxu3 %v6536_v52 }
 0x104   : > { %v2612_v55 = vrot.slane %v2611_v57, 4  ;;  %v2616_v48 = vrot.slane %v2614_v32, 5  ;;  %v969_v3 = vshrl.u32 %v665_v49, 16  ;;  %v972_v40 = vshll.u32 %v665_v49, 16  ;;  %v6504_v49 = vld [vmem:[%s8093_s1 + $0x148] sm:$0xff] }
 0x105   : > { %v7357_v56 = vadd.f32 %v7313_v62, %v2220_v63  ;;  %v957_v59 = vsel %vm6898_vm4, %v952_v26, %v7340_v29  ;;  %v1557_v62 = vsel %vm6902_vm5, %v5672_v34, %v1556_v10  ;;  %v978_v63 = vshll.u32 %v666_v46, 16  ;;  %v6544_v26 = vld [vmem:[%s8093_s1 + $0x208] sm:$0xff]  ;;  %3403 = vmatpush.bf16.msra.mxu1 %v6504_v49 }
 0x106   : > { %v1766_v5 = vpop.f32.mrf.mxu2  ;;  %v967_v8 = vsel %vm6898_vm4, %v962_v38, %v966_v24  ;;  %v2617_v57 = vsel %vm6898_vm4, %v2612_v55, %v2616_v48  ;;  %v971_v32 = vrot.slane %v969_v3, 4  ;;  %v1135_v38 = vunpack.c.l.b16 %v957_v59  ;;  %5050 = vmatpush.bf16.msra.mxu0 %v6544_v26  ;;  %v1415_v3 = vld [vmem:[%s6754_s11 + $0x94] sm:$0xf] }
 0x107   : > { %v1842_v27 = vadd.f32 %v1766_v5, %v1317_v42  ;;  %v2145_v47 = vpop.f32.mrf.mxu3  ;;  %v2602_v42 = vrot.slane %v2601_v12, 4  ;;  %v1560_v5 = vsel %vm6902_vm5, %v1558_v7, %v1559_v20  ;;  %v7385_v20 = vrot.slane %v978_v63, 5 }
 0x108   : > { %v1244_v51 = vpop.f32.mrf.mxu1  ;;  %v1136_v7 = vunpack.c.l.b16 %v967_v8  ;;  %v1661_v55 = vunpack.c.l.b16 %v1560_v5 }
 0x109   : > { %v2221_v30 = vadd.f32 %v2145_v47, %v1842_v27  ;;  %v1318_v19 = vadd.f32 %v1244_v51, %v7164_v37  ;;  %v6528_v37 = vld [vmem:[%s8093_s1 + $0x188] sm:$0xff]  ;;  %v2607_v12 = vsel %vm6898_vm4, %v2602_v42, %v7342_v50  ;;  %v974_v27 = vrot.slane %v972_v40, 5 }
 0x10a   : > { %v7353_v21 = vpop.f32.mrf.mxu0  ;;  %3782 = vmatpush.bf16.msra.mxu2 %v6528_v37  ;;  %v1660_v42 = vunpack.c.l.b16 %v1557_v62  ;;  %v2785_v48 = vunpack.c.l.b16 %v2607_v12 }
 0x10b   : > { %1283 = vmatmul.bf16.gmra.mxu1 %v1155_v25  ;;  %1808 = vmatmul.bf16.gmra.mxu2 %v1680_v23  ;;  %v7359_v58 = vadd.f32 %v2891_v14, %v2221_v30  ;;  %v982_v30 = vshrl.u32 %v666_v46, 16  ;;  %v5905_v14 = vld [vmem:[%s6754_s11 + $0x9c] sm:$0xf]  ;;  %v667_v25 = vld [vmem:[%s6754_s11 + $0x98] sm:$0x1] }
 0x10c   : > { %2187 = vmatmul.bf16.gmra.mxu3 %v6481_v15  ;;  %v2619_v23 = vshrl.u32 %v5905_v14, 16  ;;  %v2622_v51 = vshll.u32 %v5905_v14, 16  ;;  %v2628_v15 = vshll.u32 %v5906_v22, 16  ;;  %v988_v46 = vshll.u32 %v667_v25, 16  ;;  %v1414_v14 = vld [vmem:[%s6754_s11 + $0x90] sm:$0xe] }
 0x10d   : > { %2933 = vmatmul.bf16.gmra.mxu0 %v2805_v44  ;;  %v2632_v44 = vshrl.u32 %v5906_v22, 16  ;;  %v5907_v22 = vld [vmem:[%s6754_s11 + $0xa4] sm:$0x1]  ;;  %v1681_v8 = vpack.c.b16 %v1661_v55, %v1660_v42  ;;  %v6482_v25 = vld [vmem:[%s6754_s11 + $0x90] sm:$0xff]  ;;  %v669_v55 = vld [vmem:[%s6754_s11 + $0xa0] sm:$0xf] }
 0x10e   : > { %v1769_v1 = vpop.f32.mrf.mxu2  ;;  %v2621_v40 = vrot.slane %v2619_v23, 4  ;;  %v2624_v37 = vrot.slane %v2622_v51, 5  ;;  %v7394_v52 = vrot.slane %v2628_v15, 5  ;;  %v1416_v23 = vld [vmem:[%s6754_s11 + $0x98] sm:$0x1]  ;;  %v5673_v51 = vrot.slane %v1414_v14, 9 }
 0x10f   : > { %v1843_v29 = vadd.f32 %v1769_v1, %v1318_v19  ;;  %v2148_v10 = vpop.f32.mrf.mxu3  ;;  %v984_v19 = vrot.slane %v982_v30, 4  ;;  %v2634_v63 = vrot.slane %v2632_v44, 4  ;;  %v975_v30 = vor.u32 %v974_v27, %v971_v32 }
 0x110   : > { %v1246_v47 = vpop.f32.mrf.mxu1  ;;  %v1156_v1 = vpack.c.b16 %v1136_v7, %v1135_v38  ;;  %v2625_v32 = vor.u32 %v2624_v37, %v2621_v40  ;;  %v2638_v15 = vshll.u32 %v5907_v22, 16  ;;  %v668_v38 = vld [vmem:[%s6754_s11 + $0x9c] sm:$0xf]  ;;  %v1566_v42 = vrot.slane %v1416_v23, 5 }
 0x111   : > { %v2222_v24 = vadd.f32 %v2148_v10, %v1843_v29  ;;  %v1319_v34 = vadd.f32 %v1246_v47, %v7196_v17  ;;  %v2786_v17 = vunpack.c.l.b16 %v2617_v57  ;;  %v985_v59 = vor.u32 %v984_v19, %v7385_v20 }
 0x112   : > { %v2896_v50 = vpop.f32.mrf.mxu0  ;;  %v990_v10 = vrot.slane %v988_v46, 5  ;;  %v1563_v57 = vrot.slane %v1415_v3, 5  ;;  %v2635_v27 = vor.u32 %v2634_v63, %v7394_v52  ;;  %v2626_v3 = vrot.slane %v2625_v32, 4  ;;  %v5909_v63 = vld [vmem:[%s6754_s11 + $0xac] sm:$0xf] }
 0x113   : > { %v2806_v29 = vpack.c.b16 %v2786_v17, %v2785_v48  ;;  %v986_v26 = vrot.slane %v985_v59, 4  ;;  %v5908_v48 = vld [vmem:[%s6754_s11 + $0xa8] sm:$0xf]  ;;  %v7409_v17 = vadd.f32 %v7353_v21, %v2222_v24  ;;  %v2640_v37 = vrot.slane %v2638_v15, 5  ;;  %v670_v15 = vld [vmem:[%s6754_s11 + $0xa4] sm:$0x1] }
 0x114   : > { %v1565_v7 = vrot.slane %v1563_v57, 4  ;;  %v2636_v40 = vrot.slane %v2635_v27, 4  ;;  %v993_v21 = vshrl.u32 %v668_v38, 16  ;;  %v996_v24 = vshll.u32 %v668_v38, 16 }
 0x115   : > { %v991_v59 = vsel %vm6898_vm4, %v986_v26, %v990_v10  ;;  %v1002_v14 = vshll.u32 %v669_v55, 16  ;;  %v1006_v22 = vshrl.u32 %v669_v55, 16  ;;  %v2631_v10 = vsel %vm6898_vm4, %v2626_v3, %v7394_v52  ;;  %v1418_v52 = vld [vmem:[%s6754_s11 + $0xa0] sm:$0xf] }
 0x116   : > { %v1771_v62 = vpop.f32.mrf.mxu2  ;;  %v2641_v23 = vsel %vm6898_vm4, %v2636_v40, %v2640_v37  ;;  %v2787_v40 = vunpack.c.l.b16 %v2631_v10  ;;  %v1012_v37 = vshll.u32 %v670_v15, 16 }
 0x117   : > { %v1844_v5 = vadd.f32 %v1771_v62, %v1319_v34  ;;  %v2150_v12 = vpop.f32.mrf.mxu3  ;;  %v976_v34 = vrot.slane %v975_v30, 4  ;;  %v2643_v62 = vshrl.u32 %v5908_v48, 16  ;;  %v1008_v26 = vrot.slane %v1006_v22, 4 }
 0x118   : > { %v1249_v47 = vpop.f32.mrf.mxu1  ;;  %v1014_v10 = vrot.slane %v1012_v37, 5  ;;  %v6535_v37 = vld [vmem:[%s8093_s1 + $0x1c0] sm:$0xff] }
 0x119   : > { %v2223_v44 = vadd.f32 %v2150_v12, %v1844_v5  ;;  %v1320_v19 = vadd.f32 %v1249_v47, %v7221_v13  ;;  %v1564_v13 = vsel %vm6902_vm5, %v5673_v51, %v1563_v57  ;;  %v981_v30 = vsel %vm6898_vm4, %v976_v34, %v7385_v20  ;;  %4529 = vmatpush.bf16.msra.mxu3 %v6535_v37 }
 0x11a   : > { %v7403_v49 = vpop.f32.mrf.mxu0  ;;  %v1567_v12 = vsel %vm6902_vm5, %v1565_v7, %v1566_v42  ;;  %v2656_v57 = vshrl.u32 %v5909_v63, 16  ;;  %v1137_v20 = vunpack.c.l.b16 %v981_v30  ;;  %v7430_v34 = vrot.slane %v1002_v14, 5 }
 0x11b   : > { %1288 = vmatmul.bf16.gmra.mxu1 %v1156_v1  ;;  %1813 = vmatmul.bf16.gmra.mxu2 %v1681_v8  ;;  %v7411_v46 = vadd.f32 %v2896_v50, %v2223_v44  ;;  %v2646_v1 = vshll.u32 %v5908_v48, 16  ;;  %v995_v44 = vrot.slane %v993_v21, 4  ;;  %v2645_v38 = vrot.slane %v2643_v62, 4  ;;  %v5910_v48 = vld [vmem:[%s6754_s11 + $0xb0] sm:$0x1] }
 0x11c   : > { %2192 = vmatmul.bf16.gmra.mxu3 %v6482_v25  ;;  %v1662_v25 = vunpack.c.l.b16 %v1564_v13  ;;  %v1138_v42 = vunpack.c.l.b16 %v991_v59  ;;  %v1663_v55 = vunpack.c.l.b16 %v1567_v12  ;;  %v2658_v3 = vrot.slane %v2656_v57, 4  ;;  %v6483_v57 = vld [vmem:[%s6754_s11 + $0x9c] sm:$0xff] }
 0x11d   : > { %2938 = vmatmul.bf16.gmra.mxu0 %v2806_v29  ;;  %v2652_v29 = vshll.u32 %v5909_v63, 16  ;;  %v2648_v7 = vrot.slane %v2646_v1, 5  ;;  %v1009_v21 = vor.u32 %v1008_v26, %v7430_v34  ;;  %v1570_v14 = vrot.slane %v1418_v52, 5 }
 0x11e   : > { %v1774_v50 = vpop.f32.mrf.mxu2  ;;  %v2662_v59 = vshll.u32 %v5910_v48, 16 }
 0x11f   : > { %v1845_v8 = vadd.f32 %v1774_v50, %v1320_v19  ;;  %v2153_v5 = vpop.f32.mrf.mxu3  ;;  %v998_v19 = vrot.slane %v996_v24, 5  ;;  %v7434_v13 = vrot.slane %v2652_v29, 5  ;;  %v1417_v24 = vld [vmem:[%s6754_s11 + $0x9c] sm:$0xe]  ;;  %v1419_v50 = vld [vmem:[%s6754_s11 + $0xa4] sm:$0x1]  ;;  %v2649_v22 = vor.u32 %v2648_v7, %v2645_v38 }
 0x120   : > { %v1251_v47 = vpop.f32.mrf.mxu1  ;;  %v5674_v26 = vrot.slane %v1417_v24, 9  ;;  %v1573_v52 = vrot.slane %v1419_v50, 5  ;;  %v672_v38 = vld [vmem:[%s6754_s11 + $0xac] sm:$0xf]  ;;  %v1010_v7 = vrot.slane %v1009_v21, 4  ;;  %v1572_v48 = vrot.slane %v1570_v14, 4 }
 0x121   : > { %v2224_v51 = vadd.f32 %v2153_v5, %v1845_v8  ;;  %v1321_v32 = vadd.f32 %v1251_v47, %v7243_v2  ;;  %v2788_v2 = vunpack.c.l.b16 %v2641_v23  ;;  %v999_v63 = vor.u32 %v998_v19, %v995_v44  ;;  %v671_v23 = vld [vmem:[%s6754_s11 + $0xa8] sm:$0xf] }
 0x122   : > { %v2901_v27 = vpop.f32.mrf.mxu0  ;;  %v1157_v8 = vpack.c.b16 %v1138_v42, %v1137_v20  ;;  %v1682_v5 = vpack.c.b16 %v1663_v55, %v1662_v25  ;;  %v2659_v12 = vor.u32 %v2658_v3, %v7434_v13  ;;  %v1017_v25 = vshrl.u32 %v671_v23, 16 }
 0x123   : > { %v2807_v47 = vpack.c.b16 %v2788_v2, %v2787_v40  ;;  %v1000_v19 = vrot.slane %v999_v63, 4  ;;  %v7446_v42 = vadd.f32 %v7403_v49, %v2224_v51  ;;  %v1020_v3 = vshll.u32 %v671_v23, 16  ;;  %v6527_v2 = vld [vmem:[%s8093_s1 + $0x180] sm:$0xff] }
 0x124   : > { %v2660_v20 = vrot.slane %v2659_v12, 4  ;;  %v1026_v40 = vshll.u32 %v672_v38, 16  ;;  %v1571_v49 = vsel %vm6902_vm5, %v5674_v26, %v1570_v14  ;;  %v1030_v51 = vshrl.u32 %v672_v38, 16  ;;  %3783 = vmatpush.bf16.msra.mxu2 %v6527_v2 }
 0x125   : > { %v1005_v24 = vsel %vm6898_vm4, %v1000_v19, %v7430_v34  ;;  %v1015_v50 = vsel %vm6898_vm4, %v1010_v7, %v1014_v10  ;;  %v1022_v12 = vrot.slane %v1020_v3, 5 }
 0x126   : > { %v1776_v30 = vpop.f32.mrf.mxu2  ;;  %v1139_v38 = vunpack.c.l.b16 %v1005_v24  ;;  %v1140_v7 = vunpack.c.l.b16 %v1015_v50 }
 0x127   : > { %v1846_v62 = vadd.f32 %v1776_v30, %v1321_v32  ;;  %v2155_v1 = vpop.f32.mrf.mxu3  ;;  %v2650_v32 = vrot.slane %v2649_v22, 4  ;;  %v2664_v30 = vrot.slane %v2662_v59, 5  ;;  %v1574_v22 = vsel %vm6902_vm5, %v1572_v48, %v1573_v52  ;;  %v5912_v59 = vld [vmem:[%s6754_s11 + $0xb8] sm:$0xf]  ;;  %v6543_v52 = vld [vmem:[%s8093_s1 + $0x200] sm:$0xff] }
 0x128   : > { %v1254_v29 = vpop.f32.mrf.mxu1  ;;  %v2676_v19 = vshll.u32 %v5912_v59, 16  ;;  %v2680_v26 = vshrl.u32 %v5912_v59, 16  ;;  %v1664_v48 = vunpack.c.l.b16 %v1571_v49  ;;  %5051 = vmatpush.bf16.msra.mxu0 %v6543_v52  ;;  %v1158_v50 = vpack.c.b16 %v1140_v7, %v1139_v38 }
 0x129   : > { %v2225_v15 = vadd.f32 %v2155_v1, %v1846_v62  ;;  %v1322_v63 = vadd.f32 %v1254_v29, %v7056_v6  ;;  %v2655_v14 = vsel %vm6898_vm4, %v2650_v32, %v7434_v13  ;;  %v2665_v1 = vsel %vm6898_vm4, %v2660_v20, %v2664_v30  ;;  %v6503_v13 = vld [vmem:[%s8093_s1 + $0x140] sm:$0xff] }
 0x12a   : > { %v7442_v44 = vpop.f32.mrf.mxu0  ;;  %v7474_v29 = vrot.slane %v1026_v40, 5  ;;  %v1665_v32 = vunpack.c.l.b16 %v1574_v22  ;;  %v2789_v30 = vunpack.c.l.b16 %v2655_v14  ;;  %v2790_v20 = vunpack.c.l.b16 %v2665_v1  ;;  %3404 = vmatpush.bf16.msra.mxu1 %v6503_v13  ;;  %v1421_v40 = vld [vmem:[%s6754_s11 + $0xac] sm:$0xf]  ;;  %v5913_v22 = vld [vmem:[%s6754_s11 + $0xbc] sm:$0x1] }
 0x12b   : > { %1293 = vmatmul.bf16.gmra.mxu1 %v1157_v8  ;;  %1818 = vmatmul.bf16.gmra.mxu2 %v1682_v5  ;;  %v7448_v55 = vadd.f32 %v2901_v27, %v2225_v15  ;;  %v5911_v27 = vld [vmem:[%s6754_s11 + $0xb4] sm:$0xf]  ;;  %v1019_v8 = vrot.slane %v1017_v25, 4  ;;  %v673_v5 = vld [vmem:[%s6754_s11 + $0xb0] sm:$0x1]  ;;  %v1032_v15 = vrot.slane %v1030_v51, 4 }
 0x12c   : > { %2197 = vmatmul.bf16.gmra.mxu3 %v6483_v57  ;;  %v2667_v57 = vshrl.u32 %v5911_v27, 16  ;;  %v1036_v3 = vshll.u32 %v673_v5, 16  ;;  %v2682_v49 = vrot.slane %v2680_v26, 4  ;;  %v2808_v14 = vpack.c.b16 %v2790_v20, %v2789_v30  ;;  %v6484_v5 = vld [vmem:[%s6754_s11 + $0xa8] sm:$0xff] }
 0x12d   : > { %2943 = vmatmul.bf16.gmra.mxu0 %v2807_v47  ;;  %v2670_v47 = vshll.u32 %v5911_v27, 16  ;;  %v1023_v25 = vor.u32 %v1022_v12, %v1019_v8  ;;  %v1033_v51 = vor.u32 %v1032_v15, %v7474_v29  ;;  %v1420_v27 = vld [vmem:[%s6754_s11 + $0xa8] sm:$0xe]  ;;  %v1577_v1 = vrot.slane %v1421_v40, 5  ;;  %v1422_v12 = vld [vmem:[%s6754_s11 + $0xb0] sm:$0x1] }
 0x12e   : > { %v1779_v21 = vpop.f32.mrf.mxu2  ;;  %v2669_v2 = vrot.slane %v2667_v57, 4  ;;  %v5675_v57 = vrot.slane %v1420_v27, 9  ;;  %v2686_v52 = vshll.u32 %v5913_v22, 16  ;;  %v1580_v7 = vrot.slane %v1422_v12, 5 }
 0x12f   : > { %v1847_v6 = vadd.f32 %v1779_v21, %v1322_v63  ;;  %v2158_v62 = vpop.f32.mrf.mxu3  ;;  %v2672_v37 = vrot.slane %v2670_v47, 5  ;;  %v7486_v21 = vrot.slane %v2676_v19, 5  ;;  %v1034_v26 = vrot.slane %v1033_v51, 4 }
 0x130   : > { %v1256_v34 = vpop.f32.mrf.mxu1  ;;  %v1579_v38 = vrot.slane %v1577_v1, 4 }
 0x131   : > { %v2226_v10 = vadd.f32 %v2158_v62, %v1847_v6  ;;  %v1323_v63 = vadd.f32 %v1256_v34, %v7088_v45  ;;  %v1683_v62 = vpack.c.b16 %v1665_v32, %v1664_v48  ;;  %v1024_v45 = vrot.slane %v1023_v25, 4  ;;  %v674_v48 = vld [vmem:[%s6754_s11 + $0xb4] sm:$0xf]  ;;  %v675_v32 = vld [vmem:[%s6754_s11 + $0xb8] sm:$0xf] }
 0x132   : > { %v2906_v23 = vpop.f32.mrf.mxu0  ;;  %v1038_v34 = vrot.slane %v1036_v3, 5  ;;  %v2673_v47 = vor.u32 %v2672_v37, %v2669_v2  ;;  %v2683_v13 = vor.u32 %v2682_v49, %v7486_v21  ;;  %v1578_v3 = vsel %vm6902_vm5, %v5675_v57, %v1577_v1  ;;  %v5914_v2 = vld [vmem:[%s6754_s11 + $0xc0] sm:$0xf] }
 0x133   : > { %v7495_v30 = vadd.f32 %v7442_v44, %v2226_v10  ;;  %v1029_v25 = vsel %vm6898_vm4, %v1024_v45, %v7474_v29  ;;  %v2688_v10 = vrot.slane %v2686_v52, 5  ;;  %v1041_v27 = vshrl.u32 %v674_v48, 16 }
 0x134   : > { %v2674_v40 = vrot.slane %v2673_v47, 4  ;;  %v2684_v44 = vrot.slane %v2683_v13, 4  ;;  %v1044_v49 = vshll.u32 %v674_v48, 16  ;;  %v1141_v12 = vunpack.c.l.b16 %v1029_v25  ;;  %v676_v48 = vld [vmem:[%s6754_s11 + $0xbc] sm:$0x1] }
 0x136   : > { %v1781_v24 = vpop.f32.mrf.mxu2  ;;  %v2679_v1 = vsel %vm6898_vm4, %v2674_v40, %v7486_v21  ;;  %v2689_v47 = vsel %vm6898_vm4, %v2684_v44, %v2688_v10  ;;  %v1424_v40 = vld [vmem:[%s6754_s11 + $0xb8] sm:$0xf]  ;;  %v5916_v44 = vld [vmem:[%s6754_s11 + $0xc8] sm:$0x1] }
 0x137   : > { %v1848_v59 = vadd.f32 %v1781_v24, %v1323_v63  ;;  %v2160_v6 = vpop.f32.mrf.mxu3  ;;  %v1039_v63 = vsel %vm6898_vm4, %v1034_v26, %v1038_v34  ;;  %v1050_v24 = vshll.u32 %v675_v32, 16  ;;  %v1046_v26 = vrot.slane %v1044_v49, 5 }
 0x138   : > { %v1259_v8 = vpop.f32.mrf.mxu1  ;;  %v1142_v57 = vunpack.c.l.b16 %v1039_v63  ;;  %v1060_v49 = vshll.u32 %v676_v48, 16 }
 0x139   : > { %v2227_v15 = vadd.f32 %v2160_v6, %v1848_v59  ;;  %v1324_v37 = vadd.f32 %v1259_v8, %v7115_v18  ;;  %v1581_v59 = vsel %vm6902_vm5, %v1579_v38, %v1580_v7  ;;  %v2691_v6 = vshrl.u32 %v5914_v2, 16 }
 0x13a   : > { %v2909_v19 = vpop.f32.mrf.mxu0  ;;  %v1666_v18 = vunpack.c.l.b16 %v1578_v3  ;;  %v7516_v13 = vrot.slane %v1050_v24, 5  ;;  %v1667_v38 = vunpack.c.l.b16 %v1581_v59  ;;  %v2791_v7 = vunpack.c.l.b16 %v2679_v1  ;;  %v6485_v1 = vld [vmem:[%s6754_s11 + $0xb4] sm:$0xff] }
 0x13b   : > { %1298 = vmatmul.bf16.gmra.mxu1 %v1158_v50  ;;  %1823 = vmatmul.bf16.gmra.mxu2 %v1683_v62  ;;  %v7497_v20 = vadd.f32 %v2906_v23, %v2227_v15  ;;  %v5915_v23 = vld [vmem:[%s6754_s11 + $0xc4] sm:$0xf]  ;;  %v1054_v50 = vshrl.u32 %v675_v32, 16  ;;  %v2694_v62 = vshll.u32 %v5914_v2, 16  ;;  %v1043_v15 = vrot.slane %v1041_v27, 4 }
 0x13c   : > { %2202 = vmatmul.bf16.gmra.mxu3 %v6484_v5  ;;  %v2700_v8 = vshll.u32 %v5915_v23, 16  ;;  %v2704_v5 = vshrl.u32 %v5915_v23, 16  ;;  %v2693_v21 = vrot.slane %v2691_v6, 4  ;;  %v2792_v3 = vunpack.c.l.b16 %v2689_v47 }
 0x13d   : > { %2948 = vmatmul.bf16.gmra.mxu0 %v2808_v14  ;;  %v1056_v52 = vrot.slane %v1054_v50, 4  ;;  %v2696_v32 = vrot.slane %v2694_v62, 5  ;;  %v1159_v23 = vpack.c.b16 %v1142_v57, %v1141_v12  ;;  %v1584_v59 = vrot.slane %v1424_v40, 5 }
 0x13e   : > { %v1784_v51 = vpop.f32.mrf.mxu2  ;;  %v2702_v2 = vrot.slane %v2700_v8, 5  ;;  %v2706_v25 = vrot.slane %v2704_v5, 4  ;;  %v1425_v8 = vld [vmem:[%s6754_s11 + $0xbc] sm:$0x1]  ;;  %v1062_v47 = vrot.slane %v1060_v49, 5 }
 0x13f   : > { %v1849_v22 = vadd.f32 %v1784_v51, %v1324_v37  ;;  %v2163_v29 = vpop.f32.mrf.mxu3  ;;  %v1047_v51 = vor.u32 %v1046_v26, %v1043_v15  ;;  %v1057_v27 = vor.u32 %v1056_v52, %v7516_v13  ;;  %v2697_v6 = vor.u32 %v2696_v32, %v2693_v21  ;;  %v6221_v21 = vld [vmem:[%s6754_s11 + $0x18] sm:$0xf] }
 0x140   : > { %v1261_v14 = vpop.f32.mrf.mxu1  ;;  %v2707_v5 = vor.u32 %v2706_v25, %v2702_v2  ;;  %v1587_v26 = vrot.slane %v1425_v8, 5  ;;  %v3981_v49 = vshll.u32 %v6221_v21, 16 }
 0x141   : > { %v2228_v45 = vadd.f32 %v2163_v29, %v1849_v22  ;;  %v1325_v63 = vadd.f32 %v1261_v14, %v7142_v53  ;;  %v1684_v22 = vpack.c.b16 %v1667_v38, %v1666_v18  ;;  %v1423_v29 = vld [vmem:[%s6754_s11 + $0xb4] sm:$0xe]  ;;  %v2710_v53 = vshll.u32 %v5916_v44, 16 }
 0x142   : > { %v2911_v34 = vpop.f32.mrf.mxu0  ;;  %v1048_v12 = vrot.slane %v1047_v51, 4  ;;  %v1058_v57 = vrot.slane %v1057_v27, 4  ;;  %v5676_v15 = vrot.slane %v1423_v29, 9  ;;  %v1586_v18 = vrot.slane %v1584_v59, 4 }
 0x143   : > { %v7520_v37 = vadd.f32 %v2909_v19, %v2228_v45  ;;  %v2809_v19 = vpack.c.b16 %v2792_v3, %v2791_v7  ;;  %v2698_v52 = vrot.slane %v2697_v6, 4  ;;  %v2708_v7 = vrot.slane %v2707_v5, 4  ;;  %v6222_v3 = vld [vmem:[%s6754_s11 + $0x1c] sm:$0xf]  ;;  %v5966_v5 = vld [vmem:[%s6754_s11 + $0x10] sm:$0xf] }
 0x144   : > { %v2712_v48 = vrot.slane %v2710_v53, 5  ;;  %v1053_v25 = vsel %vm6898_vm4, %v1048_v12, %v7516_v13  ;;  %v3978_v51 = vshrl.u32 %v6221_v21, 16  ;;  %v3126_v21 = vrot.slane %v5966_v5, 5 }
 0x146   : > { %v1786_v10 = vpop.f32.mrf.mxu2  ;;  %v2713_v13 = vsel %vm6898_vm4, %v2708_v7, %v2712_v48  ;;  %v3980_v53 = vrot.slane %v3978_v51, 4  ;;  %v6317_v51 = vld [vmem:[%s6754_s11 + $0x18] sm:$0xe] }
 0x147   : > { %v1850_v24 = vadd.f32 %v1786_v10, %v1325_v63  ;;  %v2165_v50 = vpop.f32.mrf.mxu3  ;;  %v1063_v63 = vsel %vm6898_vm4, %v1058_v57, %v1062_v47  ;;  %v2794_v8 = vunpack.c.l.b16 %v2713_v13 }
 0x148   : > { %v1264_v62 = vpop.f32.mrf.mxu1  ;;  %v1144_v6 = vunpack.c.l.b16 %v1063_v63 }
 0x149   : > { %v2229_v14 = vadd.f32 %v2165_v50, %v1850_v24  ;;  %v1326_v32 = vadd.f32 %v1264_v62, %v7159_v28  ;;  %v2703_v28 = vsel %vm6898_vm4, %v2698_v52, %v2702_v2  ;;  %v3987_v24 = vshll.u32 %v6222_v3, 16 }
 0x14a   : > { %v2914_v45 = vpop.f32.mrf.mxu0  ;;  %v3991_v50 = vshrl.u32 %v6222_v3, 16  ;;  %v6486_v3 = vld [vmem:[%s6754_s11 + $0xc0] sm:$0xff] }
 0x14b   : > { %1303 = vmatmul.bf16.gmra.mxu1 %v1159_v23  ;;  %1828 = vmatmul.bf16.gmra.mxu2 %v1684_v22  ;;  %v7528_v38 = vadd.f32 %v2911_v34, %v2229_v14  ;;  %v1585_v34 = vsel %vm6902_vm5, %v5676_v15, %v1584_v59  ;;  %v1588_v23 = vsel %vm6902_vm5, %v1586_v18, %v1587_v26  ;;  %v1143_v59 = vunpack.c.l.b16 %v1053_v25  ;;  %v6223_v15 = vld [vmem:[%s6754_s11 + $0x20] sm:$0x1]  ;;  %v6318_v26 = vld [vmem:[%s6754_s11 + $0x1c] sm:$0xf]  ;;  %v5965_v25 = vld [vmem:[%s6754_s11 + $0xc] sm:$0xe] }
 0x14c   : > { %2207 = vmatmul.bf16.gmra.mxu3 %v6485_v1  ;;  %v1668_v62 = vunpack.c.l.b16 %v1585_v34  ;;  %v1669_v1 = vunpack.c.l.b16 %v1588_v23  ;;  %v3983_v14 = vrot.slane %v3981_v49, 5  ;;  %v7549_v12 = vrot.slane %v3987_v24, 5  ;;  %v5967_v23 = vld [vmem:[%s6754_s11 + $0x14] sm:$0x1]  ;;  %v6224_v24 = vld [vmem:[%s6754_s11 + $0x24] sm:$0xf] }
 0x14d   : > { %2953 = vmatmul.bf16.gmra.mxu0 %v2809_v19  ;;  %v2793_v19 = vunpack.c.l.b16 %v2703_v28  ;;  %v3993_v57 = vrot.slane %v3991_v50, 4  ;;  %v3997_v34 = vshll.u32 %v6223_v15, 16  ;;  %v4773_v28 = vrot.slane %v6318_v26, 5  ;;  %v6225_v50 = vld [vmem:[%s6754_s11 + $0x28] sm:$0xf] }
 0x14e   : > { %v1789_v40 = vpop.f32.mrf.mxu2  ;;  %v1685_v48 = vpack.c.b16 %v1669_v1, %v1668_v62  ;;  %v3984_v63 = vor.u32 %v3983_v14, %v3980_v53  ;;  %v6013_v13 = vrot.slane %v5965_v25, 9  ;;  %v3128_v49 = vrot.slane %v3126_v21, 4 }
 0x14f   : > { %v1851_v44 = vadd.f32 %v1789_v40, %v1326_v32  ;;  %v2168_v10 = vpop.f32.mrf.mxu3  ;;  %v2810_v40 = vpack.c.b16 %v2794_v8, %v2793_v19  ;;  %v3999_v1 = vrot.slane %v3997_v34, 5  ;;  %v6365_v8 = vrot.slane %v6317_v51, 9  ;;  %v6226_v51 = vld [vmem:[%s6754_s11 + $0x2c] sm:$0x1] }
 0x150   : > { %v1266_v27 = vpop.f32.mrf.mxu1  ;;  %v4775_v5 = vrot.slane %v4773_v28, 4  ;;  %v4011_v15 = vshll.u32 %v6225_v50, 16 }
 0x151   : > { %v2230_v22 = vadd.f32 %v2168_v10, %v1851_v44  ;;  %v1327_v47 = vadd.f32 %v1266_v27, %v7189_v9  ;;  %v3994_v9 = vor.u32 %v3993_v57, %v7549_v12  ;;  %v6319_v27 = vld [vmem:[%s6754_s11 + $0x20] sm:$0x1]  ;;  %v4002_v57 = vshrl.u32 %v6224_v24, 16 }
 0x152   : > { %v2916_v29 = vpop.f32.mrf.mxu0  ;;  %v4776_v53 = vrot.slane %v6319_v27, 5  ;;  %v7579_v34 = vrot.slane %v4011_v15, 5 }
 0x153   : > { %v7546_v2 = vadd.f32 %v2914_v45, %v2230_v22  ;;  %v1160_v45 = vpack.c.b16 %v1144_v6, %v1143_v59  ;;  %v3129_v59 = vrot.slane %v5967_v23, 5  ;;  %v3985_v6 = vrot.slane %v3984_v63, 4 }
 0x154   : > { %v3995_v62 = vrot.slane %v3994_v9, 4  ;;  %v4777_v25 = vsel %vm6902_vm5, %v4775_v5, %v4776_v53  ;;  %v4004_v63 = vrot.slane %v4002_v57, 4  ;;  %v4021_v5 = vshll.u32 %v6226_v51, 16  ;;  %v6511_v57 = vld [vmem:[%s6754_s11 + $0x18] sm:$0xff]  ;;  %v6227_v51 = vld [vmem:[%s6754_s11 + $0x30] sm:$0xf] }
 0x156   : > { %v1791_v18 = vpop.f32.mrf.mxu2 }
 0x157   : > { %v1852_v52 = vadd.f32 %v1791_v18, %v1327_v47  ;;  %v2170_v7 = vpop.f32.mrf.mxu3  ;;  %v4005_v47 = vshll.u32 %v6224_v24, 16  ;;  %v4015_v18 = vshrl.u32 %v6225_v50, 16  ;;  %v4933_v24 = vunpack.c.l.b16 %v4777_v25  ;;  %v6321_v50 = vld [vmem:[%s6754_s11 + $0x28] sm:$0xf] }
 0x158   : > { %v1269_v32 = vpop.f32.mrf.mxu1  ;;  %v4780_v15 = vrot.slane %v6321_v50, 5 }
 0x159   : > { %v2231_v44 = vadd.f32 %v2170_v7, %v1852_v52  ;;  %v1328_v19 = vadd.f32 %v1269_v32, %v7218_v0  ;;  %v3127_v7 = vsel %vm6902_vm5, %v6013_v13, %v3126_v21  ;;  %v3990_v0 = vsel %vm6898_vm4, %v3985_v6, %v7549_v12  ;;  %v5969_v21 = vld [vmem:[%s6754_s11 + $0x1c] sm:$0xf] }
 0x15a   : > { %v2919_v10 = vpop.f32.mrf.mxu0  ;;  %v4007_v9 = vrot.slane %v4005_v47, 5  ;;  %v3285_v12 = vunpack.c.l.b16 %v3127_v7  ;;  %v4410_v13 = vunpack.c.l.b16 %v3990_v0  ;;  %v3133_v6 = vrot.slane %v5969_v21, 5  ;;  %v5970_v47 = vld [vmem:[%s6754_s11 + $0x20] sm:$0x1]  ;;  %v6320_v7 = vld [vmem:[%s6754_s11 + $0x24] sm:$0xe] }
 0x15b   : > { %1308 = vmatmul.bf16.gmra.mxu1 %v1160_v45  ;;  %1833 = vmatmul.bf16.gmra.mxu2 %v1685_v48  ;;  %v7562_v22 = vadd.f32 %v2916_v29, %v2231_v44  ;;  %v3130_v45 = vsel %vm6902_vm5, %v3128_v49, %v3129_v59  ;;  %v4017_v44 = vrot.slane %v4015_v18, 4  ;;  %v4023_v21 = vrot.slane %v4021_v5, 5 }
 0x15c   : > { %2212 = vmatmul.bf16.gmra.mxu3 %v6486_v3  ;;  %v4000_v3 = vsel %vm6898_vm4, %v3995_v62, %v3999_v1  ;;  %v3286_v23 = vunpack.c.l.b16 %v3130_v45  ;;  %v5968_v1 = vld [vmem:[%s6754_s11 + $0x18] sm:$0xe] }
 0x15d   : > { %2958 = vmatmul.bf16.gmra.mxu0 %v2810_v40  ;;  %v4774_v40 = vsel %vm6902_vm5, %v6365_v8, %v4773_v28  ;;  %v4411_v49 = vunpack.c.l.b16 %v4000_v3  ;;  %v4018_v8 = vor.u32 %v4017_v44, %v7579_v34  ;;  %v6014_v0 = vrot.slane %v5968_v1, 9 }
 0x15e   : > { %v1794_v14 = vpop.f32.mrf.mxu2  ;;  %v4932_v28 = vunpack.c.l.b16 %v4774_v40  ;;  %v3136_v3 = vrot.slane %v5970_v47, 5 }
 0x15f   : > { %v1853_v26 = vadd.f32 %v1794_v14, %v1328_v19  ;;  %v2173_v29 = vpop.f32.mrf.mxu3  ;;  %v4008_v19 = vor.u32 %v4007_v9, %v4004_v63  ;;  %v3317_v14 = vpack.c.b16 %v3286_v23, %v3285_v12  ;;  %v4019_v25 = vrot.slane %v4018_v8, 4 }
 0x160   : > { %v1271_v52 = vpop.f32.mrf.mxu1  ;;  %v6366_v63 = vrot.slane %v6320_v7, 9  ;;  %v4782_v9 = vrot.slane %v4780_v15, 4  ;;  %v4029_v8 = vshll.u32 %v6227_v51, 16  ;;  %v5972_v7 = vld [vmem:[%s6754_s11 + $0x28] sm:$0xf] }
 0x161   : > { %v2232_v48 = vadd.f32 %v2173_v29, %v1853_v26  ;;  %v1329_v59 = vadd.f32 %v1271_v52, %v7241_v61  ;;  %v4442_v26 = vpack.c.b16 %v4411_v49, %v4410_v13  ;;  %v4964_v29 = vpack.c.b16 %v4933_v24, %v4932_v28  ;;  %v6322_v61 = vld [vmem:[%s6754_s11 + $0x2c] sm:$0x1]  ;;  %v6228_v13 = vld [vmem:[%s6754_s11 + $0x34] sm:$0xf] }
 0x162   : > { %v2921_v32 = vpop.f32.mrf.mxu0  ;;  %v4009_v40 = vrot.slane %v4008_v19, 4  ;;  %v4783_v44 = vrot.slane %v6322_v61, 5  ;;  %v3134_v28 = vsel %vm6902_vm5, %v6014_v0, %v3133_v6  ;;  %v4026_v19 = vshrl.u32 %v6227_v51, 16 }
 0x163   : > { %v7582_v27 = vadd.f32 %v2919_v10, %v2232_v48  ;;  %v3135_v48 = vrot.slane %v3133_v6, 4  ;;  %v4035_v5 = vshll.u32 %v6228_v13, 16  ;;  %v3140_v51 = vrot.slane %v5972_v7, 5 }
 0x164   : > { %v4014_v50 = vsel %vm6898_vm4, %v4009_v40, %v7579_v34  ;;  %v4784_v1 = vsel %vm6902_vm5, %v4782_v9, %v4783_v44  ;;  %v4028_v61 = vrot.slane %v4026_v19, 4  ;;  %v6229_v40 = vld [vmem:[%s6754_s11 + $0x38] sm:$0x1] }
 0x165   : > { %v3137_v24 = vsel %vm6902_vm5, %v3135_v48, %v3136_v3  ;;  %v4412_v47 = vunpack.c.l.b16 %v4014_v50  ;;  %v7613_v0 = vrot.slane %v4035_v5, 5  ;;  %v4045_v50 = vshll.u32 %v6229_v40, 16  ;;  %v6230_v5 = vld [vmem:[%s6754_s11 + $0x3c] sm:$0xf] }
 0x166   : > { %v1796_v62 = vpop.f32.mrf.mxu2 }
 0x167   : > { %v1854_v10 = vadd.f32 %v1796_v62, %v1329_v59  ;;  %v2175_v53 = vpop.f32.mrf.mxu3  ;;  %v4024_v62 = vsel %vm6898_vm4, %v4019_v25, %v4023_v21  ;;  %v6324_v21 = vld [vmem:[%s6754_s11 + $0x34] sm:$0xf] }
 0x168   : > { %v1274_v18 = vpop.f32.mrf.mxu1 }
 0x169   : > { %v2233_v52 = vadd.f32 %v2175_v53, %v1854_v10  ;;  %v1330_v23 = vadd.f32 %v1274_v18, %v7077_v33  ;;  %v4781_v33 = vsel %vm6902_vm5, %v6366_v63, %v4780_v15  ;;  %v4039_v10 = vshrl.u32 %v6228_v13, 16 }
 0x16a   : > { %v2924_v45 = vpop.f32.mrf.mxu0  ;;  %v4413_v18 = vunpack.c.l.b16 %v4024_v62  ;;  %v4935_v15 = vunpack.c.l.b16 %v4784_v1  ;;  %v5973_v62 = vld [vmem:[%s6754_s11 + $0x2c] sm:$0x1]  ;;  %v6323_v1 = vld [vmem:[%s6754_s11 + $0x30] sm:$0xe] }
 0x16b   : > { %3405 = vmatmul.bf16.vlgmr.msra.gmra.mxu1 %v3317_v14  ;;  %3784 = vmatmul.bf16.vlgmr.msra.gmra.mxu2 %v6511_v57  ;;  %v7592_v12 = vadd.f32 %v2921_v32, %v2233_v52  ;;  %v3287_v14 = vunpack.c.l.b16 %v3134_v28  ;;  %v3288_v57 = vunpack.c.l.b16 %v3137_v24  ;;  %v4031_v52 = vrot.slane %v4029_v8, 5  ;;  %v5971_v28 = vld [vmem:[%s6754_s11 + $0x24] sm:$0xe] }
 0x16c   : > { %4530 = vmatmul.bf16.vlgmr.msra.gmra.mxu3 %v4442_v26  ;;  %v4934_v26 = vunpack.c.l.b16 %v4781_v33  ;;  %v4041_v48 = vrot.slane %v4039_v10, 4  ;;  %v4787_v33 = vrot.slane %v6324_v21, 5  ;;  %v6015_v19 = vrot.slane %v5971_v28, 9  ;;  %v6231_v10 = vld [vmem:[%s6754_s11 + $0x40] sm:$0xf] }
 0x16d   : > { %5052 = vmatmul.bf16.vlgmr.msra.gmra.mxu0 %v4964_v29  ;;  %v3318_v44 = vpack.c.b16 %v3288_v57, %v3287_v14  ;;  %v4032_v24 = vor.u32 %v4031_v52, %v4028_v61  ;;  %v3142_v8 = vrot.slane %v3140_v51, 4  ;;  %v3143_v14 = vrot.slane %v5973_v62, 5 }
 0x16e   : > { %v1799_v49 = vpop.f32.mrf.mxu2  ;;  %v4789_v7 = vrot.slane %v4787_v33, 4  ;;  %v4059_v40 = vshll.u32 %v6231_v10, 16 }
 0x16f   : > { %v1855_v59 = vadd.f32 %v1799_v49, %v1330_v23  ;;  %v2178_v32 = vpop.f32.mrf.mxu3  ;;  %v4443_v23 = vpack.c.b16 %v4413_v18, %v4412_v47  ;;  %v4965_v49 = vpack.c.b16 %v4935_v15, %v4934_v26  ;;  %v4033_v57 = vrot.slane %v4032_v24, 4 }
 0x170   : > { %v1276_v6 = vpop.f32.mrf.mxu1  ;;  %v4047_v18 = vrot.slane %v4045_v50, 5  ;;  %v6367_v15 = vrot.slane %v6323_v1, 9  ;;  %v7643_v50 = vrot.slane %v4059_v40, 5  ;;  %v6232_v1 = vld [vmem:[%s6754_s11 + $0x44] sm:$0x1] }
 0x171   : > { %v2234_v53 = vadd.f32 %v2178_v32, %v1855_v59  ;;  %v1331_v3 = vadd.f32 %v1276_v6, %v7107_v4  ;;  %v4042_v4 = vor.u32 %v4041_v48, %v7613_v0  ;;  %v6325_v6 = vld [vmem:[%s6754_s11 + $0x38] sm:$0x1]  ;;  %v4050_v48 = vshrl.u32 %v6230_v5, 16 }
 0x172   : > { %v2926_v34 = vpop.f32.mrf.mxu0  ;;  %v4790_v61 = vrot.slane %v6325_v6, 5 }
 0x173   : > { %v7610_v29 = vadd.f32 %v2924_v45, %v2234_v53  ;;  %v6512_v45 = vld [vmem:[%s6754_s11 + $0x24] sm:$0xff]  ;;  %v4043_v47 = vrot.slane %v4042_v4, 4  ;;  %v4052_v24 = vrot.slane %v4050_v48, 4  ;;  %v6513_v48 = vld [vmem:[%s6754_s11 + $0x30] sm:$0xff] }
 0x174   : > { %v4791_v28 = vsel %vm6902_vm5, %v4789_v7, %v4790_v61  ;;  %v4069_v7 = vshll.u32 %v6232_v1, 16  ;;  %v6233_v1 = vld [vmem:[%s6754_s11 + $0x48] sm:$0xf] }
 0x176   : > { %v1801_v25 = vpop.f32.mrf.mxu2 }
 0x177   : > { %v1856_v63 = vadd.f32 %v1801_v25, %v1331_v3  ;;  %v2180_v9 = vpop.f32.mrf.mxu3  ;;  %v4053_v3 = vshll.u32 %v6230_v5, 16  ;;  %v4063_v25 = vshrl.u32 %v6231_v10, 16  ;;  %v4937_v5 = vunpack.c.l.b16 %v4791_v28  ;;  %v6327_v10 = vld [vmem:[%s6754_s11 + $0x40] sm:$0xf] }
 0x178   : > { %v1279_v13 = vpop.f32.mrf.mxu1  ;;  %v4794_v40 = vrot.slane %v6327_v10, 5 }
 0x179   : > { %v2235_v59 = vadd.f32 %v2180_v9, %v1856_v63  ;;  %v1332_v26 = vadd.f32 %v1279_v13, %v7129_v41  ;;  %v3141_v9 = vsel %vm6902_vm5, %v6015_v19, %v3140_v51  ;;  %v4038_v41 = vsel %vm6898_vm4, %v4033_v57, %v7613_v0  ;;  %v5975_v51 = vld [vmem:[%s6754_s11 + $0x34] sm:$0xf] }
 0x17a   : > { %v2929_v32 = vpop.f32.mrf.mxu0  ;;  %v4048_v13 = vsel %vm6898_vm4, %v4043_v47, %v4047_v18  ;;  %v4055_v4 = vrot.slane %v4053_v3, 5  ;;  %v3289_v0 = vunpack.c.l.b16 %v3141_v9  ;;  %v4414_v19 = vunpack.c.l.b16 %v4038_v41  ;;  %v5974_v18 = vld [vmem:[%s6754_s11 + $0x30] sm:$0xe]  ;;  %v5976_v3 = vld [vmem:[%s6754_s11 + $0x38] sm:$0x1] }
 0x17b   : > { %3410 = vmatmul.bf16.gmra.mxu1 %v3318_v44  ;;  %3789 = vmatmul.bf16.gmra.mxu2 %v6512_v45  ;;  %v7626_v53 = vadd.f32 %v2926_v34, %v2235_v59  ;;  %v3144_v44 = vsel %vm6902_vm5, %v3142_v8, %v3143_v14  ;;  %v4065_v59 = vrot.slane %v4063_v25, 4  ;;  %v4415_v8 = vunpack.c.l.b16 %v4048_v13  ;;  %v6326_v9 = vld [vmem:[%s6754_s11 + $0x3c] sm:$0xe] }
 0x17c   : > { %4535 = vmatmul.bf16.gmra.mxu3 %v4443_v23  ;;  %v3290_v62 = vunpack.c.l.b16 %v3144_v44  ;;  %v3147_v57 = vrot.slane %v5975_v51, 5  ;;  %v6016_v41 = vrot.slane %v5974_v18, 9  ;;  %v3150_v13 = vrot.slane %v5976_v3, 5 }
 0x17d   : > { %5057 = vmatmul.bf16.gmra.mxu0 %v4965_v49  ;;  %v4788_v49 = vsel %vm6902_vm5, %v6367_v15, %v4787_v33  ;;  %v4066_v15 = vor.u32 %v4065_v59, %v7643_v50  ;;  %v4071_v51 = vrot.slane %v4069_v7, 5 }
 0x17e   : > { %v1804_v52 = vpop.f32.mrf.mxu2  ;;  %v4936_v33 = vunpack.c.l.b16 %v4788_v49 }
 0x17f   : > { %v1857_v21 = vadd.f32 %v1804_v52, %v1332_v26  ;;  %v2183_v34 = vpop.f32.mrf.mxu3  ;;  %v4056_v26 = vor.u32 %v4055_v4, %v4052_v24  ;;  %v3319_v52 = vpack.c.b16 %v3290_v62, %v3289_v0  ;;  %v4067_v28 = vrot.slane %v4066_v15, 4 }
 0x180   : > { %v1281_v63 = vpop.f32.mrf.mxu1  ;;  %v6368_v24 = vrot.slane %v6326_v9, 9  ;;  %v4796_v4 = vrot.slane %v4794_v40, 4  ;;  %v4077_v15 = vshll.u32 %v6233_v1, 16  ;;  %v5978_v9 = vld [vmem:[%s6754_s11 + $0x40] sm:$0xf] }
 0x181   : > { %v2236_v45 = vadd.f32 %v2183_v34, %v1857_v21  ;;  %v1333_v14 = vadd.f32 %v1281_v63, %v7153_v16  ;;  %v4444_v21 = vpack.c.b16 %v4415_v8, %v4414_v19  ;;  %v4966_v34 = vpack.c.b16 %v4937_v5, %v4936_v33  ;;  %v6328_v16 = vld [vmem:[%s6754_s11 + $0x44] sm:$0x1]  ;;  %v6234_v19 = vld [vmem:[%s6754_s11 + $0x4c] sm:$0xf] }
 0x182   : > { %v2931_v23 = vpop.f32.mrf.mxu0  ;;  %v4057_v49 = vrot.slane %v4056_v26, 4  ;;  %v4797_v59 = vrot.slane %v6328_v16, 5  ;;  %v3148_v33 = vsel %vm6902_vm5, %v6016_v41, %v3147_v57  ;;  %v4074_v26 = vshrl.u32 %v6233_v1, 16 }
 0x183   : > { %v7646_v6 = vadd.f32 %v2929_v32, %v2236_v45  ;;  %v3149_v45 = vrot.slane %v3147_v57, 4  ;;  %v4083_v7 = vshll.u32 %v6234_v19, 16  ;;  %v3154_v1 = vrot.slane %v5978_v9, 5 }
 0x184   : > { %v4062_v10 = vsel %vm6898_vm4, %v4057_v49, %v7643_v50  ;;  %v4798_v18 = vsel %vm6902_vm5, %v4796_v4, %v4797_v59  ;;  %v4076_v16 = vrot.slane %v4074_v26, 4  ;;  %v6235_v49 = vld [vmem:[%s6754_s11 + $0x50] sm:$0x1] }
 0x185   : > { %v3151_v5 = vsel %vm6902_vm5, %v3149_v45, %v3150_v13  ;;  %v4416_v3 = vunpack.c.l.b16 %v4062_v10  ;;  %v7677_v41 = vrot.slane %v4083_v7, 5  ;;  %v4093_v10 = vshll.u32 %v6235_v49, 16  ;;  %v6236_v7 = vld [vmem:[%s6754_s11 + $0x54] sm:$0xf] }
 0x186   : > { %v1806_v47 = vpop.f32.mrf.mxu2 }
 0x187   : > { %v1858_v32 = vadd.f32 %v1806_v47, %v1333_v14  ;;  %v2185_v61 = vpop.f32.mrf.mxu3  ;;  %v4072_v47 = vsel %vm6898_vm4, %v4067_v28, %v4071_v51  ;;  %v6330_v51 = vld [vmem:[%s6754_s11 + $0x4c] sm:$0xf] }
 0x188   : > { %v1284_v25 = vpop.f32.mrf.mxu1 }
 0x189   : > { %v2237_v63 = vadd.f32 %v2185_v61, %v1858_v32  ;;  %v1334_v62 = vadd.f32 %v1284_v25, %v7174_v60  ;;  %v4795_v60 = vsel %vm6902_vm5, %v6368_v24, %v4794_v40  ;;  %v4087_v32 = vshrl.u32 %v6234_v19, 16 }
 0x18a   : > { %v2934_v44 = vpop.f32.mrf.mxu0  ;;  %v4417_v25 = vunpack.c.l.b16 %v4072_v47  ;;  %v4939_v40 = vunpack.c.l.b16 %v4798_v18  ;;  %v5979_v47 = vld [vmem:[%s6754_s11 + $0x44] sm:$0x1]  ;;  %v6329_v18 = vld [vmem:[%s6754_s11 + $0x48] sm:$0xe] }
 0x18b   : > { %3415 = vmatmul.bf16.gmra.mxu1 %v3319_v52  ;;  %3794 = vmatmul.bf16.gmra.mxu2 %v6513_v48  ;;  %v7656_v0 = vadd.f32 %v2931_v23, %v2237_v63  ;;  %v3291_v52 = vunpack.c.l.b16 %v3148_v33  ;;  %v3292_v48 = vunpack.c.l.b16 %v3151_v5  ;;  %v4079_v63 = vrot.slane %v4077_v15, 5  ;;  %v5977_v33 = vld [vmem:[%s6754_s11 + $0x3c] sm:$0xe] }
 0x18c   : > { %4540 = vmatmul.bf16.gmra.mxu3 %v4444_v21  ;;  %v4938_v21 = vunpack.c.l.b16 %v4795_v60  ;;  %v4089_v45 = vrot.slane %v4087_v32, 4  ;;  %v4801_v60 = vrot.slane %v6330_v51, 5  ;;  %v6017_v26 = vrot.slane %v5977_v33, 9  ;;  %v6237_v32 = vld [vmem:[%s6754_s11 + $0x58] sm:$0xf] }
 0x18d   : > { %5062 = vmatmul.bf16.gmra.mxu0 %v4966_v34  ;;  %v3320_v59 = vpack.c.b16 %v3292_v48, %v3291_v52  ;;  %v4080_v5 = vor.u32 %v4079_v63, %v4076_v16  ;;  %v3156_v15 = vrot.slane %v3154_v1, 4  ;;  %v3157_v52 = vrot.slane %v5979_v47, 5 }
 0x18e   : > { %v1809_v8 = vpop.f32.mrf.mxu2  ;;  %v4803_v9 = vrot.slane %v4801_v60, 4  ;;  %v4107_v49 = vshll.u32 %v6237_v32, 16 }
 0x18f   : > { %v1859_v14 = vadd.f32 %v1809_v8, %v1334_v62  ;;  %v2188_v23 = vpop.f32.mrf.mxu3  ;;  %v4445_v62 = vpack.c.b16 %v4417_v25, %v4416_v3  ;;  %v4967_v8 = vpack.c.b16 %v4939_v40, %v4938_v21  ;;  %v4081_v48 = vrot.slane %v4080_v5, 4 }
 0x190   : > { %v1286_v57 = vpop.f32.mrf.mxu1  ;;  %v4095_v25 = vrot.slane %v4093_v10, 5  ;;  %v6369_v40 = vrot.slane %v6329_v18, 9  ;;  %v7707_v10 = vrot.slane %v4107_v49, 5  ;;  %v6238_v18 = vld [vmem:[%s6754_s11 + $0x5c] sm:$0x1] }
 0x191   : > { %v2238_v61 = vadd.f32 %v2188_v23, %v1859_v14  ;;  %v1335_v13 = vadd.f32 %v1286_v57, %v7212_v54  ;;  %v4090_v54 = vor.u32 %v4089_v45, %v7677_v41  ;;  %v6331_v57 = vld [vmem:[%s6754_s11 + $0x50] sm:$0x1]  ;;  %v4098_v45 = vshrl.u32 %v6236_v7, 16 }
 0x192   : > { %v2936_v50 = vpop.f32.mrf.mxu0  ;;  %v4804_v16 = vrot.slane %v6331_v57, 5 }
 0x193   : > { %v7674_v34 = vadd.f32 %v2934_v44, %v2238_v61  ;;  %v6514_v44 = vld [vmem:[%s6754_s11 + $0x3c] sm:$0xff]  ;;  %v4091_v3 = vrot.slane %v4090_v54, 4  ;;  %v4100_v5 = vrot.slane %v4098_v45, 4  ;;  %v6515_v45 = vld [vmem:[%s6754_s11 + $0x48] sm:$0xff] }
 0x194   : > { %v4805_v33 = vsel %vm6902_vm5, %v4803_v9, %v4804_v16  ;;  %v4117_v9 = vshll.u32 %v6238_v18, 16  ;;  %v6239_v18 = vld [vmem:[%s6754_s11 + $0x60] sm:$0xf] }
 0x196   : > { %v1811_v28 = vpop.f32.mrf.mxu2 }
 0x197   : > { %v1860_v24 = vadd.f32 %v1811_v28, %v1335_v13  ;;  %v2190_v4 = vpop.f32.mrf.mxu3  ;;  %v4101_v13 = vshll.u32 %v6236_v7, 16  ;;  %v4111_v28 = vshrl.u32 %v6237_v32, 16  ;;  %v4941_v7 = vunpack.c.l.b16 %v4805_v33  ;;  %v6333_v32 = vld [vmem:[%s6754_s11 + $0x58] sm:$0xf] }
 0x198   : > { %v1289_v19 = vpop.f32.mrf.mxu1  ;;  %v4808_v49 = vrot.slane %v6333_v32, 5 }
 0x199   : > { %v2239_v14 = vadd.f32 %v2190_v4, %v1860_v24  ;;  %v1336_v21 = vadd.f32 %v1289_v19, %v7233_v43  ;;  %v3155_v4 = vsel %vm6902_vm5, %v6017_v26, %v3154_v1  ;;  %v4086_v43 = vsel %vm6898_vm4, %v4081_v48, %v7677_v41  ;;  %v5981_v1 = vld [vmem:[%s6754_s11 + $0x4c] sm:$0xf] }
 0x19a   : > { %v2939_v23 = vpop.f32.mrf.mxu0  ;;  %v4096_v19 = vsel %vm6898_vm4, %v4091_v3, %v4095_v25  ;;  %v4103_v54 = vrot.slane %v4101_v13, 5  ;;  %v3293_v41 = vunpack.c.l.b16 %v3155_v4  ;;  %v4418_v26 = vunpack.c.l.b16 %v4086_v43  ;;  %v5980_v25 = vld [vmem:[%s6754_s11 + $0x48] sm:$0xe]  ;;  %v5982_v13 = vld [vmem:[%s6754_s11 + $0x50] sm:$0x1] }
 0x19b   : > { %3420 = vmatmul.bf16.gmra.mxu1 %v3320_v59  ;;  %3799 = vmatmul.bf16.gmra.mxu2 %v6514_v44  ;;  %v7690_v61 = vadd.f32 %v2936_v50, %v2239_v14  ;;  %v3158_v59 = vsel %vm6902_vm5, %v3156_v15, %v3157_v52  ;;  %v4113_v14 = vrot.slane %v4111_v28, 4  ;;  %v4419_v15 = vunpack.c.l.b16 %v4096_v19  ;;  %v6332_v4 = vld [vmem:[%s6754_s11 + $0x54] sm:$0xe] }
 0x19c   : > { %4545 = vmatmul.bf16.gmra.mxu3 %v4445_v62  ;;  %v3294_v47 = vunpack.c.l.b16 %v3158_v59  ;;  %v3161_v48 = vrot.slane %v5981_v1, 5  ;;  %v6018_v43 = vrot.slane %v5980_v25, 9  ;;  %v3164_v19 = vrot.slane %v5982_v13, 5 }
 0x19d   : > { %5067 = vmatmul.bf16.gmra.mxu0 %v4967_v8  ;;  %v4802_v8 = vsel %vm6902_vm5, %v6369_v40, %v4801_v60  ;;  %v4114_v40 = vor.u32 %v4113_v14, %v7707_v10  ;;  %v4119_v1 = vrot.slane %v4117_v9, 5 }
 0x19e   : > { %v1814_v63 = vpop.f32.mrf.mxu2  ;;  %v4940_v60 = vunpack.c.l.b16 %v4802_v8 }
 0x19f   : > { %v1861_v51 = vadd.f32 %v1814_v63, %v1336_v21  ;;  %v2193_v50 = vpop.f32.mrf.mxu3  ;;  %v4104_v21 = vor.u32 %v4103_v54, %v4100_v5  ;;  %v3321_v63 = vpack.c.b16 %v3294_v47, %v3293_v41  ;;  %v4115_v33 = vrot.slane %v4114_v40, 4 }
 0x1a0   : > { %v1291_v24 = vpop.f32.mrf.mxu1  ;;  %v6370_v5 = vrot.slane %v6332_v4, 9  ;;  %v4810_v54 = vrot.slane %v4808_v49, 4  ;;  %v4125_v40 = vshll.u32 %v6239_v18, 16  ;;  %v5984_v4 = vld [vmem:[%s6754_s11 + $0x58] sm:$0xf] }
 0x1a1   : > { %v2240_v44 = vadd.f32 %v2193_v50, %v1861_v51  ;;  %v1337_v52 = vadd.f32 %v1291_v24, %v7257_v35  ;;  %v4446_v51 = vpack.c.b16 %v4419_v15, %v4418_v26  ;;  %v4968_v50 = vpack.c.b16 %v4941_v7, %v4940_v60  ;;  %v6334_v35 = vld [vmem:[%s6754_s11 + $0x5c] sm:$0x1]  ;;  %v6240_v26 = vld [vmem:[%s6754_s11 + $0x64] sm:$0xf] }
 0x1a2   : > { %v2941_v62 = vpop.f32.mrf.mxu0  ;;  %v4105_v8 = vrot.slane %v4104_v21, 4  ;;  %v4811_v14 = vrot.slane %v6334_v35, 5  ;;  %v3162_v60 = vsel %vm6902_vm5, %v6018_v43, %v3161_v48  ;;  %v4122_v21 = vshrl.u32 %v6239_v18, 16 }
 0x1a3   : > { %v7710_v57 = vadd.f32 %v2939_v23, %v2240_v44  ;;  %v3163_v44 = vrot.slane %v3161_v48, 4  ;;  %v4131_v9 = vshll.u32 %v6240_v26, 16  ;;  %v3168_v18 = vrot.slane %v5984_v4, 5 }
 0x1a4   : > { %v4110_v32 = vsel %vm6898_vm4, %v4105_v8, %v7707_v10  ;;  %v4812_v25 = vsel %vm6902_vm5, %v4810_v54, %v4811_v14  ;;  %v4124_v35 = vrot.slane %v4122_v21, 4  ;;  %v6241_v8 = vld [vmem:[%s6754_s11 + $0x68] sm:$0x1] }
 0x1a5   : > { %v3165_v7 = vsel %vm6902_vm5, %v3163_v44, %v3164_v19  ;;  %v4420_v13 = vunpack.c.l.b16 %v4110_v32  ;;  %v7741_v43 = vrot.slane %v4131_v9, 5  ;;  %v4141_v32 = vshll.u32 %v6241_v8, 16  ;;  %v6242_v9 = vld [vmem:[%s6754_s11 + $0x6c] sm:$0xf] }
 0x1a6   : > { %v1816_v3 = vpop.f32.mrf.mxu2  ;;  %v4149_v8 = vshll.u32 %v6242_v9, 16 }
 0x1a7   : > { %v1862_v23 = vadd.f32 %v1816_v3, %v1337_v52  ;;  %v2195_v16 = vpop.f32.mrf.mxu3  ;;  %v4120_v3 = vsel %vm6898_vm4, %v4115_v33, %v4119_v1  ;;  %v6336_v1 = vld [vmem:[%s6754_s11 + $0x64] sm:$0xf] }
 0x1a8   : > { %v1294_v28 = vpop.f32.mrf.mxu1 }
 0x1a9   : > { %v2241_v24 = vadd.f32 %v2195_v16, %v1862_v23  ;;  %v1338_v47 = vadd.f32 %v1294_v28, %v7083_v39  ;;  %v4809_v39 = vsel %vm6902_vm5, %v6370_v5, %v4808_v49  ;;  %v4135_v23 = vshrl.u32 %v6240_v26, 16 }
 0x1aa   : > { %v2944_v59 = vpop.f32.mrf.mxu0  ;;  %v4421_v28 = vunpack.c.l.b16 %v4120_v3  ;;  %v4943_v49 = vunpack.c.l.b16 %v4812_v25  ;;  %v5985_v3 = vld [vmem:[%s6754_s11 + $0x5c] sm:$0x1]  ;;  %v6335_v25 = vld [vmem:[%s6754_s11 + $0x60] sm:$0xe] }
 0x1ab   : > { %3425 = vmatmul.bf16.gmra.mxu1 %v3321_v63  ;;  %3804 = vmatmul.bf16.gmra.mxu2 %v6515_v45  ;;  %v7720_v41 = vadd.f32 %v2941_v62, %v2241_v24  ;;  %v3295_v63 = vunpack.c.l.b16 %v3162_v60  ;;  %v3296_v45 = vunpack.c.l.b16 %v3165_v7  ;;  %v4127_v24 = vrot.slane %v4125_v40, 5  ;;  %v5983_v60 = vld [vmem:[%s6754_s11 + $0x54] sm:$0xe] }
 0x1ac   : > { %4550 = vmatmul.bf16.gmra.mxu3 %v4446_v51  ;;  %v4942_v51 = vunpack.c.l.b16 %v4809_v39  ;;  %v4137_v44 = vrot.slane %v4135_v23, 4  ;;  %v4815_v39 = vrot.slane %v6336_v1, 5  ;;  %v6019_v21 = vrot.slane %v5983_v60, 9  ;;  %v6243_v23 = vld [vmem:[%s6754_s11 + $0x70] sm:$0xf] }
 0x1ad   : > { %5072 = vmatmul.bf16.gmra.mxu0 %v4968_v50  ;;  %v3322_v14 = vpack.c.b16 %v3296_v45, %v3295_v63  ;;  %v4128_v7 = vor.u32 %v4127_v24, %v4124_v35  ;;  %v3170_v40 = vrot.slane %v3168_v18, 4  ;;  %v3171_v63 = vrot.slane %v5985_v3, 5 }
 0x1ae   : > { %v1819_v15 = vpop.f32.mrf.mxu2  ;;  %v6371_v4 = vrot.slane %v6335_v25, 9  ;;  %v4817_v35 = vrot.slane %v4815_v39, 4  ;;  %v4159_v1 = vshrl.u32 %v6243_v23, 16 }
 0x1af   : > { %v1863_v52 = vadd.f32 %v1819_v15, %v1338_v47  ;;  %v2198_v62 = vpop.f32.mrf.mxu3  ;;  %v4447_v47 = vpack.c.b16 %v4421_v28, %v4420_v13  ;;  %v4969_v15 = vpack.c.b16 %v4943_v49, %v4942_v51  ;;  %v4129_v45 = vrot.slane %v4128_v7, 4  ;;  %v8109_v51 = vld [vmem:[#allocation3_spill] sm:$0xff] }
 0x1b0   : > { %v1296_v48 = vpop.f32.mrf.mxu1  ;;  %v4143_v28 = vrot.slane %v4141_v32, 5  ;;  %v4816_v7 = vsel %vm6902_vm5, %v6371_v4, %v4815_v39  ;;  %v4161_v25 = vrot.slane %v4159_v1, 4  ;;  %v5986_v4 = vld [vmem:[%s6754_s11 + $0x60] sm:$0xe]  ;;  %v5988_v1 = vld [vmem:[%s6754_s11 + $0x68] sm:$0x1] }
 0x1b1   : > { %v2242_v16 = vadd.f32 %v2198_v62, %v1863_v52  ;;  %v1339_v19 = vadd.f32 %v1296_v48, %v7111_v11  ;;  %v4138_v11 = vor.u32 %v4137_v44, %v7741_v43  ;;  %v6337_v48 = vld [vmem:[%s6754_s11 + $0x68] sm:$0x1]  ;;  %v4944_v39 = vunpack.c.l.b16 %v4816_v7 }
 0x1b2   : > { %v2946_v10 = vpop.f32.mrf.mxu0  ;;  %v4818_v24 = vrot.slane %v6337_v48, 5  ;;  %v6020_v7 = vrot.slane %v5986_v4, 9 }
 0x1b3   : > { %v7738_v50 = vadd.f32 %v2944_v59, %v2242_v16  ;;  %v6516_v59 = vld [vmem:[%s6754_s11 + $0x54] sm:$0xff]  ;;  %v4139_v13 = vrot.slane %v4138_v11, 4 }
 0x1b4   : > { %v4819_v11 = vsel %vm6902_vm5, %v4817_v35, %v4818_v24 }
 0x1b5   : > { %v4144_v60 = vsel %vm6898_vm4, %v4139_v13, %v4143_v28  ;;  %v8110_v13 = vld [vmem:[#allocation4_spill] sm:$0xff] }
 0x1b6   : > { %v1821_v33 = vpop.f32.mrf.mxu2 }
 0x1b7   : > { %v1864_v5 = vadd.f32 %v1821_v33, %v1339_v19  ;;  %v2200_v54 = vpop.f32.mrf.mxu3  ;;  %v4146_v19 = vshrl.u32 %v6242_v9, 16  ;;  %v4155_v33 = vshll.u32 %v6243_v23, 16  ;;  %v4423_v23 = vunpack.c.l.b16 %v4144_v60 }
 0x1b8   : > { %v1299_v26 = vpop.f32.mrf.mxu1 }
 0x1b9   : > { %v2243_v52 = vadd.f32 %v2200_v54, %v1864_v5  ;;  %v1340_v49 = vadd.f32 %v1299_v26, %v8109_v51  ;;  %v4148_v32 = vrot.slane %v4146_v19, 4  ;;  %v7771_v3 = vrot.slane %v4155_v33, 5  ;;  %v6517_v33 = vld [vmem:[%s6754_s11 + $0x60] sm:$0xff] }
 0x1ba   : > { %v2949_v62 = vpop.f32.mrf.mxu0 }
 0x1bb   : > { %3430 = vmatmul.bf16.gmra.mxu1 %v3322_v14  ;;  %3809 = vmatmul.bf16.gmra.mxu2 %v6516_v59  ;;  %v7754_v16 = vadd.f32 %v2946_v10, %v2243_v52  ;;  %v3169_v14 = vsel %vm6902_vm5, %v6019_v21, %v3168_v18  ;;  %v3172_v59 = vsel %vm6902_vm5, %v3170_v40, %v3171_v63  ;;  %v5987_v18 = vld [vmem:[%s6754_s11 + $0x64] sm:$0xf]  ;;  %v4151_v52 = vrot.slane %v4149_v8, 5  ;;  %v6244_v21 = vld [vmem:[%s6754_s11 + $0x74] sm:$0x1] }
 0x1bc   : > { %4555 = vmatmul.bf16.gmra.mxu3 %v4447_v47  ;;  %v4134_v47 = vsel %vm6898_vm4, %v4129_v45, %v7741_v43  ;;  %v3297_v43 = vunpack.c.l.b16 %v3169_v14  ;;  %v3298_v48 = vunpack.c.l.b16 %v3172_v59  ;;  %v4945_v63 = vunpack.c.l.b16 %v4819_v11  ;;  %v6339_v45 = vld [vmem:[%s6754_s11 + $0x70] sm:$0xf] }
 0x1bd   : > { %5077 = vmatmul.bf16.gmra.mxu0 %v4969_v15  ;;  %v4422_v9 = vunpack.c.l.b16 %v4134_v47  ;;  %v3175_v51 = vrot.slane %v5987_v18, 5  ;;  %v4152_v35 = vor.u32 %v4151_v52, %v4148_v32  ;;  %v4162_v24 = vor.u32 %v4161_v25, %v7771_v3  ;;  %v6338_v47 = vld [vmem:[%s6754_s11 + $0x6c] sm:$0xe] }
 0x1be   : > { %v1824_v44 = vpop.f32.mrf.mxu2  ;;  %v3323_v8 = vpack.c.b16 %v3298_v48, %v3297_v43  ;;  %v4970_v59 = vpack.c.b16 %v4945_v63, %v4944_v39  ;;  %v3178_v18 = vrot.slane %v5988_v1, 5  ;;  %v6372_v43 = vrot.slane %v6338_v47, 9  ;;  %v6245_v39 = vld [vmem:[%s6754_s11 + $0x78] sm:$0xf]  ;;  %v6246_v63 = vld [vmem:[%s6754_s11 + $0x7c] sm:$0xf] }
 0x1bf   : > { %v1865_v5 = vadd.f32 %v1824_v44, %v1340_v49  ;;  %v2203_v10 = vpop.f32.mrf.mxu3  ;;  %v4165_v44 = vshll.u32 %v6244_v21, 16  ;;  %v4448_v14 = vpack.c.b16 %v4423_v23, %v4422_v9  ;;  %v3177_v11 = vrot.slane %v3175_v51, 4  ;;  %v8111_v9 = vld [vmem:[#allocation5_spill] sm:$0xff] }
 0x1c0   : > { %v1301_v54 = vpop.f32.mrf.mxu1  ;;  %v4153_v32 = vrot.slane %v4152_v35, 4  ;;  %v4163_v52 = vrot.slane %v4162_v24, 4  ;;  %v4183_v1 = vshrl.u32 %v6246_v63, 16 }
 0x1c1   : > { %v2244_v26 = vadd.f32 %v2203_v10, %v1865_v5  ;;  %v1341_v28 = vadd.f32 %v1301_v54, %v8110_v13  ;;  %v4822_v5 = vrot.slane %v6339_v45, 5  ;;  %v6340_v54 = vld [vmem:[%s6754_s11 + $0x74] sm:$0x1]  ;;  %v4167_v25 = vrot.slane %v4165_v44, 5 }
 0x1c2   : > { %v2951_v15 = vpop.f32.mrf.mxu0  ;;  %v4825_v21 = vrot.slane %v6340_v54, 5  ;;  %v4158_v4 = vsel %vm6898_vm4, %v4153_v32, %v7771_v3 }
 0x1c3   : > { %v7774_v40 = vadd.f32 %v2949_v62, %v2244_v26  ;;  %v4824_v48 = vrot.slane %v4822_v5, 4  ;;  %v4168_v24 = vsel %vm6898_vm4, %v4163_v52, %v4167_v25  ;;  %v4823_v44 = vsel %vm6902_vm5, %v6372_v43, %v4822_v5  ;;  %v8112_v43 = vld [vmem:[#allocation6_spill] sm:$0xff] }
 0x1c4   : > { %v4424_v47 = vunpack.c.l.b16 %v4158_v4  ;;  %v4425_v54 = vunpack.c.l.b16 %v4168_v24  ;;  %v4185_v25 = vrot.slane %v4183_v1, 4  ;;  %v5991_v24 = vld [vmem:[%s6754_s11 + $0x74] sm:$0x1]  ;;  %v6341_v1 = vld [vmem:[%s6754_s11 + $0x78] sm:$0xe] }
 0x1c6   : > { %v1826_v49 = vpop.f32.mrf.mxu2 }
 0x1c7   : > { %v1866_v62 = vadd.f32 %v1826_v49, %v1341_v28  ;;  %v2205_v19 = vpop.f32.mrf.mxu3  ;;  %v3176_v28 = vsel %vm6902_vm5, %v6020_v7, %v3175_v51  ;;  %v3179_v49 = vsel %vm6902_vm5, %v3177_v11, %v3178_v18  ;;  %v5990_v11 = vld [vmem:[%s6754_s11 + $0x70] sm:$0xf] }
 0x1c8   : > { %v1304_v10 = vpop.f32.mrf.mxu1 }
 0x1c9   : > { %v2245_v26 = vadd.f32 %v2205_v19, %v1866_v62  ;;  %v1342_v23 = vadd.f32 %v1304_v10, %v8111_v9  ;;  %v4826_v62 = vsel %vm6902_vm5, %v4824_v48, %v4825_v21  ;;  %v4170_v19 = vshrl.u32 %v6245_v39, 16  ;;  %v6247_v21 = vld [vmem:[%s6754_s11 + $0x80] sm:$0x1] }
 0x1ca   : > { %v2954_v60 = vpop.f32.mrf.mxu0  ;;  %v4947_v5 = vunpack.c.l.b16 %v4826_v62 }
 0x1cb   : > { %3435 = vmatmul.bf16.gmra.mxu1 %v3323_v8  ;;  %3814 = vmatmul.bf16.gmra.mxu2 %v6517_v33  ;;  %v7784_v45 = vadd.f32 %v2951_v15, %v2245_v26  ;;  %v4173_v8 = vshll.u32 %v6245_v39, 16  ;;  %v4179_v33 = vshll.u32 %v6246_v63, 16  ;;  %v4946_v26 = vunpack.c.l.b16 %v4823_v44 }
 0x1cc   : > { %4560 = vmatmul.bf16.gmra.mxu3 %v4448_v14  ;;  %v3299_v14 = vunpack.c.l.b16 %v3176_v28  ;;  %v4172_v18 = vrot.slane %v4170_v19, 4  ;;  %v6518_v28 = vld [vmem:[%s6754_s11 + $0x6c] sm:$0xff]  ;;  %v4189_v19 = vshll.u32 %v6247_v21, 16 }
 0x1cd   : > { %5082 = vmatmul.bf16.gmra.mxu0 %v4970_v59  ;;  %v3300_v59 = vunpack.c.l.b16 %v3179_v49  ;;  %v4175_v32 = vrot.slane %v4173_v8, 5  ;;  %v4181_v52 = vrot.slane %v4179_v33, 5  ;;  %v3182_v49 = vrot.slane %v5990_v11, 5 }
 0x1ce   : > { %v1829_v13 = vpop.f32.mrf.mxu2 }
 0x1cf   : > { %v1867_v35 = vadd.f32 %v1829_v13, %v1342_v23  ;;  %v2208_v15 = vpop.f32.mrf.mxu3  ;;  %v6342_v23 = vld [vmem:[%s6754_s11 + $0x7c] sm:$0xf]  ;;  %v3324_v13 = vpack.c.b16 %v3300_v59, %v3299_v14  ;;  %v4176_v44 = vor.u32 %v4175_v32, %v4172_v18  ;;  %v4186_v62 = vor.u32 %v4185_v25, %v4181_v52  ;;  %v8114_v32 = vld [vmem:[#allocation7_spill] sm:$0xff] }
 0x1d0   : > { %v1306_v51 = vpop.f32.mrf.mxu1  ;;  %v4829_v33 = vrot.slane %v6342_v23, 5  ;;  %v3184_v59 = vrot.slane %v3182_v49, 4  ;;  %v4191_v18 = vrot.slane %v4189_v19, 5 }
 0x1d1   : > { %v2246_v10 = vadd.f32 %v2208_v15, %v1867_v35  ;;  %v1343_v48 = vadd.f32 %v1306_v51, %v8112_v43  ;;  %v4971_v35 = vpack.c.b16 %v4947_v5, %v4946_v26  ;;  %v5989_v15 = vld [vmem:[%s6754_s11 + $0x6c] sm:$0xe]  ;;  %v4177_v26 = vrot.slane %v4176_v44, 4 }
 0x1d2   : > { %v2956_v3 = vpop.f32.mrf.mxu0  ;;  %v6021_v14 = vrot.slane %v5989_v15, 9  ;;  %v4187_v5 = vrot.slane %v4186_v62, 4  ;;  %v6373_v43 = vrot.slane %v6341_v1, 9 }
 0x1d3   : > { %v7802_v7 = vadd.f32 %v2954_v60, %v2246_v10  ;;  %v4449_v60 = vpack.c.b16 %v4425_v54, %v4424_v47  ;;  %v6343_v10 = vld [vmem:[%s6754_s11 + $0x80] sm:$0x1]  ;;  %v3185_v47 = vrot.slane %v5991_v24, 5  ;;  %v6248_v54 = vld [vmem:[%s6754_s11 + $0x84] sm:$0xf] }
 0x1d4   : > { %v4832_v21 = vrot.slane %v6343_v10, 5  ;;  %v4192_v15 = vsel %vm6898_vm4, %v4187_v5, %v4191_v18  ;;  %v5993_v10 = vld [vmem:[%s6754_s11 + $0x7c] sm:$0xf] }
 0x1d6   : > { %v1831_v9 = vpop.f32.mrf.mxu2 }
 0x1d7   : > { %v1868_v39 = vadd.f32 %v1831_v9, %v1343_v48  ;;  %v2210_v63 = vpop.f32.mrf.mxu3  ;;  %v4831_v48 = vrot.slane %v4829_v33, 4  ;;  %v6249_v9 = vld [vmem:[%s6754_s11 + $0x88] sm:$0xf] }
 0x1d8   : > { %v1309_v4 = vpop.f32.mrf.mxu1  ;;  %v4203_v24 = vshll.u32 %v6249_v9, 16  ;;  %v4207_v44 = vshrl.u32 %v6249_v9, 16 }
 0x1d9   : > { %v2247_v51 = vadd.f32 %v2210_v63, %v1868_v39  ;;  %v1344_v25 = vadd.f32 %v1309_v4, %v8114_v32  ;;  %v4194_v39 = vshrl.u32 %v6248_v54, 16  ;;  %v4197_v63 = vshll.u32 %v6248_v54, 16 }
 0x1da   : > { %v2959_v8 = vpop.f32.mrf.mxu0  ;;  %v4182_v4 = vsel %vm6898_vm4, %v4177_v26, %v4181_v52  ;;  %v4427_v54 = vunpack.c.l.b16 %v4192_v15  ;;  %v4209_v32 = vrot.slane %v4207_v44, 4 }
 0x1db   : > { %3440 = vmatmul.bf16.gmra.mxu1 %v3324_v13  ;;  %3819 = vmatmul.bf16.gmra.mxu2 %v6518_v28  ;;  %v7814_v11 = vadd.f32 %v2956_v3, %v2247_v51  ;;  %v3183_v3 = vsel %vm6902_vm5, %v6021_v14, %v3182_v49  ;;  %v4830_v51 = vsel %vm6902_vm5, %v6373_v43, %v4829_v33  ;;  %v4196_v14 = vrot.slane %v4194_v39, 4 }
 0x1dc   : > { %4565 = vmatmul.bf16.gmra.mxu3 %v4449_v60  ;;  %v3186_v60 = vsel %vm6902_vm5, %v3184_v59, %v3185_v47  ;;  %v4833_v49 = vsel %vm6902_vm5, %v4831_v48, %v4832_v21  ;;  %v3301_v1 = vunpack.c.l.b16 %v3183_v3  ;;  %v4199_v52 = vrot.slane %v4197_v63, 5  ;;  %v6250_v21 = vld [vmem:[%s6754_s11 + $0x8c] sm:$0x1] }
 0x1dd   : > { %8113 = vst [vmem:[#allocation3_spill] sm:$0xff] %v7814_v11  ;;  %5087 = vmatmul.bf16.gmra.mxu0 %v4971_v35  ;;  %v3302_v59 = vunpack.c.l.b16 %v3186_v60  ;;  %v4426_v47 = vunpack.c.l.b16 %v4182_v4  ;;  %v4948_v5 = vunpack.c.l.b16 %v4830_v51  ;;  %v4949_v18 = vunpack.c.l.b16 %v4833_v49  ;;  %v5994_v60 = vld [vmem:[%s6754_s11 + $0x80] sm:$0x1] }
 0x1de   : > { %v1834_v23 = vpop.f32.mrf.mxu2  ;;  %v4205_v33 = vrot.slane %v4203_v24, 5  ;;  %v3189_v48 = vrot.slane %v5993_v10, 5  ;;  %v4200_v39 = vor.u32 %v4199_v52, %v4196_v14  ;;  %v4213_v44 = vshll.u32 %v6250_v21, 16 }
 0x1df   : > { %v1869_v13 = vadd.f32 %v1834_v23, %v1344_v25  ;;  %v2213_v28 = vpop.f32.mrf.mxu3  ;;  %v8116_v25 = vld [vmem:[#allocation8_spill] sm:$0xff]  ;;  %v5992_v23 = vld [vmem:[%s6754_s11 + $0x78] sm:$0xe]  ;;  %v3325_v3 = vpack.c.b16 %v3302_v59, %v3301_v1  ;;  %v4450_v15 = vpack.c.b16 %v4427_v54, %v4426_v47  ;;  %v3192_v52 = vrot.slane %v5994_v60, 5  ;;  %v6251_v54 = vld [vmem:[%s6754_s11 + $0x90] sm:$0xf] }
 0x1e0   : > { %v1311_v35 = vpop.f32.mrf.mxu1  ;;  %v4210_v24 = vor.u32 %v4209_v32, %v4205_v33  ;;  %v6022_v49 = vrot.slane %v5992_v23, 9  ;;  %v3191_v10 = vrot.slane %v3189_v48, 4  ;;  %v6346_v1 = vld [vmem:[%s6754_s11 + $0x8c] sm:$0x1]  ;;  %v8118_v23 = vld [vmem:[#allocation9_spill] sm:$0xff]  ;;  %v4221_v60 = vshll.u32 %v6251_v54, 16 }
 0x1e1   : > { %v2248_v62 = vadd.f32 %v2213_v28, %v1869_v13  ;;  %v1345_v43 = vadd.f32 %v1311_v35, %v8116_v25  ;;  %v6345_v13 = vld [vmem:[%s6754_s11 + $0x88] sm:$0xf]  ;;  %v4201_v25 = vrot.slane %v4200_v39, 4 }
 0x1e2   : > { %v2961_v19 = vpop.f32.mrf.mxu0  ;;  %v4836_v14 = vrot.slane %v6345_v13, 5  ;;  %v4211_v47 = vrot.slane %v4210_v24, 4 }
 0x1e3   : > { %v7831_v26 = vadd.f32 %v2959_v8, %v2248_v62  ;;  %v6519_v8 = vld [vmem:[%s6754_s11 + $0x78] sm:$0xff]  ;;  %v4972_v62 = vpack.c.b16 %v4949_v18, %v4948_v5  ;;  %v6252_v5 = vld [vmem:[%s6754_s11 + $0x94] sm:$0xf]  ;;  %v4215_v18 = vrot.slane %v4213_v44, 5 }
 0x1e4   : > { %v4838_v21 = vrot.slane %v4836_v14, 4 }
 0x1e5   : > { %8115 = vst [vmem:[#allocation4_spill] sm:$0xff] %v7831_v26 }
 0x1e6   : > { %v1836_v9 = vpop.f32.mrf.mxu2 }
 0x1e7   : > { %v1870_v63 = vadd.f32 %v1836_v9, %v1345_v43  ;;  %v2215_v28 = vpop.f32.mrf.mxu3  ;;  %v6344_v43 = vld [vmem:[%s6754_s11 + $0x84] sm:$0xe]  ;;  %v4839_v9 = vrot.slane %v6346_v1, 5  ;;  %v4223_v1 = vrot.slane %v4221_v60, 5 }
 0x1e8   : > { %v3406_v4 = vpop.f32.mrf.mxu1  ;;  %v6374_v32 = vrot.slane %v6344_v43, 9  ;;  %v5995_v60 = vld [vmem:[%s6754_s11 + $0x84] sm:$0xe] }
 0x1e9   : > { %v2249_v35 = vadd.f32 %v2215_v28, %v1870_v63  ;;  %v3486_v13 = vadd.f32 %v3406_v4, %v8118_v23  ;;  %v3190_v63 = vsel %vm6902_vm5, %v6022_v49, %v3189_v48  ;;  %v4206_v28 = vsel %vm6898_vm4, %v4201_v25, %v4205_v33  ;;  %v5996_v25 = vld [vmem:[%s6754_s11 + $0x88] sm:$0xf]  ;;  %v6253_v23 = vld [vmem:[%s6754_s11 + $0x98] sm:$0x1] }
 0x1ea   : > { %v7839_v51 = vpop.f32.mrf.mxu0  ;;  %v4216_v48 = vsel %vm6898_vm4, %v4211_v47, %v4215_v18  ;;  %v4837_v33 = vsel %vm6902_vm5, %v6374_v32, %v4836_v14  ;;  %v3303_v49 = vunpack.c.l.b16 %v3190_v63 }
 0x1eb   : > { %3445 = vmatmul.bf16.gmra.mxu1 %v3325_v3  ;;  %3824 = vmatmul.bf16.gmra.mxu2 %v6519_v8  ;;  %v7843_v59 = vadd.f32 %v2961_v19, %v2249_v35  ;;  %v3193_v19 = vsel %vm6902_vm5, %v3191_v10, %v3192_v52  ;;  %v4218_v8 = vshrl.u32 %v6251_v54, 16  ;;  %v4840_v35 = vsel %vm6902_vm5, %v4838_v21, %v4839_v9  ;;  %v6348_v9 = vld [vmem:[%s6754_s11 + $0x94] sm:$0xf] }
 0x1ec   : > { %4570 = vmatmul.bf16.gmra.mxu3 %v4450_v15  ;;  %v4227_v15 = vshll.u32 %v6252_v5, 16  ;;  %v3304_v10 = vunpack.c.l.b16 %v3193_v19  ;;  %v4428_v52 = vunpack.c.l.b16 %v4206_v28  ;;  %v4429_v14 = vunpack.c.l.b16 %v4216_v48 }
 0x1ed   : > { %8117 = vst [vmem:[#allocation5_spill] sm:$0xff] %v7843_v59  ;;  %5092 = vmatmul.bf16.gmra.mxu0 %v4972_v62  ;;  %v4231_v62 = vshrl.u32 %v6252_v5, 16  ;;  %v4220_v43 = vrot.slane %v4218_v8, 4  ;;  %v4950_v18 = vunpack.c.l.b16 %v4837_v33  ;;  %v4951_v32 = vunpack.c.l.b16 %v4840_v35 }
 0x1ee   : > { %v3785_v39 = vpop.f32.mrf.mxu2  ;;  %v7868_v54 = vrot.slane %v4227_v15, 5  ;;  %v3326_v63 = vpack.c.b16 %v3304_v10, %v3303_v49  ;;  %v3196_v19 = vrot.slane %v5996_v25, 5  ;;  %v5997_v15 = vld [vmem:[%s6754_s11 + $0x8c] sm:$0x1]  ;;  %v4451_v35 = vpack.c.b16 %v4429_v14, %v4428_v52  ;;  %v6347_v25 = vld [vmem:[%s6754_s11 + $0x90] sm:$0xe] }
 0x1ef   : > { %v4531_v3 = vpop.f32.mrf.mxu3  ;;  %v3865_v24 = vadd.f32 %v3785_v39, %v3486_v13  ;;  %v4233_v47 = vrot.slane %v4231_v62, 4  ;;  %v8120_v13 = vld [vmem:[#allocation10_spill] sm:$0xff]  ;;  %v4224_v62 = vor.u32 %v4223_v1, %v4220_v43  ;;  %v4843_v59 = vrot.slane %v6348_v9, 5 }
 0x1f0   : > { %v3408_v44 = vpop.f32.mrf.mxu1  ;;  %v3198_v26 = vrot.slane %v3196_v19, 4  ;;  %v3199_v11 = vrot.slane %v5997_v15, 5  ;;  %v6375_v14 = vrot.slane %v6347_v25, 9 }
 0x1f1   : > { %v4611_v5 = vadd.f32 %v4531_v3, %v3865_v24  ;;  %v3487_v21 = vadd.f32 %v3408_v44, %v8120_v13  ;;  %v6520_v3 = vld [vmem:[%s6754_s11 + $0x84] sm:$0xff]  ;;  %v4234_v24 = vor.u32 %v4233_v47, %v7868_v54  ;;  %v4237_v44 = vshll.u32 %v6253_v23, 16  ;;  %v6255_v23 = vld [vmem:[%s6754_s11 + $0xa0] sm:$0xf] }
 0x1f2   : > { %v5055_v4 = vpop.f32.mrf.mxu0  ;;  %v4973_v13 = vpack.c.b16 %v4951_v32, %v4950_v18  ;;  %v4225_v1 = vrot.slane %v4224_v62, 4  ;;  %v4845_v18 = vrot.slane %v4843_v59, 4 }
 0x1f3   : > { %v5133_v48 = vadd.f32 %v7839_v51, %v4611_v5  ;;  %v4235_v47 = vrot.slane %v4234_v24, 4  ;;  %v4239_v51 = vrot.slane %v4237_v44, 5  ;;  %v6254_v5 = vld [vmem:[%s6754_s11 + $0x9c] sm:$0xf] }
 0x1f4   : > { %v4242_v15 = vshrl.u32 %v6254_v5, 16  ;;  %v4245_v62 = vshll.u32 %v6254_v5, 16 }
 0x1f5   : > { %v5325_v52 = vmul.f32 %v5133_v48, %v5133_v48 }
 0x1f6   : > { %v3787_v39 = vpop.f32.mrf.mxu2 }
 0x1f7   : > { %v3866_v28 = vadd.f32 %v3787_v39, %v3487_v21  ;;  %v4533_v8 = vpop.f32.mrf.mxu3  ;;  %v6349_v21 = vld [vmem:[%s6754_s11 + $0x98] sm:$0x1]  ;;  %v6023_v39 = vrot.slane %v5995_v60, 9  ;;  %v3200_v60 = vsel %vm6902_vm5, %v3198_v26, %v3199_v11  ;;  %v4844_v11 = vsel %vm6902_vm5, %v6375_v14, %v4843_v59 }
 0x1f8   : > { %v3411_v33 = vpop.f32.mrf.mxu1  ;;  %v4846_v32 = vrot.slane %v6349_v21, 5  ;;  %v4952_v59 = vunpack.c.l.b16 %v4844_v11 }
 0x1f9   : > { %v4612_v49 = vadd.f32 %v4533_v8, %v3866_v28  ;;  %v3488_v28 = vadd.f32 %v3411_v33, %v7357_v56  ;;  %v4230_v56 = vsel %vm6898_vm4, %v4225_v1, %v7868_v54 }
 0x1fa   : > { %v5058_v10 = vpop.f32.mrf.mxu0  ;;  %v4847_v26 = vsel %vm6902_vm5, %v4845_v18, %v4846_v32 }
 0x1fb   : > { %v5134_v43 = vadd.f32 %v5055_v4, %v4612_v49  ;;  %3450 = vmatmul.bf16.gmra.mxu1 %v3326_v63  ;;  %3829 = vmatmul.bf16.gmra.mxu2 %v6520_v3  ;;  %v3197_v3 = vsel %vm6902_vm5, %v6023_v39, %v3196_v19  ;;  %v4255_v49 = vshrl.u32 %v6255_v23, 16  ;;  %v4240_v19 = vsel %vm6898_vm4, %v4235_v47, %v4239_v51 }
 0x1fc   : > { %4575 = vmatmul.bf16.gmra.mxu3 %v4451_v35  ;;  %v3305_v21 = vunpack.c.l.b16 %v3197_v3  ;;  %v3306_v39 = vunpack.c.l.b16 %v3200_v60  ;;  %v4431_v47 = vunpack.c.l.b16 %v4240_v19  ;;  %v4953_v51 = vunpack.c.l.b16 %v4847_v26 }
 0x1fd   : > { %5097 = vmatmul.bf16.gmra.mxu0 %v4973_v13  ;;  %v6554_v4 = vpack.c.bf16 %v5134_v43, %v5133_v48  ;;  %v5293_v9 = vadd.f32 %v5134_v43, %v5133_v48  ;;  %v5326_v63 = vmul.f32 %v5134_v43, %v5134_v43  ;;  %v4251_v13 = vshll.u32 %v6255_v23, 16 }
 0x1fe   : > { %v3790_v8 = vpop.f32.mrf.mxu2  ;;  %v4244_v43 = vrot.slane %v4242_v15, 4  ;;  %v4247_v23 = vrot.slane %v4245_v62, 5  ;;  %v4257_v1 = vrot.slane %v4255_v49, 4 }
 0x1ff   : > { %6555 = vst [vmem:[%s7891_s12] sm:$0xff] %v6554_v4   ;;  %v5357_v24 = vadd.f32 %v5326_v63, %v5325_v52  ;;  %v3867_v44 = vadd.f32 %v3790_v8, %v3488_v28  ;;  %v4536_v35 = vpop.f32.mrf.mxu3  ;;  %v5999_v52 = vld [vmem:[%s6754_s11 + $0x94] sm:$0xf]  ;;  %v7910_v54 = vrot.slane %v4251_v13, 5  ;;  %v4430_v4 = vunpack.c.l.b16 %v4230_v56  ;;  %v6256_v63 = vld [vmem:[%s6754_s11 + $0xa4] sm:$0x1] }
 0x200   : > { %v3413_v48 = vpop.f32.mrf.mxu1  ;;  %v6351_v28 = vld [vmem:[%s6754_s11 + $0xa0] sm:$0xf]  ;;  %v3203_v3 = vrot.slane %v5999_v52, 5  ;;  %v6000_v13 = vld [vmem:[%s6754_s11 + $0x98] sm:$0x1]  ;;  %v4248_v49 = vor.u32 %v4247_v23, %v4244_v43 }
 0x201   : > { %v4613_v33 = vadd.f32 %v4536_v35, %v3867_v44  ;;  %v3489_v32 = vadd.f32 %v3413_v48, %v7359_v58  ;;  %v6521_v44 = vld [vmem:[%s6754_s11 + $0x90] sm:$0xff]  ;;  %v4258_v56 = vor.u32 %v4257_v1, %v7910_v54  ;;  %v4974_v58 = vpack.c.b16 %v4953_v51, %v4952_v59  ;;  %v6257_v1 = vld [vmem:[%s6754_s11 + $0xa8] sm:$0xf] }
 0x202   : > { %v5060_v25 = vpop.f32.mrf.mxu0  ;;  %v5998_v35 = vld [vmem:[%s6754_s11 + $0x90] sm:$0xe]  ;;  %v4261_v48 = vshll.u32 %v6256_v63, 16  ;;  %v4850_v19 = vrot.slane %v6351_v28, 5  ;;  %v3205_v52 = vrot.slane %v3203_v3, 4  ;;  %v4249_v43 = vrot.slane %v4248_v49, 4 }
 0x203   : > { %v5135_v5 = vadd.f32 %v5058_v10, %v4613_v33  ;;  %v3327_v10 = vpack.c.b16 %v3306_v39, %v3305_v21  ;;  %v4452_v33 = vpack.c.b16 %v4431_v47, %v4430_v4  ;;  %v6350_v21 = vld [vmem:[%s6754_s11 + $0x9c] sm:$0xe]  ;;  %v6352_v39 = vld [vmem:[%s6754_s11 + $0xa4] sm:$0x1]  ;;  %v4259_v23 = vrot.slane %v4258_v56, 4 }
 0x204   : > { %v4263_v4 = vrot.slane %v4261_v48, 5  ;;  %v6376_v47 = vrot.slane %v6350_v21, 9  ;;  %v4852_v59 = vrot.slane %v4850_v19, 4  ;;  %v4853_v51 = vrot.slane %v6352_v39, 5  ;;  %v6258_v63 = vld [vmem:[%s6754_s11 + $0xac] sm:$0xf] }
 0x205   : > { %v5294_v14 = vadd.f32 %v5293_v9, %v5135_v5  ;;  %v5327_v18 = vmul.f32 %v5135_v5, %v5135_v5 }
 0x206   : > { %v3792_v8 = vpop.f32.mrf.mxu2 }
 0x207   : > { %v5358_v60 = vadd.f32 %v5357_v24, %v5327_v18  ;;  %v3868_v15 = vadd.f32 %v3792_v8, %v3489_v32  ;;  %v4538_v62 = vpop.f32.mrf.mxu3  ;;  %v6024_v24 = vrot.slane %v5998_v35, 9  ;;  %v3206_v18 = vrot.slane %v6000_v13, 5 }
 0x208   : > { %v3416_v9 = vpop.f32.mrf.mxu1  ;;  %v4269_v13 = vshll.u32 %v6257_v1, 16 }
 0x209   : > { %v4614_v11 = vadd.f32 %v4538_v62, %v3868_v15  ;;  %v3490_v62 = vadd.f32 %v3416_v9, %v7409_v17  ;;  %v4254_v17 = vsel %vm6898_vm4, %v4249_v43, %v7910_v54 }
 0x20a   : > { %v5063_v26 = vpop.f32.mrf.mxu0 }
 0x20b   : > { %v5136_v32 = vadd.f32 %v5060_v25, %v4614_v11  ;;  %3455 = vmatmul.bf16.gmra.mxu1 %v3327_v10  ;;  %3834 = vmatmul.bf16.gmra.mxu2 %v6521_v44  ;;  %v3204_v25 = vsel %vm6902_vm5, %v6024_v24, %v3203_v3  ;;  %v3207_v10 = vsel %vm6902_vm5, %v3205_v52, %v3206_v18  ;;  %v4266_v44 = vshrl.u32 %v6257_v1, 16  ;;  %v6002_v18 = vld [vmem:[%s6754_s11 + $0xa0] sm:$0xf] }
 0x20c   : > { %4580 = vmatmul.bf16.gmra.mxu3 %v4452_v33  ;;  %v4264_v3 = vsel %vm6898_vm4, %v4259_v23, %v4263_v4  ;;  %v4851_v11 = vsel %vm6902_vm5, %v6376_v47, %v4850_v19  ;;  %v3307_v21 = vunpack.c.l.b16 %v3204_v25  ;;  %v3308_v39 = vunpack.c.l.b16 %v3207_v10 }
 0x20d   : > { %5102 = vmatmul.bf16.gmra.mxu0 %v4974_v58  ;;  %v6559_v28 = vpack.c.bf16 %v5136_v32, %v5135_v5  ;;  %v5295_v8 = vadd.f32 %v5294_v14, %v5136_v32  ;;  %v5328_v15 = vmul.f32 %v5136_v32, %v5136_v32  ;;  %v4275_v58 = vshll.u32 %v6258_v63, 16 }
 0x20e   : > { %v3795_v35 = vpop.f32.mrf.mxu2  ;;  %v4279_v5 = vshrl.u32 %v6258_v63, 16  ;;  %v4268_v24 = vrot.slane %v4266_v44, 4  ;;  %v4271_v32 = vrot.slane %v4269_v13, 5  ;;  %v4432_v1 = vunpack.c.l.b16 %v4254_v17  ;;  %v6259_v63 = vld [vmem:[%s6754_s11 + $0xb0] sm:$0x1]  ;;  %v6522_v44 = vld [vmem:[%s6754_s11 + $0x9c] sm:$0xff] }
 0x20f   : > { %6631 = vst [vmem:[%s7891_s12 + $0x8] sm:$0xff] %v6559_v28   ;;  %v5359_v49 = vadd.f32 %v5358_v60, %v5328_v15  ;;  %v3869_v56 = vadd.f32 %v3795_v35, %v3490_v62  ;;  %v4541_v33 = vpop.f32.mrf.mxu3  ;;  %v4854_v60 = vsel %vm6902_vm5, %v4852_v59, %v4853_v51  ;;  %v7939_v54 = vrot.slane %v4275_v58, 5  ;;  %v6354_v28 = vld [vmem:[%s6754_s11 + $0xac] sm:$0xf]  ;;  %v6001_v13 = vld [vmem:[%s6754_s11 + $0x9c] sm:$0xe] }
 0x210   : > { %v3418_v14 = vpop.f32.mrf.mxu1  ;;  %v4281_v43 = vrot.slane %v4279_v5, 4  ;;  %v4433_v23 = vunpack.c.l.b16 %v4264_v3  ;;  %v4954_v19 = vunpack.c.l.b16 %v4851_v11  ;;  %v4955_v4 = vunpack.c.l.b16 %v4854_v60  ;;  %v6353_v11 = vld [vmem:[%s6754_s11 + $0xa8] sm:$0xe]  ;;  %v6355_v60 = vld [vmem:[%s6754_s11 + $0xb0] sm:$0x1] }
 0x211   : > { %v4615_v9 = vadd.f32 %v4541_v33, %v3869_v56  ;;  %v3491_v51 = vadd.f32 %v3418_v14, %v7411_v46  ;;  %v3210_v62 = vrot.slane %v6002_v18, 5  ;;  %v6003_v56 = vld [vmem:[%s6754_s11 + $0xa4] sm:$0x1]  ;;  %v4272_v33 = vor.u32 %v4271_v32, %v4268_v24 }
 0x212   : > { %v5065_v48 = vpop.f32.mrf.mxu0  ;;  %v4282_v58 = vor.u32 %v4281_v43, %v7939_v54  ;;  %v4453_v5 = vpack.c.b16 %v4433_v23, %v4432_v1  ;;  %v4975_v46 = vpack.c.b16 %v4955_v4, %v4954_v19  ;;  %v4285_v14 = vshll.u32 %v6259_v63, 16  ;;  %v6260_v43 = vld [vmem:[%s6754_s11 + $0xb4] sm:$0xf] }
 0x213   : > { %v5137_v52 = vadd.f32 %v5063_v26, %v4615_v9  ;;  %v3328_v26 = vpack.c.b16 %v3308_v39, %v3307_v21  ;;  %v4857_v17 = vrot.slane %v6354_v28, 5  ;;  %v3212_v21 = vrot.slane %v3210_v62, 4 }
 0x214   : > { %v3213_v39 = vrot.slane %v6003_v56, 5  ;;  %v4273_v24 = vrot.slane %v4272_v33, 4  ;;  %v4283_v32 = vrot.slane %v4282_v58, 4  ;;  %v4287_v1 = vrot.slane %v4285_v14, 5 }
 0x215   : > { %v5296_v47 = vadd.f32 %v5295_v8, %v5137_v52  ;;  %v5329_v59 = vmul.f32 %v5137_v52, %v5137_v52  ;;  %v6377_v23 = vrot.slane %v6353_v11, 9  ;;  %v4859_v19 = vrot.slane %v4857_v17, 4 }
 0x216   : > { %v3797_v15 = vpop.f32.mrf.mxu2  ;;  %v4860_v4 = vrot.slane %v6355_v60, 5 }
 0x217   : > { %v5360_v35 = vadd.f32 %v5359_v49, %v5329_v59  ;;  %v3870_v25 = vadd.f32 %v3797_v15, %v3491_v51  ;;  %v4543_v10 = vpop.f32.mrf.mxu3  ;;  %v6025_v49 = vrot.slane %v6001_v13, 9  ;;  %v6261_v59 = vld [vmem:[%s6754_s11 + $0xb8] sm:$0xf] }
 0x218   : > { %v3421_v8 = vpop.f32.mrf.mxu1  ;;  %v4299_v58 = vshll.u32 %v6261_v59, 16 }
 0x219   : > { %v4616_v9 = vadd.f32 %v4543_v10, %v3870_v25  ;;  %v3492_v15 = vadd.f32 %v3421_v8, %v7446_v42  ;;  %v4290_v10 = vshrl.u32 %v6260_v43, 16  ;;  %v4278_v42 = vsel %vm6898_vm4, %v4273_v24, %v7939_v54 }
 0x21a   : > { %v5068_v3 = vpop.f32.mrf.mxu0  ;;  %v7968_v54 = vrot.slane %v4299_v58, 5 }
 0x21b   : > { %v5138_v18 = vadd.f32 %v5065_v48, %v4616_v9  ;;  %3460 = vmatmul.bf16.gmra.mxu1 %v3328_v26  ;;  %3839 = vmatmul.bf16.gmra.mxu2 %v6522_v44  ;;  %v3211_v48 = vsel %vm6902_vm5, %v6025_v49, %v3210_v62  ;;  %v3214_v26 = vsel %vm6902_vm5, %v3212_v21, %v3213_v39  ;;  %v4293_v44 = vshll.u32 %v6260_v43, 16  ;;  %v6005_v49 = vld [vmem:[%s6754_s11 + $0xac] sm:$0xf] }
 0x21c   : > { %4585 = vmatmul.bf16.gmra.mxu3 %v4453_v5  ;;  %v4288_v62 = vsel %vm6898_vm4, %v4283_v32, %v4287_v1  ;;  %v3309_v14 = vunpack.c.l.b16 %v3211_v48  ;;  %v3310_v9 = vunpack.c.l.b16 %v3214_v26  ;;  %v4292_v11 = vrot.slane %v4290_v10, 4  ;;  %v6523_v48 = vld [vmem:[%s6754_s11 + $0xa8] sm:$0xff]  ;;  %v6006_v10 = vld [vmem:[%s6754_s11 + $0xb0] sm:$0x1] }
 0x21d   : > { %5107 = vmatmul.bf16.gmra.mxu0 %v4975_v46  ;;  %v6564_v51 = vpack.c.bf16 %v5138_v18, %v5137_v52  ;;  %v5297_v63 = vadd.f32 %v5296_v47, %v5138_v18  ;;  %v5330_v28 = vmul.f32 %v5138_v18, %v5138_v18  ;;  %v4303_v52 = vshrl.u32 %v6261_v59, 16  ;;  %v6004_v26 = vld [vmem:[%s6754_s11 + $0xa8] sm:$0xe] }
 0x21e   : > { %v3800_v25 = vpop.f32.mrf.mxu2  ;;  %v4858_v46 = vsel %vm6902_vm5, %v6377_v23, %v4857_v17  ;;  %v4295_v21 = vrot.slane %v4293_v44, 5  ;;  %v4434_v18 = vunpack.c.l.b16 %v4278_v42  ;;  %v4435_v24 = vunpack.c.l.b16 %v4288_v62  ;;  %v6358_v62 = vld [vmem:[%s6754_s11 + $0xbc] sm:$0x1] }
 0x21f   : > { %6632 = vst [vmem:[%s7891_s12 + $0x10] sm:$0xff] %v6564_v51   ;;  %v5361_v13 = vadd.f32 %v5360_v35, %v5330_v28  ;;  %v3871_v56 = vadd.f32 %v3800_v25, %v3492_v15  ;;  %v4546_v33 = vpop.f32.mrf.mxu3  ;;  %v4861_v35 = vsel %vm6902_vm5, %v4859_v19, %v4860_v4  ;;  %v4305_v39 = vrot.slane %v4303_v52, 4  ;;  %v6262_v19 = vld [vmem:[%s6754_s11 + $0xbc] sm:$0x1]  ;;  %v6357_v4 = vld [vmem:[%s6754_s11 + $0xb8] sm:$0xf] }
 0x220   : > { %v3423_v47 = vpop.f32.mrf.mxu1  ;;  %v4956_v17 = vunpack.c.l.b16 %v4858_v46  ;;  %v4957_v32 = vunpack.c.l.b16 %v4861_v35  ;;  %v3217_v51 = vrot.slane %v6005_v49, 5  ;;  %v4296_v44 = vor.u32 %v4295_v21, %v4292_v11  ;;  %v6263_v49 = vld [vmem:[%s6754_s11 + $0xc0] sm:$0xf] }
 0x221   : > { %v4617_v8 = vadd.f32 %v4546_v33, %v3871_v56  ;;  %v3493_v23 = vadd.f32 %v3423_v47, %v7448_v55  ;;  %v4306_v56 = vor.u32 %v4305_v39, %v7968_v54  ;;  %v4454_v33 = vpack.c.b16 %v4435_v24, %v4434_v18 }
 0x222   : > { %v5070_v5 = vpop.f32.mrf.mxu0  ;;  %v4976_v55 = vpack.c.b16 %v4957_v32, %v4956_v17  ;;  %v4309_v58 = vshll.u32 %v6262_v19, 16  ;;  %v4864_v52 = vrot.slane %v6357_v4, 5  ;;  %v3219_v46 = vrot.slane %v3217_v51, 4  ;;  %v6264_v17 = vld [vmem:[%s6754_s11 + $0xc4] sm:$0xf] }
 0x223   : > { %v5139_v60 = vadd.f32 %v5068_v3, %v4617_v8  ;;  %v3329_v3 = vpack.c.b16 %v3310_v9, %v3309_v14  ;;  %v6356_v8 = vld [vmem:[%s6754_s11 + $0xb4] sm:$0xe]  ;;  %v3220_v35 = vrot.slane %v6006_v10, 5  ;;  %v4297_v9 = vrot.slane %v4296_v44, 4 }
 0x224   : > { %v4307_v11 = vrot.slane %v4306_v56, 4  ;;  %v4311_v21 = vrot.slane %v4309_v58, 5  ;;  %v6378_v39 = vrot.slane %v6356_v8, 9  ;;  %v4866_v18 = vrot.slane %v4864_v52, 4  ;;  %v6008_v8 = vld [vmem:[%s6754_s11 + $0xb8] sm:$0xf] }
 0x225   : > { %v5298_v43 = vadd.f32 %v5297_v63, %v5139_v60  ;;  %v5331_v1 = vmul.f32 %v5139_v60, %v5139_v60  ;;  %v4867_v24 = vrot.slane %v6358_v62, 5  ;;  %v4323_v10 = vshll.u32 %v6264_v17, 16 }
 0x226   : > { %v3802_v59 = vpop.f32.mrf.mxu2 }
 0x227   : > { %v5362_v28 = vadd.f32 %v5361_v13, %v5331_v1  ;;  %v3872_v15 = vadd.f32 %v3802_v59, %v3493_v23  ;;  %v4548_v25 = vpop.f32.mrf.mxu3  ;;  %v6026_v13 = vrot.slane %v6004_v26, 9  ;;  %v3221_v59 = vsel %vm6902_vm5, %v3219_v46, %v3220_v35 }
 0x228   : > { %v3426_v63 = vpop.f32.mrf.mxu1 }
 0x229   : > { %v4618_v47 = vadd.f32 %v4548_v25, %v3872_v15  ;;  %v3494_v19 = vadd.f32 %v3426_v63, %v7495_v30  ;;  %v4317_v15 = vshll.u32 %v6263_v49, 16  ;;  %v4302_v30 = vsel %vm6898_vm4, %v4297_v9, %v7968_v54 }
 0x22a   : > { %v5073_v42 = vpop.f32.mrf.mxu0  ;;  %v4865_v63 = vsel %vm6902_vm5, %v6378_v39, %v4864_v52  ;;  %v7997_v54 = vrot.slane %v4323_v10, 5  ;;  %v4436_v46 = vunpack.c.l.b16 %v4302_v30  ;;  %v6360_v39 = vld [vmem:[%s6754_s11 + $0xc4] sm:$0xf]  ;;  %v6361_v30 = vld [vmem:[%s6754_s11 + $0xc8] sm:$0x1] }
 0x22b   : > { %v5140_v14 = vadd.f32 %v5070_v5, %v4618_v47  ;;  %3465 = vmatmul.bf16.gmra.mxu1 %v3329_v3  ;;  %3844 = vmatmul.bf16.gmra.mxu2 %v6523_v48  ;;  %v3218_v5 = vsel %vm6902_vm5, %v6026_v13, %v3217_v51  ;;  %v4314_v3 = vshrl.u32 %v6263_v49, 16  ;;  %v4312_v51 = vsel %vm6898_vm4, %v4307_v11, %v4311_v21  ;;  %v6265_v21 = vld [vmem:[%s6754_s11 + $0xc8] sm:$0x1] }
 0x22c   : > { %4590 = vmatmul.bf16.gmra.mxu3 %v4454_v33  ;;  %v3311_v33 = vunpack.c.l.b16 %v3218_v5  ;;  %v4319_v62 = vrot.slane %v4317_v15, 5  ;;  %v4437_v35 = vunpack.c.l.b16 %v4312_v51  ;;  %v4958_v52 = vunpack.c.l.b16 %v4865_v63  ;;  %v6009_v5 = vld [vmem:[%s6754_s11 + $0xbc] sm:$0x1] }
 0x22d   : > { %5112 = vmatmul.bf16.gmra.mxu0 %v4976_v55  ;;  %v6569_v32 = vpack.c.bf16 %v5140_v14, %v5139_v60  ;;  %v5299_v1 = vadd.f32 %v5298_v43, %v5140_v14  ;;  %v5332_v23 = vmul.f32 %v5140_v14, %v5140_v14  ;;  %v4327_v60 = vshrl.u32 %v6264_v17, 16 }
 0x22e   : > { %v3805_v4 = vpop.f32.mrf.mxu2  ;;  %v3312_v55 = vunpack.c.l.b16 %v3221_v59  ;;  %v4316_v58 = vrot.slane %v4314_v3, 4  ;;  %v4455_v15 = vpack.c.b16 %v4437_v35, %v4436_v46  ;;  %v3227_v51 = vrot.slane %v6009_v5, 5  ;;  %v6267_v46 = vld [vmem:[%s6754_s11 + $0xd0] sm:$0xf] }
 0x22f   : > { %6633 = vst [vmem:[%s7891_s12 + $0x18] sm:$0xff] %v6569_v32   ;;  %v5363_v25 = vadd.f32 %v5362_v28, %v5332_v23  ;;  %v3873_v48 = vadd.f32 %v3805_v4, %v3494_v19  ;;  %v4551_v26 = vpop.f32.mrf.mxu3  ;;  %v4868_v28 = vsel %vm6902_vm5, %v4866_v18, %v4867_v24  ;;  %v4329_v13 = vrot.slane %v4327_v60, 4  ;;  %v6524_v19 = vld [vmem:[%s6754_s11 + $0xb4] sm:$0xff] }
 0x230   : > { %v3428_v43 = vpop.f32.mrf.mxu1  ;;  %v4959_v14 = vunpack.c.l.b16 %v4868_v28  ;;  %v3224_v24 = vrot.slane %v6008_v8, 5  ;;  %v6007_v4 = vld [vmem:[%s6754_s11 + $0xb4] sm:$0xe]  ;;  %v4320_v59 = vor.u32 %v4319_v62, %v4316_v58 }
 0x231   : > { %v4619_v44 = vadd.f32 %v4551_v26, %v3873_v48  ;;  %v3495_v49 = vadd.f32 %v3428_v43, %v7497_v20  ;;  %v4330_v3 = vor.u32 %v4329_v13, %v7997_v54  ;;  %v4333_v48 = vshll.u32 %v6265_v21, 16  ;;  %v6359_v43 = vld [vmem:[%s6754_s11 + $0xc0] sm:$0xe] }
 0x232   : > { %v5075_v56 = vpop.f32.mrf.mxu0  ;;  %v4977_v20 = vpack.c.b16 %v4959_v14, %v4958_v52  ;;  %v4871_v26 = vrot.slane %v6360_v39, 5  ;;  %v4321_v28 = vrot.slane %v4320_v59, 4  ;;  %v6379_v8 = vrot.slane %v6359_v43, 9 }
 0x233   : > { %v5141_v47 = vadd.f32 %v5073_v42, %v4619_v44  ;;  %v3330_v42 = vpack.c.b16 %v3312_v55, %v3311_v33  ;;  %v3226_v44 = vrot.slane %v3224_v24, 4  ;;  %v4331_v33 = vrot.slane %v4330_v3, 4  ;;  %v6266_v55 = vld [vmem:[%s6754_s11 + $0xcc] sm:$0xf] }
 0x234   : > { %v4335_v58 = vrot.slane %v4333_v48, 5  ;;  %v4873_v62 = vrot.slane %v4871_v26, 4  ;;  %v4874_v13 = vrot.slane %v6361_v30, 5  ;;  %v4338_v39 = vshrl.u32 %v6266_v55, 16  ;;  %v6011_v48 = vld [vmem:[%s6754_s11 + $0xc4] sm:$0xf] }
 0x235   : > { %v5300_v9 = vadd.f32 %v5299_v1, %v5141_v47  ;;  %v5333_v11 = vmul.f32 %v5141_v47, %v5141_v47  ;;  %v3228_v21 = vsel %vm6902_vm5, %v3226_v44, %v3227_v51  ;;  %v4872_v59 = vsel %vm6902_vm5, %v6379_v8, %v4871_v26 }
 0x236   : > { %v3807_v18 = vpop.f32.mrf.mxu2  ;;  %v4960_v44 = vunpack.c.l.b16 %v4872_v59  ;;  %v3231_v8 = vrot.slane %v6011_v48, 5 }
 0x237   : > { %v5364_v17 = vadd.f32 %v5363_v25, %v5333_v11  ;;  %v3874_v32 = vadd.f32 %v3807_v18, %v3495_v49  ;;  %v4553_v23 = vpop.f32.mrf.mxu3  ;;  %v6027_v25 = vrot.slane %v6007_v4, 9  ;;  %v4341_v18 = vshll.u32 %v6266_v55, 16  ;;  %v6363_v55 = vld [vmem:[%s6754_s11 + $0xd0] sm:$0xf] }
 0x238   : > { %v3431_v1 = vpop.f32.mrf.mxu1 }
 0x239   : > { %v4620_v10 = vadd.f32 %v4553_v23, %v3874_v32  ;;  %v3496_v11 = vadd.f32 %v3431_v1, %v7520_v37  ;;  %v4326_v37 = vsel %vm6898_vm4, %v4321_v28, %v7997_v54  ;;  %v3314_v1 = vunpack.c.l.b16 %v3228_v21 }
 0x23a   : > { %v5078_v60 = vpop.f32.mrf.mxu0  ;;  %v4438_v30 = vunpack.c.l.b16 %v4326_v37 }
 0x23b   : > { %v5142_v63 = vadd.f32 %v5075_v56, %v4620_v10  ;;  %3470 = vmatmul.bf16.gmra.mxu1 %v3330_v42  ;;  %3849 = vmatmul.bf16.gmra.mxu2 %v6524_v19  ;;  %v3225_v56 = vsel %vm6902_vm5, %v6027_v25, %v3224_v24  ;;  %v4347_v19 = vshll.u32 %v6267_v46, 16  ;;  %v4336_v24 = vsel %vm6898_vm4, %v4331_v33, %v4335_v58  ;;  %v6268_v33 = vld [vmem:[%s6754_s11 + $0xd4] sm:$0x1] }
 0x23c   : > { %4595 = vmatmul.bf16.gmra.mxu3 %v4455_v15  ;;  %v3313_v3 = vunpack.c.l.b16 %v3225_v56  ;;  %v4340_v15 = vrot.slane %v4338_v39, 4  ;;  %v4343_v10 = vrot.slane %v4341_v18, 5  ;;  %v4439_v25 = vunpack.c.l.b16 %v4336_v24 }
 0x23d   : > { %5117 = vmatmul.bf16.gmra.mxu0 %v4977_v20  ;;  %v6574_v35 = vpack.c.bf16 %v5142_v63, %v5141_v47  ;;  %v5301_v52 = vadd.f32 %v5300_v9, %v5142_v63  ;;  %v5334_v14 = vmul.f32 %v5142_v63, %v5142_v63  ;;  %v4351_v47 = vshrl.u32 %v6267_v46, 16 }
 0x23e   : > { %v3810_v49 = vpop.f32.mrf.mxu2  ;;  %v8026_v54 = vrot.slane %v4347_v19, 5  ;;  %v4456_v56 = vpack.c.b16 %v4439_v25, %v4438_v30  ;;  %v4357_v39 = vshll.u32 %v6268_v33, 16  ;;  %v4878_v18 = vrot.slane %v6363_v55, 5  ;;  %v6362_v19 = vld [vmem:[%s6754_s11 + $0xcc] sm:$0xe] }
 0x23f   : > { %6634 = vst [vmem:[%s7891_s12 + $0x20] sm:$0xff] %v6574_v35   ;;  %v5365_v42 = vadd.f32 %v5364_v17, %v5334_v14  ;;  %v3875_v32 = vadd.f32 %v3810_v49, %v3496_v11  ;;  %v4556_v23 = vpop.f32.mrf.mxu3  ;;  %v4875_v17 = vsel %vm6902_vm5, %v4873_v62, %v4874_v13  ;;  %v4353_v43 = vrot.slane %v4351_v47, 4  ;;  %v6525_v35 = vld [vmem:[%s6754_s11 + $0xc0] sm:$0xff]  ;;  %v6364_v47 = vld [vmem:[%s6754_s11 + $0xd4] sm:$0x1] }
 0x240   : > { %v3433_v9 = vpop.f32.mrf.mxu1  ;;  %v4961_v26 = vunpack.c.l.b16 %v4875_v17  ;;  %v6010_v14 = vld [vmem:[%s6754_s11 + $0xc0] sm:$0xe]  ;;  %v4344_v11 = vor.u32 %v4343_v10, %v4340_v15  ;;  %v4359_v17 = vrot.slane %v4357_v39, 5  ;;  %v4881_v15 = vrot.slane %v6364_v47, 5 }
 0x241   : > { %v4621_v4 = vadd.f32 %v4556_v23, %v3875_v32  ;;  %v3497_v28 = vadd.f32 %v3433_v9, %v7528_v38  ;;  %v4354_v49 = vor.u32 %v4353_v43, %v8026_v54  ;;  %v6012_v38 = vld [vmem:[%s6754_s11 + $0xc8] sm:$0x1]  ;;  %v6028_v9 = vrot.slane %v6010_v14, 9 }
 0x242   : > { %v5080_v5 = vpop.f32.mrf.mxu0  ;;  %v4978_v21 = vpack.c.b16 %v4961_v26, %v4960_v44  ;;  %v4345_v24 = vrot.slane %v4344_v11, 4 }
 0x243   : > { %v5143_v20 = vadd.f32 %v5078_v60, %v4621_v4  ;;  %v3331_v60 = vpack.c.b16 %v3314_v1, %v3313_v3  ;;  %v3234_v4 = vrot.slane %v6012_v38, 5  ;;  %v4355_v59 = vrot.slane %v4354_v49, 4 }
 0x244   : > { %v6380_v3 = vrot.slane %v6362_v19, 9  ;;  %v4880_v1 = vrot.slane %v4878_v18, 4 }
 0x245   : > { %v5302_v51 = vadd.f32 %v5301_v52, %v5143_v20  ;;  %v5335_v63 = vmul.f32 %v5143_v20, %v5143_v20 }
 0x246   : > { %v3812_v58 = vpop.f32.mrf.mxu2 }
 0x247   : > { %v5366_v62 = vadd.f32 %v5365_v42, %v5335_v63  ;;  %v3876_v13 = vadd.f32 %v3812_v58, %v3497_v28  ;;  %v4558_v46 = vpop.f32.mrf.mxu3  ;;  %v3233_v42 = vrot.slane %v3231_v8, 4  ;;  %v3232_v28 = vsel %vm6902_vm5, %v6028_v9, %v3231_v8 }
 0x248   : > { %v3436_v52 = vpop.f32.mrf.mxu1  ;;  %v4879_v58 = vsel %vm6902_vm5, %v6380_v3, %v4878_v18  ;;  %v6526_v18 = vld [vmem:[%s6754_s11 + $0xcc] sm:$0xff]  ;;  %s5515_s11 = sshll.u32 %s6742_s29, 3 }
 0x249   : > { %v4622_v32 = vadd.f32 %v4558_v46, %v3876_v13  ;;  %v3498_v30 = vadd.f32 %v3436_v52, %v7546_v2  ;;  %v3235_v33 = vsel %vm6902_vm5, %v3233_v42, %v3234_v4  ;;  %v4360_v2 = vsel %vm6898_vm4, %v4355_v59, %v4359_v17  ;;  %s215_s17 = scalar_lea.vmem %s8095_s3, %s5515_s11  ;;  %s219_s20 = scalar_lea.vmem %s8096_s4, %s5515_s11 }
 0x24a   : > { %v5083_v23 = vpop.f32.mrf.mxu0  ;;  %v3316_v13 = vunpack.c.l.b16 %v3235_v33  ;;  %v4962_v14 = vunpack.c.l.b16 %v4879_v58 }
 0x24b   : > { %v5144_v37 = vadd.f32 %v5080_v5, %v4622_v32  ;;  %3475 = vmatmul.bf16.gmra.mxu1 %v3331_v60  ;;  %3854 = vmatmul.bf16.gmra.mxu2 %v6525_v35  ;;  %v4882_v60 = vsel %vm6902_vm5, %v4880_v1, %v4881_v15  ;;  %v4441_v35 = vunpack.c.l.b16 %v4360_v2 }
 0x24c   : > { %4600 = vmatmul.bf16.gmra.mxu3 %v4456_v56  ;;  %v4963_v11 = vunpack.c.l.b16 %v4882_v60 }
 0x24d   : > { %5122 = vmatmul.bf16.gmra.mxu0 %v4978_v21  ;;  %v6579_v48 = vpack.c.bf16 %v5144_v37, %v5143_v20  ;;  %v5303_v10 = vadd.f32 %v5302_v51, %v5144_v37  ;;  %v5336_v43 = vmul.f32 %v5144_v37, %v5144_v37  ;;  %v4350_v20 = vsel %vm6898_vm4, %v4345_v24, %v8026_v54 }
 0x24e   : > { %v3815_v25 = vpop.f32.mrf.mxu2  ;;  %v4440_v46 = vunpack.c.l.b16 %v4350_v20 }
 0x24f   : > { %6635 = vst [vmem:[%s7891_s12 + $0x28] sm:$0xff] %v6579_v48   ;;  %v5367_v5 = vadd.f32 %v5366_v62, %v5336_v43  ;;  %v3877_v44 = vadd.f32 %v3815_v25, %v3498_v30  ;;  %v4561_v26 = vpop.f32.mrf.mxu3  ;;  %v3315_v62 = vunpack.c.l.b16 %v3232_v28 }
 0x250   : > { %v3438_v63 = vpop.f32.mrf.mxu1  ;;  %v4457_v32 = vpack.c.b16 %v4441_v35, %v4440_v46 }
 0x251   : > { %v4623_v51 = vadd.f32 %v4561_v26, %v3877_v44  ;;  %v3499_v52 = vadd.f32 %v3438_v63, %v7562_v22  ;;  %v3332_v39 = vpack.c.b16 %v3316_v13, %v3315_v62 }
 0x252   : > { %v5085_v55 = vpop.f32.mrf.mxu0 }
 0x253   : > { %v5145_v8 = vadd.f32 %v5083_v23, %v4623_v51  ;;  %v4979_v23 = vpack.c.b16 %v4963_v11, %v4962_v14 }
 0x255   : > { %v5304_v54 = vadd.f32 %v5303_v10, %v5145_v8  ;;  %v5337_v49 = vmul.f32 %v5145_v8, %v5145_v8 }
 0x256   : > { %v3817_v31 = vpop.f32.mrf.mxu2 }
 0x257   : > { %v5368_v56 = vadd.f32 %v5367_v5, %v5337_v49  ;;  %v3878_v21 = vadd.f32 %v3817_v31, %v3499_v52  ;;  %v4563_v38 = vpop.f32.mrf.mxu3 }
 0x258   : > { %v3441_v36 = vpop.f32.mrf.mxu1 }
 0x259   : > { %v4624_v19 = vadd.f32 %v4563_v38, %v3878_v21  ;;  %v3500_v4 = vadd.f32 %v3441_v36, %v7582_v27 }
 0x25a   : > { %v5088_v47 = vpop.f32.mrf.mxu0 }
 0x25b   : > { %v5146_v9 = vadd.f32 %v5085_v55, %v4624_v19  ;;  %3480 = vmatmul.bf16.gmra.mxu1 %v3332_v39  ;;  %3859 = vmatmul.bf16.gmra.mxu2 %v6526_v18 }
 0x25c   : > { %4605 = vmatmul.bf16.gmra.mxu3 %v4457_v32 }
 0x25d   : > { %5127 = vmatmul.bf16.gmra.mxu0 %v4979_v23  ;;  %v6584_v42 = vpack.c.bf16 %v5146_v9, %v5145_v8  ;;  %v5305_v37 = vadd.f32 %v5304_v54, %v5146_v9  ;;  %v5338_v22 = vmul.f32 %v5146_v9, %v5146_v9 }
 0x25e   : > { %v3820_v24 = vpop.f32.mrf.mxu2 }
 0x25f   : > { %6636 = vst [vmem:[%s7891_s12 + $0x30] sm:$0xff] %v6584_v42   ;;  %v5369_v59 = vadd.f32 %v5368_v56, %v5338_v22  ;;  %v3879_v17 = vadd.f32 %v3820_v24, %v3500_v4  ;;  %v4566_v3 = vpop.f32.mrf.mxu3 }
 0x260   : > { %v3443_v1 = vpop.f32.mrf.mxu1 }
 0x261   : > { %v4625_v15 = vadd.f32 %v4566_v3, %v3879_v17  ;;  %v3501_v25 = vadd.f32 %v3443_v1, %v7592_v12 }
 0x262   : > { %v5090_v48 = vpop.f32.mrf.mxu0 }
 0x263   : > { %v5147_v10 = vadd.f32 %v5088_v47, %v4625_v15 }
 0x265   : > { %v5306_v43 = vadd.f32 %v5305_v37, %v5147_v10  ;;  %v5339_v30 = vmul.f32 %v5147_v10, %v5147_v10 }
 0x266   : > { %v3822_v5 = vpop.f32.mrf.mxu2 }
 0x267   : > { %v5370_v44 = vadd.f32 %v5369_v59, %v5339_v30  ;;  %v3880_v26 = vadd.f32 %v3822_v5, %v3501_v25  ;;  %v4568_v63 = vpop.f32.mrf.mxu3 }
 0x268   : > { %v3446_v28 = vpop.f32.mrf.mxu1 }
 0x269   : > { %v4626_v27 = vadd.f32 %v4568_v63, %v3880_v26  ;;  %v3502_v58 = vadd.f32 %v3446_v28, %v7610_v29 }
 0x26a   : > { %v5093_v33 = vpop.f32.mrf.mxu0 }
 0x26b   : > { %v5148_v20 = vadd.f32 %v5090_v48, %v4626_v27 }
 0x26d   : > { %v6589_v51 = vpack.c.bf16 %v5148_v20, %v5147_v10  ;;  %v5307_v55 = vadd.f32 %v5306_v43, %v5148_v20  ;;  %v5340_v2 = vmul.f32 %v5148_v20, %v5148_v20 }
 0x26e   : > { %v3825_v60 = vpop.f32.mrf.mxu2 }
 0x26f   : > { %6637 = vst [vmem:[%s7891_s12 + $0x38] sm:$0xff] %v6589_v51   ;;  %v5371_v8 = vadd.f32 %v5370_v44, %v5340_v2  ;;  %v3881_v62 = vadd.f32 %v3825_v60, %v3502_v58  ;;  %v4571_v13 = vpop.f32.mrf.mxu3 }
 0x270   : > { %v3448_v46 = vpop.f32.mrf.mxu1 }
 0x271   : > { %v4627_v12 = vadd.f32 %v4571_v13, %v3881_v62  ;;  %v3503_v49 = vadd.f32 %v3448_v46, %v7626_v53 }
 0x272   : > { %v5095_v35 = vpop.f32.mrf.mxu0 }
 0x273   : > { %v5149_v14 = vadd.f32 %v5093_v33, %v4627_v12 }
 0x275   : > { %v5308_v11 = vadd.f32 %v5307_v55, %v5149_v14  ;;  %v5341_v54 = vmul.f32 %v5149_v14, %v5149_v14 }
 0x276   : > { %v3827_v52 = vpop.f32.mrf.mxu2 }
 0x277   : > { %v5372_v31 = vadd.f32 %v5371_v8, %v5341_v54  ;;  %v3882_v56 = vadd.f32 %v3827_v52, %v3503_v49  ;;  %v4573_v21 = vpop.f32.mrf.mxu3 }
 0x278   : > { %v3451_v38 = vpop.f32.mrf.mxu1 }
 0x279   : > { %v4628_v29 = vadd.f32 %v4573_v21, %v3882_v56  ;;  %v3504_v19 = vadd.f32 %v3451_v38, %v7646_v6 }
 0x27a   : > { %v5098_v39 = vpop.f32.mrf.mxu0 }
 0x27b   : > { %v5150_v18 = vadd.f32 %v5095_v35, %v4628_v29 }
 0x27d   : > { %v6594_v36 = vpack.c.bf16 %v5150_v18, %v5149_v14  ;;  %v5309_v32 = vadd.f32 %v5308_v11, %v5150_v18  ;;  %v5342_v23 = vmul.f32 %v5150_v18, %v5150_v18 }
 0x27e   : > { %v3830_v47 = vpop.f32.mrf.mxu2 }
 0x27f   : > { %6638 = vst [vmem:[%s7891_s12 + $0x40] sm:$0xff] %v6594_v36   ;;  %v5373_v9 = vadd.f32 %v5372_v31, %v5342_v23  ;;  %v3883_v42 = vadd.f32 %v3830_v47, %v3504_v19  ;;  %v4576_v37 = vpop.f32.mrf.mxu3 }
 0x280   : > { %v3453_v22 = vpop.f32.mrf.mxu1 }
 0x281   : > { %v4629_v53 = vadd.f32 %v4576_v37, %v3883_v42  ;;  %v3505_v3 = vadd.f32 %v3453_v22, %v7656_v0 }
 0x282   : > { %v5100_v4 = vpop.f32.mrf.mxu0 }
 0x283   : > { %v5151_v24 = vadd.f32 %v5098_v39, %v4629_v53 }
 0x285   : > { %v5310_v59 = vadd.f32 %v5309_v32, %v5151_v24  ;;  %v5343_v17 = vmul.f32 %v5151_v24, %v5151_v24 }
 0x286   : > { %v3832_v1 = vpop.f32.mrf.mxu2 }
 0x287   : > { %v5374_v15 = vadd.f32 %v5373_v9, %v5343_v17  ;;  %v3884_v48 = vadd.f32 %v3832_v1, %v3505_v3  ;;  %v4578_v10 = vpop.f32.mrf.mxu3 }
 0x288   : > { %v3456_v43 = vpop.f32.mrf.mxu1 }
 0x289   : > { %v4630_v6 = vadd.f32 %v4578_v10, %v3884_v48  ;;  %v3506_v63 = vadd.f32 %v3456_v43, %v7674_v34 }
 0x28a   : > { %v5103_v30 = vpop.f32.mrf.mxu0 }
 0x28b   : > { %v5152_v25 = vadd.f32 %v5100_v4, %v4630_v6 }
 0x28d   : > { %v6599_v5 = vpack.c.bf16 %v5152_v25, %v5151_v24  ;;  %v5311_v44 = vadd.f32 %v5310_v59, %v5152_v25  ;;  %v5344_v26 = vmul.f32 %v5152_v25, %v5152_v25 }
 0x28e   : > { %v3835_v28 = vpop.f32.mrf.mxu2 }
 0x28f   : > { %6639 = vst [vmem:[%s7891_s12 + $0x48] sm:$0xff] %v6599_v5   ;;  %v5375_v27 = vadd.f32 %v5374_v15, %v5344_v26  ;;  %v3885_v33 = vadd.f32 %v3835_v28, %v3506_v63  ;;  %v4581_v20 = vpop.f32.mrf.mxu3 }
 0x290   : > { %v3458_v51 = vpop.f32.mrf.mxu1 }
 0x291   : > { %v4631_v0 = vadd.f32 %v4581_v20, %v3885_v33  ;;  %v3507_v8 = vadd.f32 %v3458_v51, %v7690_v61 }
 0x292   : > { %v5105_v55 = vpop.f32.mrf.mxu0 }
 0x293   : > { %v5153_v2 = vadd.f32 %v5103_v30, %v4631_v0 }
 0x295   : > { %v5312_v58 = vadd.f32 %v5311_v44, %v5153_v2  ;;  %v5345_v60 = vmul.f32 %v5153_v2, %v5153_v2 }
 0x296   : > { %v3837_v62 = vpop.f32.mrf.mxu2 }
 0x297   : > { %v5376_v13 = vadd.f32 %v5375_v27, %v5345_v60  ;;  %v3886_v46 = vadd.f32 %v3837_v62, %v3507_v8  ;;  %v4583_v12 = vpop.f32.mrf.mxu3 }
 0x298   : > { %v3461_v35 = vpop.f32.mrf.mxu1 }
 0x299   : > { %v4632_v34 = vadd.f32 %v4583_v12, %v3886_v46  ;;  %v3508_v31 = vadd.f32 %v3461_v35, %v7710_v57 }
 0x29a   : > { %v5108_v14 = vpop.f32.mrf.mxu0 }
 0x29b   : > { %v5154_v11 = vadd.f32 %v5105_v55, %v4632_v34 }
 0x29d   : > { %v6604_v54 = vpack.c.bf16 %v5154_v11, %v5153_v2  ;;  %v5313_v49 = vadd.f32 %v5312_v58, %v5154_v11  ;;  %v5346_v52 = vmul.f32 %v5154_v11, %v5154_v11 }
 0x29e   : > { %v3840_v56 = vpop.f32.mrf.mxu2 }
 0x29f   : > { %6640 = vst [vmem:[%s7891_s12 + $0x50] sm:$0xff] %v6604_v54   ;;  %v5377_v21 = vadd.f32 %v5376_v13, %v5346_v52  ;;  %v3887_v38 = vadd.f32 %v3840_v56, %v3508_v31  ;;  %v4586_v29 = vpop.f32.mrf.mxu3 }
 0x2a0   : > { %v3463_v39 = vpop.f32.mrf.mxu1 }
 0x2a1   : > { %v4633_v61 = vadd.f32 %v4586_v29, %v3887_v38  ;;  %v3509_v19 = vadd.f32 %v3463_v39, %v7720_v41 }
 0x2a2   : > { %v5110_v18 = vpop.f32.mrf.mxu0 }
 0x2a3   : > { %v5155_v36 = vadd.f32 %v5108_v14, %v4633_v61 }
 0x2a5   : > { %v5314_v32 = vadd.f32 %v5313_v49, %v5155_v36  ;;  %v5347_v23 = vmul.f32 %v5155_v36, %v5155_v36 }
 0x2a6   : > { %v3842_v47 = vpop.f32.mrf.mxu2 }
 0x2a7   : > { %v5378_v9 = vadd.f32 %v5377_v21, %v5347_v23  ;;  %v3888_v42 = vadd.f32 %v3842_v47, %v3509_v19  ;;  %v4588_v37 = vpop.f32.mrf.mxu3 }
 0x2a8   : > { %v3466_v22 = vpop.f32.mrf.mxu1 }
 0x2a9   : > { %v4634_v57 = vadd.f32 %v4588_v37, %v3888_v42  ;;  %v3510_v3 = vadd.f32 %v3466_v22, %v7738_v50  ;;  %v8121_v22 = vld [vmem:[#allocation3_spill] sm:$0xff] }
 0x2aa   : > { %v5113_v53 = vpop.f32.mrf.mxu0 }
 0x2ab   : > { %v5156_v4 = vadd.f32 %v5110_v18, %v4634_v57 }
 0x2ad   : > { %v6609_v24 = vpack.c.bf16 %v5156_v4, %v5155_v36  ;;  %v5315_v59 = vadd.f32 %v5314_v32, %v5156_v4  ;;  %v5348_v17 = vmul.f32 %v5156_v4, %v5156_v4 }
 0x2ae   : > { %v3845_v1 = vpop.f32.mrf.mxu2 }
 0x2af   : > { %6641 = vst [vmem:[%s7891_s12 + $0x58] sm:$0xff] %v6609_v24   ;;  %v5379_v15 = vadd.f32 %v5378_v9, %v5348_v17  ;;  %v3889_v48 = vadd.f32 %v3845_v1, %v3510_v3  ;;  %v4591_v10 = vpop.f32.mrf.mxu3 }
 0x2b0   : > { %v3468_v43 = vpop.f32.mrf.mxu1 }
 0x2b1   : > { %v4635_v41 = vadd.f32 %v4591_v10, %v3889_v48  ;;  %v3511_v44 = vadd.f32 %v3468_v43, %v7754_v16  ;;  %v8122_v43 = vld [vmem:[#allocation4_spill] sm:$0xff] }
 0x2b2   : > { %v5115_v6 = vpop.f32.mrf.mxu0 }
 0x2b3   : > { %v5157_v30 = vadd.f32 %v5113_v53, %v4635_v41 }
 0x2b5   : > { %v5316_v25 = vadd.f32 %v5315_v59, %v5157_v30  ;;  %v5349_v5 = vmul.f32 %v5157_v30, %v5157_v30 }
 0x2b6   : > { %v3847_v26 = vpop.f32.mrf.mxu2 }
 0x2b7   : > { %v5380_v63 = vadd.f32 %v5379_v15, %v5349_v5  ;;  %v3890_v28 = vadd.f32 %v3847_v26, %v3511_v44  ;;  %v4593_v27 = vpop.f32.mrf.mxu3 }
 0x2b8   : > { %v3471_v33 = vpop.f32.mrf.mxu1 }
 0x2b9   : > { %v4636_v50 = vadd.f32 %v4593_v27, %v3890_v28  ;;  %v3512_v58 = vadd.f32 %v3471_v33, %v7774_v40 }
 0x2ba   : > { %v5118_v20 = vpop.f32.mrf.mxu0 }
 0x2bb   : > { %v5158_v51 = vadd.f32 %v5115_v6, %v4636_v50  ;;  %v8123_v50 = vld [vmem:[#allocation5_spill] sm:$0xff] }
 0x2bd   : > { %v6614_v0 = vpack.c.bf16 %v5158_v51, %v5157_v30  ;;  %v5317_v55 = vadd.f32 %v5316_v25, %v5158_v51  ;;  %v5350_v2 = vmul.f32 %v5158_v51, %v5158_v51 }
 0x2be   : > { %v3850_v60 = vpop.f32.mrf.mxu2 }
 0x2bf   : > { %6642 = vst [vmem:[%s7891_s12 + $0x60] sm:$0xff] %v6614_v0   ;;  %v5381_v8 = vadd.f32 %v5380_v63, %v5350_v2  ;;  %v3891_v62 = vadd.f32 %v3850_v60, %v3512_v58  ;;  %v4596_v13 = vpop.f32.mrf.mxu3 }
 0x2c0   : > { %v3473_v46 = vpop.f32.mrf.mxu1 }
 0x2c1   : > { %v4637_v16 = vadd.f32 %v4596_v13, %v3891_v62  ;;  %v3513_v11 = vadd.f32 %v3473_v46, %v7784_v45 }
 0x2c2   : > { %v5120_v12 = vpop.f32.mrf.mxu0 }
 0x2c3   : > { %v5159_v35 = vadd.f32 %v5118_v20, %v4637_v16 }
 0x2c5   : > { %v5318_v34 = vadd.f32 %v5317_v55, %v5159_v35  ;;  %v5351_v14 = vmul.f32 %v5159_v35, %v5159_v35 }
 0x2c6   : > { %v3852_v54 = vpop.f32.mrf.mxu2 }
 0x2c7   : > { %v5382_v49 = vadd.f32 %v5381_v8, %v5351_v14  ;;  %v3892_v52 = vadd.f32 %v3852_v54, %v3513_v11  ;;  %v4598_v31 = vpop.f32.mrf.mxu3 }
 0x2c8   : > { %v3476_v56 = vpop.f32.mrf.mxu1 }
 0x2c9   : > { %v4638_v40 = vadd.f32 %v4598_v31, %v3892_v52  ;;  %v3514_v18 = vadd.f32 %v3476_v56, %v7802_v7 }
 0x2ca   : > { %v5123_v38 = vpop.f32.mrf.mxu0 }
 0x2cb   : > { %v5160_v21 = vadd.f32 %v5120_v12, %v4638_v40 }
 0x2cd   : > { %v6619_v29 = vpack.c.bf16 %v5160_v21, %v5159_v35  ;;  %v5319_v39 = vadd.f32 %v5318_v34, %v5160_v21  ;;  %v5352_v61 = vmul.f32 %v5160_v21, %v5160_v21 }
 0x2ce   : > { %v3855_v36 = vpop.f32.mrf.mxu2 }
 0x2cf   : > { %6643 = vst [vmem:[%s7891_s12 + $0x68] sm:$0xff] %v6619_v29   ;;  %v5383_v32 = vadd.f32 %v5382_v49, %v5352_v61  ;;  %v3893_v23 = vadd.f32 %v3855_v36, %v3514_v18  ;;  %v4601_v19 = vpop.f32.mrf.mxu3 }
 0x2d0   : > { %v3478_v47 = vpop.f32.mrf.mxu1 }
 0x2d1   : > { %v4639_v45 = vadd.f32 %v4601_v19, %v3893_v23  ;;  %v3515_v57 = vadd.f32 %v3478_v47, %v8121_v22 }
 0x2d2   : > { %v5125_v53 = vpop.f32.mrf.mxu0 }
 0x2d3   : > { %v5161_v9 = vadd.f32 %v5123_v38, %v4639_v45 }
 0x2d5   : > { %v5320_v42 = vadd.f32 %v5319_v39, %v5161_v9  ;;  %v5353_v37 = vmul.f32 %v5161_v9, %v5161_v9 }
 0x2d6   : > { %v3857_v4 = vpop.f32.mrf.mxu2 }
 0x2d7   : > { %v5384_v24 = vadd.f32 %v5383_v32, %v5353_v37  ;;  %v3894_v59 = vadd.f32 %v3857_v4, %v3515_v57  ;;  %v4603_v17 = vpop.f32.mrf.mxu3 }
 0x2d8   : > { %v3481_v3 = vpop.f32.mrf.mxu1 }
 0x2d9   : > { %v4640_v7 = vadd.f32 %v4603_v17, %v3894_v59  ;;  %v3516_v41 = vadd.f32 %v3481_v3, %v8122_v43 }
 0x2da   : > { %v5128_v44 = vpop.f32.mrf.mxu0 }
 0x2db   : > { %v5162_v1 = vadd.f32 %v5125_v53, %v4640_v7 }
 0x2dd   : > { %v6624_v15 = vpack.c.bf16 %v5162_v1, %v5161_v9  ;;  %v5321_v48 = vadd.f32 %v5320_v42, %v5162_v1  ;;  %v5354_v10 = vmul.f32 %v5162_v1, %v5162_v1 }
 0x2de   : > { %v3860_v6 = vpop.f32.mrf.mxu2 }
 0x2df   : > { %6644 = vst [vmem:[%s7891_s12 + $0x70] sm:$0xff] %v6624_v15   ;;  %v5385_v30 = vadd.f32 %v5384_v24, %v5354_v10  ;;  %v3895_v25 = vadd.f32 %v3860_v6, %v3516_v41  ;;  %v4606_v5 = vpop.f32.mrf.mxu3 }
 0x2e0   : > { %v3483_v63 = vpop.f32.mrf.mxu1 }
 0x2e1   : > { %v4641_v26 = vadd.f32 %v4606_v5, %v3895_v25  ;;  %v3517_v20 = vadd.f32 %v3483_v63, %v8123_v50 }
 0x2e2   : > { %v5130_v60 = vpop.f32.mrf.mxu0 }
 0x2e3   : > { %v5163_v28 = vadd.f32 %v5128_v44, %v4641_v26 }
 0x2e5   : > { %v5322_v27 = vadd.f32 %v5321_v48, %v5163_v28  ;;  %v5355_v33 = vmul.f32 %v5163_v28, %v5163_v28 }
 0x2e6   : > { %v3862_v51 = vpop.f32.mrf.mxu2 }
 0x2e7   : > { %v5386_v0 = vadd.f32 %v5385_v30, %v5355_v33  ;;  %v3896_v55 = vadd.f32 %v3862_v51, %v3517_v20  ;;  %v4608_v2 = vpop.f32.mrf.mxu3 }
 0x2e9   : > { %v4642_v58 = vadd.f32 %v4608_v2, %v3896_v55 }
 0x2eb   : > { %v5164_v8 = vadd.f32 %v5130_v60, %v4642_v58 }
 0x2ed   : > { %v6629_v62 = vpack.c.bf16 %v5164_v8, %v5163_v28  ;;  %v5323_v13 = vadd.f32 %v5322_v27, %v5164_v8  ;;  %v5356_v46 = vmul.f32 %v5164_v8, %v5164_v8 }
 0x2ef   : > { %6645 = vst [vmem:[%s7891_s12 + $0x78] sm:$0xff] %v6629_v62   ;;  %v5387_v16 = vadd.f32 %v5386_v0, %v5356_v46 }
 0x2f0   : > { %5324 = vst [vmem:[%s215_s17] sm:$0xff] %v5323_v13 }
 0x2f1   : > { %5388 = vst [vmem:[%s219_s20] sm:$0xff] %v5387_v16 }
 0x2f2 PF: > { %s15_s15 = sadd.s32 1, %s6685_s15  }
 0x2f3   : > { %p12_p5 = scmp.ge.s32.totalorder %s15_s15, 4  }
 0x2f5   :  { %14 = sbr.rel (!%p12_p5) target bundleno = 1 (0x1), region = 92 }

</bundles_post_ra>
